<compile_context>
chip_gen: v6e
topology: v6e:2x2x1
jax: 0.10.0
libtpu: 0.0.40
codegen_flags: <defaults>
</compile_context>

<pallas_src>
import functools
import math

import jax
import jax.numpy as jnp
from jax.experimental import pallas as pl
from jax.experimental.pallas import tpu as pltpu

HIDDEN = 256
SLAB_W = 128                       # lane-dense output slab width
LOG2PI = math.log(2.0 * math.pi)
_MEGACORE_MIN_ROWS = 512           # only split the batch across 2 TCs above this


def _round_up(x, m):
    return ((x + m - 1) // m) * m


def _cdiv(a, b):
    return -(-a // b)


def _default_act_dtype():
    """bf16 activations/tanh on chips with a bf16 VPU/EUP (v6e, v7x); f32 otherwise."""
    try:
        kind = jax.devices()[0].device_kind.lower()
    except Exception:
        return jnp.float32
    if any(old in kind for old in ("v2", "v3", "v4", "v5")):
        return jnp.float32
    return jnp.bfloat16


def actor_critic_eval_kernel(state_ref, action_ref, w1f_ref, wh_ref, aw5_ref,
                             bias_ref, c128_ref, out_ref, *, act_dtype):
    """One batch tile of the fused actor+critic forward + diagonal-Gaussian stats.

    Operands (all weight/constant operands have constant index_maps -> VMEM resident):
      w1f_ref : (S, 2H)   bf16  fused first layer [actor_l1 | critic_l1]
      wh_ref  : (6, H, H) bf16  hidden weights [aw2,aw3,aw4,cw2,cw3,cw4]
      aw5_ref : (H, 128)  bf16  actor final layer, zero-padded to 128 lanes
      bias_ref: (16, H)   f32   rows: 0 ab1, 1 cb1, 2-4 ab2..4, 5-7 cb2..4, 8 cw5 row
      c128_ref: (8, 128)  f32   rows: 0 ab5(pad), 1 qrow(-0.5/var), 2 consts,
                                      3 logprob one-hot, 4 value one-hot

    Output slab layout (single lane-dense (TB, 128) f32 store):
      lanes [0, A) mean | lane A value | lane A+1 log_prob | lane A+2 entropy | 0s
    """
    wdt = w1f_ref.dtype                               # bf16 MXU operand dtype

    def dense(x, w, brow):
        acc = jnp.dot(x.astype(wdt), w, preferred_element_type=jnp.float32)
        return acc + brow

    x = state_ref[...]                                # (TB, S) f32

    # Fused first layer: one (TB,S)x(S,2H) matmul, then per-branch bias + tanh.
    h = jnp.dot(x.astype(wdt), w1f_ref[...], preferred_element_type=jnp.float32)
    ha = jnp.tanh((h[:, :HIDDEN] + bias_ref[0:1, :]).astype(act_dtype))
    hc = jnp.tanh((h[:, HIDDEN:] + bias_ref[1:2, :]).astype(act_dtype))

    # Hidden stacks (Linear + Tanh). bf16 MXU operands, f32 accumulate; the tanh
    # (and the activations it produces) run in act_dtype (bf16 on v6e/v7x, f32 on v5e).
    for li in range(3):
        ha = jnp.tanh(dense(ha, wh_ref[li],
                            bias_ref[2 + li:3 + li, :]).astype(act_dtype))
        hc = jnp.tanh(dense(hc, wh_ref[3 + li],
                            bias_ref[5 + li:6 + li, :]).astype(act_dtype))

    # Actor final layer (mean): kept in f32 (log_prob amplifies mean error by 1/var).
    # Padded lanes stay 0 since weights/bias are 0 there and tanh(0) = 0.
    mean_pad = jnp.tanh(dense(ha, aw5_ref[...], c128_ref[0:1, :]))       # (TB,128) f32

    # Critic value head off the MXU: VPU multiply by f32 cw5 row + XLU lane reduce.
    value = jnp.sum(hc.astype(jnp.float32) * bias_ref[8:9, :],
                    axis=-1, keepdims=True)                              # (TB, 1) f32

    # Diagonal-Gaussian log-prob quadratic form: sum(diff^2 * (-0.5/var)).
    # qrow is zero outside the action lanes, so padded lanes contribute nothing.
    diff = action_ref[...] - mean_pad                                    # (TB, 128) f32
    quad = jnp.sum(diff * diff * c128_ref[1:2, :], axis=-1, keepdims=True)

    out_ref[...] = (mean_pad
                    + value * c128_ref[4:5, :]       # value one-hot lane
                    + quad * c128_ref[3:4, :]        # log_prob one-hot lane
                    + c128_ref[2:3, :])              # lp/entropy/value-bias constants


class ActorCriticPallas:
    """Continuous-action ActorCritic.evaluate() with PyTorch-default Linear init
    (U(-1/sqrt(fan_in), +1/sqrt(fan_in)))."""

    def __init__(self, state_dim, action_dim, action_std_init, key,
                 block_b=1024, weight_dtype=jnp.bfloat16, act_dtype=None):
        assert action_dim + 3 <= SLAB_W, "action_dim too large for one output slab"
        self.state_dim = state_dim
        self.action_dim = action_dim
        self.block_b = block_b
        self.weight_dtype = weight_dtype
        self.act_dtype = act_dtype if act_dtype is not None else _default_act_dtype()

        self.value_lane = action_dim
        self.logprob_lane = action_dim + 1
        self.entropy_lane = action_dim + 2

        actor_dims = [(state_dim, HIDDEN)] + [(HIDDEN, HIDDEN)] * 3 + [(HIDDEN, action_dim)]
        critic_dims = [(state_dim, HIDDEN)] + [(HIDDEN, HIDDEN)] * 3 + [(HIDDEN, 1)]

        def init_layer(k, fan_in, fan_out):
            kw, kb = jax.random.split(k)
            bound = 1.0 / math.sqrt(fan_in)
            w = jax.random.uniform(kw, (fan_in, fan_out), jnp.float32, -bound, bound)
            b = jax.random.uniform(kb, (1, fan_out), jnp.float32, -bound, bound)
            return w, b

        keys = jax.random.split(key, 10)
        self.actor_layers = [init_layer(keys[i], fi, fo)
                             for i, (fi, fo) in enumerate(actor_dims)]
        self.critic_layers = [init_layer(keys[5 + i], fi, fo)
                              for i, (fi, fo) in enumerate(critic_dims)]

        self.action_var = jnp.full((action_dim,), action_std_init * action_std_init,
                                   dtype=jnp.float32)
        self._pack_params()

    def _pack_params(self):
        wdt = self.weight_dtype
        A = self.action_dim

        (aw1, ab1), (aw2, ab2), (aw3, ab3), (aw4, ab4), (aw5, ab5) = self.actor_layers
        (cw1, cb1), (cw2, cb2), (cw3, cb3), (cw4, cb4), (cw5, cb5) = self.critic_layers

        # Fused first layer [actor_l1 | critic_l1]; six hidden weights stacked.
        w1f = jnp.concatenate([aw1, cw1], axis=1).astype(wdt)            # (S, 2H)
        wh = jnp.stack([aw2, aw3, aw4, cw2, cw3, cw4]).astype(wdt)       # (6, H, H)
        # Actor final layer zero-padded to 128 lanes (unmasked matmul + store).
        # NOTE: kept bf16; switch to f32 if bit-closeness to a torch f32 model matters.
        aw5p = jnp.zeros((HIDDEN, SLAB_W), jnp.float32).at[:, :A].set(aw5).astype(wdt)

        # All (1, H)-sized biases (+ the f32 cw5 row for the VPU value head) packed
        # into one (16, H) operand.
        bias = jnp.zeros((16, HIDDEN), jnp.float32)
        for row, vec in enumerate((ab1[0], cb1[0], ab2[0], ab3[0], ab4[0],
                                   cb2[0], cb3[0], cb4[0], cw5[:, 0])):
            bias = bias.at[row].set(vec)

        # Host-precomputed Gaussian constants (no in-kernel log / divide / entropy),
        # plus one-hot placement rows, packed into one (8, 128) operand.
        sum_log_var = float(jnp.sum(jnp.log(self.action_var)))
        lp_const = -0.5 * sum_log_var - 0.5 * A * LOG2PI
        ent_const = 0.5 * A * (1.0 + LOG2PI) + 0.5 * sum_log_var

        c128 = jnp.zeros((8, SLAB_W), jnp.float32)
        c128 = c128.at[0, :A].set(ab5[0])                       # actor final bias (pad)
        c128 = c128.at[1, :A].set(-0.5 / self.action_var)       # qrow
        c128 = c128.at[2, self.logprob_lane].set(lp_const)      # constants row
        c128 = c128.at[2, self.entropy_lane].set(ent_const)
        c128 = c128.at[2, self.value_lane].set(cb5[0, 0])       # critic final bias
        c128 = c128.at[3, self.logprob_lane].set(1.0)           # log_prob one-hot
        c128 = c128.at[4, self.value_lane].set(1.0)             # value one-hot

        self._params = (w1f, wh, aw5p, bias, c128)

    def set_action_std(self, new_action_std):
        self.action_var = jnp.full((self.action_dim,),
                                   new_action_std * new_action_std, jnp.float32)
        self._pack_params()

    def _choose_tile(self, B):
        b16 = _round_up(B, 16)                   # bf16 packs 2 rows/sublane -> mult of 16
        tb = min(self.block_b, b16)
        if b16 >= _MEGACORE_MIN_ROWS:
            # Keep an even grid trip count >= 2 so the "parallel" batch axis can
            # shard across both TensorCores on v7x.
            n = max(2, _cdiv(b16, tb))
            if n % 2:
                n += 1
            tb = _round_up(_cdiv(b16, n), 16)
        bp = _round_up(B, tb)
        return tb, bp

    def evaluate(self, state, action, act_dtype=None):
        """Mirror of ActorCritic.evaluate -> (action_logprobs, state_values,
        dist_entropy, action_mean)."""
        act_dtype = self.act_dtype if act_dtype is None else act_dtype
        state = jnp.asarray(state, jnp.float32)
        action = jnp.asarray(action, jnp.float32)
        if action.ndim == 1:
            action = action.reshape(-1, self.action_dim)
        B = state.shape[0]
        A = self.action_dim

        tb, bp = self._choose_tile(B)

        state_p = jnp.zeros((bp, self.state_dim), jnp.float32).at[:B].set(state)
        action_p = jnp.zeros((bp, SLAB_W), jnp.float32).at[:B, :A].set(action)

        def const_spec(p):
            return pl.BlockSpec(p.shape, lambda i, nd=p.ndim: (0,) * nd)

        grid = (bp // tb,)
        in_specs = [
            pl.BlockSpec((tb, self.state_dim), lambda i: (i, 0)),
            pl.BlockSpec((tb, SLAB_W), lambda i: (i, 0)),
        ] + [const_spec(p) for p in self._params]
        out_spec = pl.BlockSpec((tb, SLAB_W), lambda i: (i, 0))

        kernel = functools.partial(actor_critic_eval_kernel, act_dtype=act_dtype)

        slab = pl.pallas_call(
            kernel,
            out_shape=jax.ShapeDtypeStruct((bp, SLAB_W), jnp.float32),
            grid=grid,
            in_specs=in_specs,
            out_specs=out_spec,
            compiler_params=pltpu.CompilerParams(
                dimension_semantics=("parallel",),       # megacore sharding on v7x
                vmem_limit_bytes=48 * 1024 * 1024,       # <= v7x's 64 MiB VMEM
            ),
        )(state_p, action_p, *self._params)

        mean = slab[:B, :A]
        value = slab[:B, self.value_lane:self.value_lane + 1]
        logprob = slab[:B, self.logprob_lane]
        entropy = slab[:B, self.entropy_lane]
        return logprob, value, entropy, mean

    # TODO(synk): act() requires sampling from MultivariateNormal; the stateful TPU
    # PRNG (pltpu.prng_*) could drive it, but sampling parity with
    # torch.distributions is not reproduced here.


def _reference_evaluate(model, state, action, act_dtype=None):
    """Pure-JAX mirror of the kernel's numerics (bf16 weights, act_dtype activations,
    f32 accumulation, VPU value head) for correctness checking."""
    act_dtype = model.act_dtype if act_dtype is None else act_dtype
    wdt = model.weight_dtype

    def dense(x, w, b):
        return jnp.dot(x.astype(wdt).astype(jnp.float32),
                       w.astype(wdt).astype(jnp.float32)) + b

    (aw1, ab1), (aw2, ab2), (aw3, ab3), (aw4, ab4), (aw5, ab5) = model.actor_layers
    (cw1, cb1), (cw2, cb2), (cw3, cb3), (cw4, cb4), (cw5, cb5) = model.critic_layers

    ha = state
    for w, b in ((aw1, ab1), (aw2, ab2), (aw3, ab3), (aw4, ab4)):
        ha = jnp.tanh(dense(ha, w, b).astype(act_dtype)).astype(jnp.float32)
    mean = jnp.tanh(dense(ha, aw5, ab5))                       # final actor tanh in f32

    hc = state
    for w, b in ((cw1, cb1), (cw2, cb2), (cw3, cb3), (cw4, cb4)):
        hc = jnp.tanh(dense(hc, w, b).astype(act_dtype)).astype(jnp.float32)
    value = jnp.sum(hc * cw5[:, 0][None, :], axis=-1, keepdims=True) + cb5[0, 0]

    var = model.action_var
    k = model.action_dim
    diff = action - mean
    logprob = (-0.5 * jnp.sum(diff * diff / var, axis=-1)
               - 0.5 * jnp.sum(jnp.log(var))
               - 0.5 * k * LOG2PI)
    entropy = jnp.full((state.shape[0],),
                       0.5 * k * (1.0 + LOG2PI) + 0.5 * jnp.sum(jnp.log(var)))
    return logprob, value, entropy, mean


if __name__ == "__main__":
    B, STATE_DIM, ACTION_DIM = 200, 16, 4
    ACTION_STD_INIT = 0.6

    key = jax.random.PRNGKey(0)
    k_params, k_state, k_action = jax.random.split(key, 3)

    model = ActorCriticPallas(STATE_DIM, ACTION_DIM, ACTION_STD_INIT, k_params)

    state = jax.random.normal(k_state, (B, STATE_DIM), dtype=jnp.float32)
    action = jnp.clip(jax.random.normal(k_action, (B, ACTION_DIM), dtype=jnp.float32),
                      -1.0, 1.0)

    # Auto-selected activation dtype (bf16 tanh on v6e/v7x, f32 on v5e and older).
    logprob, value, entropy, mean = model.evaluate(state, action)
    jax.block_until_ready((logprob, value, entropy, mean))

    assert logprob.shape == (B,) and value.shape == (B, 1)
    assert entropy.shape == (B,) and mean.shape == (B, ACTION_DIM)

    r_logprob, r_value, r_entropy, r_mean = _reference_evaluate(
        model, state, action, model.act_dtype)
    if model.act_dtype == jnp.float32:
        m_tol, v_tol, lp_atol, lp_rtol = 1e-3, 1e-3, 2e-3, 2e-3
    else:
        # bf16 EUP tanh in the kernel vs XLA's tanh in the reference can round
        # differently; tolerances account for that, amplified through 4 layers + 1/var.
        m_tol, v_tol, lp_atol, lp_rtol = 6e-2, 6e-2, 3e-1, 5e-2
    assert jnp.allclose(mean, r_mean, atol=m_tol, rtol=1e-2)
    assert jnp.allclose(value, r_value, atol=v_tol, rtol=1e-2)
    assert jnp.allclose(logprob, r_logprob, atol=lp_atol, rtol=lp_rtol)
    assert jnp.allclose(entropy, r_entropy, atol=1e-3, rtol=1e-3)

    # Tight structural check with the f32 activation path (runs on every chip).
    if model.act_dtype != jnp.float32:
        lp32, v32, ent32, m32 = model.evaluate(state, action, act_dtype=jnp.float32)
        jax.block_until_ready((lp32, v32, ent32, m32))
        r32 = _reference_evaluate(model, state, action, jnp.float32)
        assert jnp.allclose(m32, r32[3], atol=1e-3, rtol=1e-3)
        assert jnp.allclose(v32, r32[1], atol=1e-3, rtol=1e-3)
        assert jnp.allclose(lp32, r32[0], atol=2e-3, rtol=2e-3)
        assert jnp.allclose(ent32, r32[2], atol=1e-3, rtol=1e-3)

    print("KERNEL_OK")
</pallas_src>

<mosaic_0001>
module attributes {stable_mosaic.version = 11 : i64} {
  func.func @actor_critic_eval_kernel(%arg0: i32, %arg1: memref<208x16xf32, #tpu.memory_space<vmem>>, %arg2: memref<208x128xf32, #tpu.memory_space<vmem>>, %arg3: memref<16x512xbf16, #tpu.memory_space<vmem>>, %arg4: memref<6x256x256xbf16, #tpu.memory_space<vmem>>, %arg5: memref<256x128xbf16, #tpu.memory_space<vmem>>, %arg6: memref<16x256xf32, #tpu.memory_space<vmem>>, %arg7: memref<8x128xf32, #tpu.memory_space<vmem>>, %arg8: memref<208x128xf32, #tpu.memory_space<vmem>>) attributes {dimension_semantics = [#tpu.dimension_semantics<parallel>], iteration_bounds = array<i64: 1>, scalar_prefetch = 0 : i64, scratch_operands = 0 : i64, tpu.core_type = #tpu.core_type<tc>, window_params = [{transform_indices = @transform_0, window_bounds = array<i64: 208, 16>}, {transform_indices = @transform_1, window_bounds = array<i64: 208, 128>}, {pipeline_mode = #tpu.pipeline_mode<synchronous>, transform_indices = @transform_2, window_bounds = array<i64: 16, 512>}, {pipeline_mode = #tpu.pipeline_mode<synchronous>, transform_indices = @transform_3, window_bounds = array<i64: 6, 256, 256>}, {pipeline_mode = #tpu.pipeline_mode<synchronous>, transform_indices = @transform_4, window_bounds = array<i64: 256, 128>}, {pipeline_mode = #tpu.pipeline_mode<synchronous>, transform_indices = @transform_5, window_bounds = array<i64: 16, 256>}, {pipeline_mode = #tpu.pipeline_mode<synchronous>, transform_indices = @transform_6, window_bounds = array<i64: 8, 128>}, {transform_indices = @transform_7, window_bounds = array<i64: 208, 128>}]} {
    %c0 = arith.constant 0 : index
    %c0_0 = arith.constant 0 : index
    %0 = vector.load %arg1[%c0, %c0_0] : memref<208x16xf32, #tpu.memory_space<vmem>>, vector<208x16xf32>
    %1 = arith.truncf %0 : vector<208x16xf32> to vector<208x16xbf16>
    %c0_1 = arith.constant 0 : index
    %c0_2 = arith.constant 0 : index
    %2 = vector.load %arg3[%c0_1, %c0_2] : memref<16x512xbf16, #tpu.memory_space<vmem>>, vector<16x512xbf16>
    %cst = arith.constant dense<0.000000e+00> : vector<208x512xf32>
    %3 = tpu.matmul %1, %2, %cst {dimension_numbers = #tpu.dot_dimension_numbers<[1], [0], [0], [1], [0, 0, 1, 1], [], []>} : vector<208x16xbf16>, vector<16x512xbf16>, vector<208x512xf32> -> vector<208x512xf32>
    %4 = vector.extract_strided_slice %3 {offsets = [0, 0], sizes = [208, 256], strides = [1, 1]} : vector<208x512xf32> to vector<208x256xf32>
    %c0_3 = arith.constant 0 : index
    %c0_4 = arith.constant 0 : index
    %5 = vector.load %arg6[%c0_3, %c0_4] : memref<16x256xf32, #tpu.memory_space<vmem>>, vector<1x256xf32>
    %6 = vector.broadcast %5 : vector<1x256xf32> to vector<208x256xf32>
    %7 = arith.addf %4, %6 : vector<208x256xf32>
    %8 = arith.truncf %7 : vector<208x256xf32> to vector<208x256xbf16>
    %9 = math.tanh %8 : vector<208x256xbf16>
    %10 = vector.extract_strided_slice %3 {offsets = [0, 256], sizes = [208, 256], strides = [1, 1]} : vector<208x512xf32> to vector<208x256xf32>
    %c1 = arith.constant 1 : index
    %c0_5 = arith.constant 0 : index
    %11 = vector.load %arg6[%c1, %c0_5] : memref<16x256xf32, #tpu.memory_space<vmem>>, vector<1x256xf32>
    %12 = vector.broadcast %11 : vector<1x256xf32> to vector<208x256xf32>
    %13 = arith.addf %10, %12 : vector<208x256xf32>
    %14 = arith.truncf %13 : vector<208x256xf32> to vector<208x256xbf16>
    %15 = math.tanh %14 : vector<208x256xbf16>
    %c0_6 = arith.constant 0 : index
    %c0_7 = arith.constant 0 : index
    %c0_8 = arith.constant 0 : index
    %16 = vector.load %arg4[%c0_6, %c0_7, %c0_8] : memref<6x256x256xbf16, #tpu.memory_space<vmem>>, vector<1x256x256xbf16>
    %17 = vector.shape_cast %16 : vector<1x256x256xbf16> to vector<256x256xbf16>
    %c2 = arith.constant 2 : index
    %c0_9 = arith.constant 0 : index
    %18 = vector.load %arg6[%c2, %c0_9] : memref<16x256xf32, #tpu.memory_space<vmem>>, vector<1x256xf32>
    %cst_10 = arith.constant dense<0.000000e+00> : vector<208x256xf32>
    %19 = tpu.matmul %9, %17, %cst_10 {dimension_numbers = #tpu.dot_dimension_numbers<[1], [0], [0], [1], [0, 0, 1, 1], [], []>} : vector<208x256xbf16>, vector<256x256xbf16>, vector<208x256xf32> -> vector<208x256xf32>
    %20 = vector.broadcast %18 : vector<1x256xf32> to vector<208x256xf32>
    %21 = arith.addf %19, %20 : vector<208x256xf32>
    %22 = arith.truncf %21 : vector<208x256xf32> to vector<208x256xbf16>
    %23 = math.tanh %22 : vector<208x256xbf16>
    %c3 = arith.constant 3 : index
    %c0_11 = arith.constant 0 : index
    %c0_12 = arith.constant 0 : index
    %24 = vector.load %arg4[%c3, %c0_11, %c0_12] : memref<6x256x256xbf16, #tpu.memory_space<vmem>>, vector<1x256x256xbf16>
    %25 = vector.shape_cast %24 : vector<1x256x256xbf16> to vector<256x256xbf16>
    %c5 = arith.constant 5 : index
    %c0_13 = arith.constant 0 : index
    %26 = vector.load %arg6[%c5, %c0_13] : memref<16x256xf32, #tpu.memory_space<vmem>>, vector<1x256xf32>
    %cst_14 = arith.constant dense<0.000000e+00> : vector<208x256xf32>
    %27 = tpu.matmul %15, %25, %cst_14 {dimension_numbers = #tpu.dot_dimension_numbers<[1], [0], [0], [1], [0, 0, 1, 1], [], []>} : vector<208x256xbf16>, vector<256x256xbf16>, vector<208x256xf32> -> vector<208x256xf32>
    %28 = vector.broadcast %26 : vector<1x256xf32> to vector<208x256xf32>
    %29 = arith.addf %27, %28 : vector<208x256xf32>
    %30 = arith.truncf %29 : vector<208x256xf32> to vector<208x256xbf16>
    %31 = math.tanh %30 : vector<208x256xbf16>
    %c1_15 = arith.constant 1 : index
    %c0_16 = arith.constant 0 : index
    %c0_17 = arith.constant 0 : index
    %32 = vector.load %arg4[%c1_15, %c0_16, %c0_17] : memref<6x256x256xbf16, #tpu.memory_space<vmem>>, vector<1x256x256xbf16>
    %33 = vector.shape_cast %32 : vector<1x256x256xbf16> to vector<256x256xbf16>
    %c3_18 = arith.constant 3 : index
    %c0_19 = arith.constant 0 : index
    %34 = vector.load %arg6[%c3_18, %c0_19] : memref<16x256xf32, #tpu.memory_space<vmem>>, vector<1x256xf32>
    %cst_20 = arith.constant dense<0.000000e+00> : vector<208x256xf32>
    %35 = tpu.matmul %23, %33, %cst_20 {dimension_numbers = #tpu.dot_dimension_numbers<[1], [0], [0], [1], [0, 0, 1, 1], [], []>} : vector<208x256xbf16>, vector<256x256xbf16>, vector<208x256xf32> -> vector<208x256xf32>
    %36 = vector.broadcast %34 : vector<1x256xf32> to vector<208x256xf32>
    %37 = arith.addf %35, %36 : vector<208x256xf32>
    %38 = arith.truncf %37 : vector<208x256xf32> to vector<208x256xbf16>
    %39 = math.tanh %38 : vector<208x256xbf16>
    %c4 = arith.constant 4 : index
    %c0_21 = arith.constant 0 : index
    %c0_22 = arith.constant 0 : index
    %40 = vector.load %arg4[%c4, %c0_21, %c0_22] : memref<6x256x256xbf16, #tpu.memory_space<vmem>>, vector<1x256x256xbf16>
    %41 = vector.shape_cast %40 : vector<1x256x256xbf16> to vector<256x256xbf16>
    %c6 = arith.constant 6 : index
    %c0_23 = arith.constant 0 : index
    %42 = vector.load %arg6[%c6, %c0_23] : memref<16x256xf32, #tpu.memory_space<vmem>>, vector<1x256xf32>
    %cst_24 = arith.constant dense<0.000000e+00> : vector<208x256xf32>
    %43 = tpu.matmul %31, %41, %cst_24 {dimension_numbers = #tpu.dot_dimension_numbers<[1], [0], [0], [1], [0, 0, 1, 1], [], []>} : vector<208x256xbf16>, vector<256x256xbf16>, vector<208x256xf32> -> vector<208x256xf32>
    %44 = vector.broadcast %42 : vector<1x256xf32> to vector<208x256xf32>
    %45 = arith.addf %43, %44 : vector<208x256xf32>
    %46 = arith.truncf %45 : vector<208x256xf32> to vector<208x256xbf16>
    %47 = math.tanh %46 : vector<208x256xbf16>
    %c2_25 = arith.constant 2 : index
    %c0_26 = arith.constant 0 : index
    %c0_27 = arith.constant 0 : index
    %48 = vector.load %arg4[%c2_25, %c0_26, %c0_27] : memref<6x256x256xbf16, #tpu.memory_space<vmem>>, vector<1x256x256xbf16>
    %49 = vector.shape_cast %48 : vector<1x256x256xbf16> to vector<256x256xbf16>
    %c4_28 = arith.constant 4 : index
    %c0_29 = arith.constant 0 : index
    %50 = vector.load %arg6[%c4_28, %c0_29] : memref<16x256xf32, #tpu.memory_space<vmem>>, vector<1x256xf32>
    %cst_30 = arith.constant dense<0.000000e+00> : vector<208x256xf32>
    %51 = tpu.matmul %39, %49, %cst_30 {dimension_numbers = #tpu.dot_dimension_numbers<[1], [0], [0], [1], [0, 0, 1, 1], [], []>} : vector<208x256xbf16>, vector<256x256xbf16>, vector<208x256xf32> -> vector<208x256xf32>
    %52 = vector.broadcast %50 : vector<1x256xf32> to vector<208x256xf32>
    %53 = arith.addf %51, %52 : vector<208x256xf32>
    %54 = arith.truncf %53 : vector<208x256xf32> to vector<208x256xbf16>
    %55 = math.tanh %54 : vector<208x256xbf16>
    %c5_31 = arith.constant 5 : index
    %c0_32 = arith.constant 0 : index
    %c0_33 = arith.constant 0 : index
    %56 = vector.load %arg4[%c5_31, %c0_32, %c0_33] : memref<6x256x256xbf16, #tpu.memory_space<vmem>>, vector<1x256x256xbf16>
    %57 = vector.shape_cast %56 : vector<1x256x256xbf16> to vector<256x256xbf16>
    %c7 = arith.constant 7 : index
    %c0_34 = arith.constant 0 : index
    %58 = vector.load %arg6[%c7, %c0_34] : memref<16x256xf32, #tpu.memory_space<vmem>>, vector<1x256xf32>
    %cst_35 = arith.constant dense<0.000000e+00> : vector<208x256xf32>
    %59 = tpu.matmul %47, %57, %cst_35 {dimension_numbers = #tpu.dot_dimension_numbers<[1], [0], [0], [1], [0, 0, 1, 1], [], []>} : vector<208x256xbf16>, vector<256x256xbf16>, vector<208x256xf32> -> vector<208x256xf32>
    %60 = vector.broadcast %58 : vector<1x256xf32> to vector<208x256xf32>
    %61 = arith.addf %59, %60 : vector<208x256xf32>
    %62 = arith.truncf %61 : vector<208x256xf32> to vector<208x256xbf16>
    %63 = math.tanh %62 : vector<208x256xbf16>
    %c0_36 = arith.constant 0 : index
    %c0_37 = arith.constant 0 : index
    %64 = vector.load %arg5[%c0_36, %c0_37] : memref<256x128xbf16, #tpu.memory_space<vmem>>, vector<256x128xbf16>
    %c0_38 = arith.constant 0 : index
    %c0_39 = arith.constant 0 : index
    %65 = vector.load %arg7[%c0_38, %c0_39] : memref<8x128xf32, #tpu.memory_space<vmem>>, vector<1x128xf32>
    %cst_40 = arith.constant dense<0.000000e+00> : vector<208x128xf32>
    %66 = tpu.matmul %55, %64, %cst_40 {dimension_numbers = #tpu.dot_dimension_numbers<[1], [0], [0], [1], [0, 0, 1, 1], [], []>} : vector<208x256xbf16>, vector<256x128xbf16>, vector<208x128xf32> -> vector<208x128xf32>
    %67 = vector.broadcast %65 : vector<1x128xf32> to vector<208x128xf32>
    %68 = arith.addf %66, %67 : vector<208x128xf32>
    %69 = math.tanh %68 : vector<208x128xf32>
    %70 = arith.extf %63 : vector<208x256xbf16> to vector<208x256xf32>
    %c8 = arith.constant 8 : index
    %c0_41 = arith.constant 0 : index
    %71 = vector.load %arg6[%c8, %c0_41] : memref<16x256xf32, #tpu.memory_space<vmem>>, vector<1x256xf32>
    %72 = vector.broadcast %71 : vector<1x256xf32> to vector<208x256xf32>
    %73 = arith.mulf %70, %72 : vector<208x256xf32>
    %cst_42 = arith.constant dense<0.000000e+00> : vector<208xf32>
    %74 = vector.multi_reduction <add>, %73, %cst_42 [1] : vector<208x256xf32> to vector<208xf32>
    %75 = vector.shape_cast %74 : vector<208xf32> to vector<208x1xf32>
    %c0_43 = arith.constant 0 : index
    %c0_44 = arith.constant 0 : index
    %76 = vector.load %arg2[%c0_43, %c0_44] : memref<208x128xf32, #tpu.memory_space<vmem>>, vector<208x128xf32>
    %77 = arith.subf %76, %69 : vector<208x128xf32>
    %78 = arith.mulf %77, %77 : vector<208x128xf32>
    %c1_45 = arith.constant 1 : index
    %c0_46 = arith.constant 0 : index
    %79 = vector.load %arg7[%c1_45, %c0_46] : memref<8x128xf32, #tpu.memory_space<vmem>>, vector<1x128xf32>
    %80 = vector.broadcast %79 : vector<1x128xf32> to vector<208x128xf32>
    %81 = arith.mulf %78, %80 : vector<208x128xf32>
    %cst_47 = arith.constant dense<0.000000e+00> : vector<208xf32>
    %82 = vector.multi_reduction <add>, %81, %cst_47 [1] : vector<208x128xf32> to vector<208xf32>
    %83 = vector.shape_cast %82 : vector<208xf32> to vector<208x1xf32>
    %c4_48 = arith.constant 4 : index
    %c0_49 = arith.constant 0 : index
    %84 = vector.load %arg7[%c4_48, %c0_49] : memref<8x128xf32, #tpu.memory_space<vmem>>, vector<1x128xf32>
    %85 = vector.broadcast %75 : vector<208x1xf32> to vector<208x128xf32>
    %86 = vector.broadcast %84 : vector<1x128xf32> to vector<208x128xf32>
    %87 = arith.mulf %85, %86 : vector<208x128xf32>
    %88 = arith.addf %69, %87 : vector<208x128xf32>
    %c3_50 = arith.constant 3 : index
    %c0_51 = arith.constant 0 : index
    %89 = vector.load %arg7[%c3_50, %c0_51] : memref<8x128xf32, #tpu.memory_space<vmem>>, vector<1x128xf32>
    %90 = vector.broadcast %83 : vector<208x1xf32> to vector<208x128xf32>
    %91 = vector.broadcast %89 : vector<1x128xf32> to vector<208x128xf32>
    %92 = arith.mulf %90, %91 : vector<208x128xf32>
    %93 = arith.addf %88, %92 : vector<208x128xf32>
    %c2_52 = arith.constant 2 : index
    %c0_53 = arith.constant 0 : index
    %94 = vector.load %arg7[%c2_52, %c0_53] : memref<8x128xf32, #tpu.memory_space<vmem>>, vector<1x128xf32>
    %95 = vector.broadcast %94 : vector<1x128xf32> to vector<208x128xf32>
    %96 = arith.addf %93, %95 : vector<208x128xf32>
    %c0_54 = arith.constant 0 : index
    %c0_55 = arith.constant 0 : index
    %97 = vector.load %arg8[%c0_54, %c0_55] : memref<208x128xf32, #tpu.memory_space<vmem>>, vector<208x128xf32>
    tpu.vector_store %arg8[%c0_54, %c0_55], %96 {strides = array<i32>} : memref<208x128xf32, #tpu.memory_space<vmem>>, vector<208x128xf32>,
    return
  }
  func.func @transform_0(%arg0: i32) -> (i32, i32) {
    %c0_i32 = arith.constant 0 : i32
    %c0_i32_0 = arith.constant 0 : i32
    return %arg0, %c0_i32 : i32, i32
  }
  func.func @transform_1(%arg0: i32) -> (i32, i32) {
    %c0_i32 = arith.constant 0 : i32
    %c0_i32_0 = arith.constant 0 : i32
    return %arg0, %c0_i32 : i32, i32
  }
  func.func @transform_2(%arg0: i32) -> (i32, i32) {
    %c0_i32 = arith.constant 0 : i32
    %c0_i32_0 = arith.constant 0 : i32
    %c0_i32_1 = arith.constant 0 : i32
    return %c0_i32, %c0_i32_0 : i32, i32
  }
  func.func @transform_3(%arg0: i32) -> (i32, i32, i32) {
    %c0_i32 = arith.constant 0 : i32
    %c0_i32_0 = arith.constant 0 : i32
    %c0_i32_1 = arith.constant 0 : i32
    %c0_i32_2 = arith.constant 0 : i32
    return %c0_i32, %c0_i32_0, %c0_i32_1 : i32, i32, i32
  }
  func.func @transform_4(%arg0: i32) -> (i32, i32) {
    %c0_i32 = arith.constant 0 : i32
    %c0_i32_0 = arith.constant 0 : i32
    %c0_i32_1 = arith.constant 0 : i32
    return %c0_i32, %c0_i32_0 : i32, i32
  }
  func.func @transform_5(%arg0: i32) -> (i32, i32) {
    %c0_i32 = arith.constant 0 : i32
    %c0_i32_0 = arith.constant 0 : i32
    %c0_i32_1 = arith.constant 0 : i32
    return %c0_i32, %c0_i32_0 : i32, i32
  }
  func.func @transform_6(%arg0: i32) -> (i32, i32) {
    %c0_i32 = arith.constant 0 : i32
    %c0_i32_0 = arith.constant 0 : i32
    %c0_i32_1 = arith.constant 0 : i32
    return %c0_i32, %c0_i32_0 : i32, i32
  }
  func.func @transform_7(%arg0: i32) -> (i32, i32) {
    %c0_i32 = arith.constant 0 : i32
    %c0_i32_0 = arith.constant 0 : i32
    return %arg0, %c0_i32 : i32, i32
  }
}

</mosaic_0001>

<bundles_post_ra>
// kernel: tpu_custom_call.1
= control target key start
LH: loop header
LB: loop body
LE: loop exit
PB: predicated region body
PF: predicated region fallthrough
CT: control target
= control target key end

     0   :  { %12 = vsyncpa [#allocation3], 0  ;;  %s6441_s0 = inlined_call_operand.vmem [shape: f32[208,16], index: 0, kind: input, shape index: {}]   ;;  %s6442_s1 = inlined_call_operand.vmem [shape: f32[208,128], index: 1, kind: input, shape index: {}]   ;;  %s6443_s2 = inlined_call_operand.vmem [shape: bf16[16,512], index: 2, kind: input, shape index: {}]   ;;  %s6444_s3 = inlined_call_operand.hbm [shape: bf16[6,256,256], index: 3, kind: input, shape index: {}]   ;;  %s6445_s4 = inlined_call_operand.hbm [shape: bf16[256,128], index: 4, kind: input, shape index: {}]   ;;  %s6446_s5 = inlined_call_operand.hbm [shape: f32[16,256], index: 5, kind: input, shape index: {}]   ;;  %s6447_s6 = inlined_call_operand.vmem [shape: f32[8,128], index: 6, kind: input, shape index: {}]   ;;  %s6448_s7 = inlined_call_operand.hbm [shape: f32[208,128], index: 7, kind: output, shape index: {}]  }
   0x1   :  { %13 = vsyncpa [#allocation6], 0 }
   0x2   :  { %14 = vsyncpa [#allocation4], 0  ;;  %s5325_s24 = smov [#allocation5]  }
   0x3   :  { %s38_s25 = sshll.u32 %s5325_s24, 4  ;;  %s39_s25 = int_to_ptr.vmem [resolvable:$true] %s38_s25 }
   0x4   :  { %s5247_s26 = scalar_lea.vmem %s39_s25, 2048  ;;  %p5252_p1 = scmp.lt.s32.totalorder %s39_s25, %s39_s25 }
   0x5   :  { %p5248_p0 = scmp.ne.s32.totalorder %s39_s25, %s5247_s26  ;;  %p5253_p2 = scmp.lt.s32.totalorder %s5247_s26, %s5247_s26 }
   0x7   :  { %p5254_p3 = por %p5253_p2, %p5252_p1 }
   0x9   :  { %p5255_p4 = pnand %p5254_p3, %p5248_p0 }
   0xb   :  { %5258 = shalt.err (!%p5255_p4)
}
   0xc   :  { %s5326_s27 = smov 64   ;;  %s5327_s28 = smov 4  }
   0xd   :  { %44 = dma.hbm_to_vmem [thread:$0]  %s6445_s4, 2048, %s39_s25, [#allocation6], %s5326_s27, %s5326_s27, %s5327_s28  }
   0xe   :  { %s5328_s8 = smov [#allocation2]  }
   0xf   :  { %s26_s9 = sshll.u32 %s5328_s8, 4  ;;  %s27_s9 = int_to_ptr.vmem [resolvable:$true] %s26_s9 }
  0x10   :  { %s5267_s10 = scalar_lea.vmem %s27_s9, 24576  ;;  %p5272_p6 = scmp.lt.s32.totalorder %s27_s9, %s27_s9 }
  0x11   :  { %p5268_p5 = scmp.ne.s32.totalorder %s27_s9, %s5267_s10  ;;  %p5273_p7 = scmp.lt.s32.totalorder %s5267_s10, %s5267_s10 }
  0x13   :  { %p5274_p8 = por %p5273_p7, %p5272_p6 }
  0x15   :  { %p5275_p9 = pnand %p5274_p8, %p5268_p5 }
  0x17   :  { %5278 = shalt.err (!%p5275_p9)
}
  0x18   :  { %s5329_s11 = smov 128   ;;  %s5330_s12 = smov 8  }
  0x19   :  { %32 = dma.hbm_to_vmem [thread:$0]  %s6444_s3, 24576, %s27_s9, [#allocation3], %s5329_s11, %s5329_s11, %s5330_s12  }
  0x1a   :  { %s5331_s4 = smov [#allocation7]  }
  0x1b   :  { %s50_s15 = sshll.u32 %s5331_s4, 4  ;;  %s51_s15 = int_to_ptr.vmem [resolvable:$true] %s50_s15 }
  0x1c   :  { %s5287_s16 = scalar_lea.vmem %s51_s15, 512  ;;  %p5292_p11 = scmp.lt.s32.totalorder %s51_s15, %s51_s15 }
  0x1d   :  { %p5288_p10 = scmp.ne.s32.totalorder %s51_s15, %s5287_s16  ;;  %p5293_p12 = scmp.lt.s32.totalorder %s5287_s16, %s5287_s16 }
  0x1f   :  { %p5294_p13 = por %p5293_p12, %p5292_p11 }
  0x21   :  { %p5295_p0 = pnand %p5294_p13, %p5288_p10 }
  0x23   :  { %5298 = shalt.err (!%p5295_p0)
}
  0x24   :  { %s5332_s17 = smov 256   ;;  %s5333_s18 = smov 16  }
  0x25   :  { %56 = dma.hbm_to_vmem [thread:$0]  %s6446_s5, 512, %s51_s15, [#allocation6], %s5332_s17, %s5332_s17, %s5333_s18  }
  0x26   :  { %5319 = dma.done.wait [#allocation3], 24576  }
  0x27   :  { %5320 = vsyncadd [#allocation3], 4294942720 }
  0x28   :  { %5321 = dma.done.wait [#allocation6], 2560  }
  0x29   :  { %5322 = vsyncadd [#allocation6], 4294964736  ;;  %v5334_v0 = vmov 0   ;;  %v4461_v1 = vld [vmem:[%s6443_s2 + $0x4] ss:$16 sps:$4 sm:$0xff]   ;;  %v70_v4 = vld [vmem:[%s6441_s0 + $0x8] sm:$0xff] }
  0x2a   :  { %204 = vmatprep.mubr.bf16.mxu0 %v5334_v0  ;;  %367 = vmatprep.mubr.bf16.mxu1 %v5334_v0  ;;  %v4463_v2 = vld [vmem:[%s6443_s2] ss:$16 sps:$4 sm:$0xff]   ;;  %vm132_vm0 = vcmask 130048   ;;  %v72_v7 = vld [vmem:[%s6441_s0 + $0x18] sm:$0xff]  ;;  %v4472_v14 = vld [vmem:[#allocation2 + $0x64] ss:$8 sps:$4 sm:$0xff]  }
  0x2b   :  { %v69_v3 = vld [vmem:[%s6441_s0] sm:$0xff]  ;;  %186 = vmatprep.subr.bf16.mxu0 %v4461_v1  ;;  %v71_v6 = vld [vmem:[%s6441_s0 + $0x10] sm:$0xff]  ;;  %v4464_v8 = vld [vmem:[%s6443_s2 + $0xc] ss:$16 sps:$4 sm:$0xff]  }
  0x2c   :  { %v95_v5 = vpack.c.bf16 %v70_v4, %v69_v3  ;;  %187 = vmatpush1.bf16.msra.mxu0 %v4463_v2  ;;  %v4466_v9 = vld [vmem:[%s6443_s2 + $0x8] ss:$16 sps:$4 sm:$0xff]   ;;  %v96_v10 = vpack.c.bf16 %v72_v7, %v71_v6  ;;  %349 = vmatprep.subr.bf16.mxu1 %v4464_v8  ;;  %v4469_v11 = vld [vmem:[#allocation2 + $0x74] ss:$8 sps:$4 sm:$0xff]   ;;  %v73_v12 = vld [vmem:[%s6441_s0 + $0x20] sm:$0xff] }
  0x2d   :  { %350 = vmatpush1.bf16.msra.mxu1 %v4466_v9  ;;  %v4467_v13 = vld [vmem:[#allocation2 + $0x70] ss:$8 sps:$4 sm:$0xff]   ;;  %v74_v15 = vld [vmem:[%s6441_s0 + $0x28] sm:$0xff]  ;;  %936 = vmatprep.subr.bf16.mxu0 %v4469_v11  ;;  %v4475_v18 = vld [vmem:[#allocation2 + $0x54] ss:$8 sps:$4 sm:$0xff]  }
  0x2e   :  { %v4470_v16 = vld [vmem:[#allocation2 + $0x60] ss:$8 sps:$4 sm:$0xff]   ;;  %v97_v17 = vpack.c.bf16 %v74_v15, %v73_v12  ;;  %v75_v19 = vld [vmem:[%s6441_s0 + $0x30] sm:$0xff]  ;;  %v4478_v21 = vld [vmem:[#allocation2 + $0x44] ss:$8 sps:$4 sm:$0xff]  }
  0x2f   :  { %4101 = vmatmul.mubr.msk.bf16.vlgmr.msra.gmra.mxu0 %vm132_vm0, %v95_v5  ;;  %v4473_v20 = vld [vmem:[#allocation2 + $0x50] ss:$8 sps:$4 sm:$0xff]   ;;  %v4476_v23 = vld [vmem:[#allocation2 + $0x40] ss:$8 sps:$4 sm:$0xff]   ;;  %v4481_v26 = vld [vmem:[#allocation2 + $0x34] ss:$8 sps:$4 sm:$0xff]  }
  0x30   :  { %214 = vmatprep.mubr.bf16.mxu0 %v5334_v0  ;;  %4114 = vmatmul.mubr.msk.bf16.vlgmr.msra.gmra.mxu1 %vm132_vm0, %v95_v5  ;;  %v76_v22 = vld [vmem:[%s6441_s0 + $0x38] sm:$0xff]  ;;  %v4484_v27 = vld [vmem:[#allocation2 + $0x24] ss:$8 sps:$4 sm:$0xff]   ;;  %v4482_v30 = vld [vmem:[#allocation2 + $0x20] ss:$8 sps:$4 sm:$0xff]  }
  0x31   :  { %377 = vmatprep.mubr.bf16.mxu1 %v5334_v0  ;;  %937 = vmatpush1.bf16.msra.mxu0 %v4467_v13  ;;  %v98_v24 = vpack.c.bf16 %v76_v22, %v75_v19  ;;  %v4479_v25 = vld [vmem:[#allocation2 + $0x30] ss:$8 sps:$4 sm:$0xff]   ;;  %v77_v28 = vld [vmem:[%s6441_s0 + $0x40] sm:$0xff]  ;;  %v78_v29 = vld [vmem:[%s6441_s0 + $0x48] sm:$0xff] }
  0x32   :  { %938 = vmatprep.subr.bf16.mxu0 %v4472_v14  ;;  %v99_v31 = vpack.c.bf16 %v78_v29, %v77_v28  ;;  %v4487_v32 = vld [vmem:[#allocation2 + $0x14] ss:$8 sps:$4 sm:$0xff]   ;;  %v4485_v33 = vld [vmem:[#allocation2 + $0x10] ss:$8 sps:$4 sm:$0xff]   ;;  %v4490_v34 = vld [vmem:[#allocation2 + $0x4] ss:$8 sps:$4 sm:$0xff]  }
  0x33   :  { %v79_v35 = vld [vmem:[%s6441_s0 + $0x50] sm:$0xff]  ;;  %v80_v36 = vld [vmem:[%s6441_s0 + $0x58] sm:$0xff]  ;;  %v4488_v37 = vld [vmem:[#allocation2] ss:$8 sps:$4 sm:$0xff]  }
  0x34   :  { %v100_v38 = vpack.c.bf16 %v80_v36, %v79_v35  ;;  %v4493_v39 = vld [vmem:[#allocation2 + $0xf4] ss:$8 sps:$4 sm:$0xff]   ;;  %v4491_v40 = vld [vmem:[#allocation2 + $0xf0] ss:$8 sps:$4 sm:$0xff]   ;;  %v4496_v41 = vld [vmem:[#allocation2 + $0xe4] ss:$8 sps:$4 sm:$0xff]  }
  0x35   :  { %939 = vmatpush1.bf16.msra.mxu0 %v4470_v16  ;;  %v81_v42 = vld [vmem:[%s6441_s0 + $0x60] sm:$0xff]  ;;  %v82_v43 = vld [vmem:[%s6441_s0 + $0x68] sm:$0xff]  ;;  %v4499_v46 = vld [vmem:[#allocation2 + $0xd4] ss:$8 sps:$4 sm:$0xff]  }
  0x36   :  { %940 = vmatprep.subr.bf16.mxu0 %v4475_v18  ;;  %v4494_v44 = vld [vmem:[#allocation2 + $0xe0] ss:$8 sps:$4 sm:$0xff]   ;;  %v101_v45 = vpack.c.bf16 %v82_v43, %v81_v42  ;;  %v4497_v47 = vld [vmem:[#allocation2 + $0xd0] ss:$8 sps:$4 sm:$0xff]   ;;  %v4502_v48 = vld [vmem:[#allocation2 + $0xc4] ss:$8 sps:$4 sm:$0xff]  }
  0x37   :  { %4102 = vmatmul.mubr.msk.bf16.gmra.mxu0 %vm132_vm0, %v96_v10  ;;  %v83_v49 = vld [vmem:[%s6441_s0 + $0x70] sm:$0xff]  ;;  %v84_v50 = vld [vmem:[%s6441_s0 + $0x78] sm:$0xff]  ;;  %v4500_v51 = vld [vmem:[#allocation2 + $0xc0] ss:$8 sps:$4 sm:$0xff]  }
  0x38   :  { %224 = vmatprep.mubr.bf16.mxu0 %v5334_v0  ;;  %4115 = vmatmul.mubr.msk.bf16.gmra.mxu1 %vm132_vm0, %v96_v10  ;;  %v102_v52 = vpack.c.bf16 %v84_v50, %v83_v49  ;;  %v85_v53 = vld [vmem:[%s6441_s0 + $0x80] sm:$0xff]  ;;  %v86_v54 = vld [vmem:[%s6441_s0 + $0x88] sm:$0xff]  ;;  %v87_v56 = vld [vmem:[%s6441_s0 + $0x90] sm:$0xff] }
  0x39   :  { %387 = vmatprep.mubr.bf16.mxu1 %v5334_v0  ;;  %941 = vmatpush1.bf16.msra.mxu0 %v4473_v20  ;;  %v103_v55 = vpack.c.bf16 %v86_v54, %v85_v53  ;;  %v88_v57 = vld [vmem:[%s6441_s0 + $0x98] sm:$0xff]  ;;  %v89_v61 = vld [vmem:[%s6441_s0 + $0xa0] sm:$0xff]  ;;  %v90_v62 = vld [vmem:[%s6441_s0 + $0xa8] sm:$0xff] }
  0x3a   :  { %942 = vmatprep.subr.bf16.mxu0 %v4478_v21  ;;  %v4503_v58 = vld [vmem:[#allocation2 + $0xb0] ss:$8 sps:$4 sm:$0xff]   ;;  %v4505_v59 = vld [vmem:[#allocation2 + $0xb4] ss:$8 sps:$4 sm:$0xff]   ;;  %v104_v60 = vpack.c.bf16 %v88_v57, %v87_v56  ;;  %v4506_v63 = vld [vmem:[#allocation2 + $0xa0] ss:$8 sps:$4 sm:$0xff]   ;;  %v105_v2 = vpack.c.bf16 %v90_v62, %v89_v61 }
  0x3b   :  { %v4508_v1 = vld [vmem:[#allocation2 + $0xa4] ss:$8 sps:$4 sm:$0xff]   ;;  %v91_v3 = vld [vmem:[%s6441_s0 + $0xb0] sm:$0xff]  ;;  %v92_v4 = vld [vmem:[%s6441_s0 + $0xb8] sm:$0xff] }
  0x3c   :  { %v4509_v5 = vld [vmem:[#allocation2 + $0x90] ss:$8 sps:$4 sm:$0xff]   ;;  %v4511_v6 = vld [vmem:[#allocation2 + $0x94] ss:$8 sps:$4 sm:$0xff]   ;;  %v106_v7 = vpack.c.bf16 %v92_v4, %v91_v3  ;;  %v4514_v8 = vld [vmem:[#allocation2 + $0x84] ss:$8 sps:$4 sm:$0xff]  }
  0x3d   :  { %943 = vmatpush1.bf16.msra.mxu0 %v4476_v23  ;;  %v4512_v9 = vld [vmem:[#allocation2 + $0x80] ss:$8 sps:$4 sm:$0xff]   ;;  %v4517_v13 = vld [vmem:[#allocation2 + $0x374] ss:$8 sps:$4 sm:$0xff]   ;;  %v4515_v14 = vld [vmem:[#allocation2 + $0x370] ss:$8 sps:$4 sm:$0xff]  }
  0x3e   :  { %944 = vmatprep.subr.bf16.mxu0 %v4481_v26  ;;  %v93_v10 = vld [vmem:[%s6441_s0 + $0xc0] sm:$0xff]  ;;  %v94_v11 = vld [vmem:[%s6441_s0 + $0xc8] sm:$0xff]  ;;  %1357 = vmatprep.subr.bf16.mxu1 %v4517_v13  ;;  %v4521_v18 = vld [vmem:[#allocation2 + $0x350] ss:$8 sps:$4 sm:$0xff]  }
  0x3f   :  { %4103 = vmatmul.mubr.msk.bf16.gmra.mxu0 %vm132_vm0, %v97_v17  ;;  %v107_v12 = vpack.c.bf16 %v94_v11, %v93_v10  ;;  %1358 = vmatpush1.bf16.msra.mxu1 %v4515_v14  ;;  %v4520_v15 = vld [vmem:[#allocation2 + $0x364] ss:$8 sps:$4 sm:$0xff]   ;;  %v4518_v16 = vld [vmem:[#allocation2 + $0x360] ss:$8 sps:$4 sm:$0xff]   ;;  %v4529_v21 = vld [vmem:[#allocation2 + $0x334] ss:$8 sps:$4 sm:$0xff]  }
  0x40   :  { %234 = vmatprep.mubr.bf16.mxu0 %v5334_v0  ;;  %4116 = vmatmul.mubr.msk.bf16.gmra.mxu1 %vm132_vm0, %v97_v17  ;;  %v4523_v17 = vld [vmem:[#allocation2 + $0x354] ss:$8 sps:$4 sm:$0xff]   ;;  %v4526_v19 = vld [vmem:[#allocation2 + $0x344] ss:$8 sps:$4 sm:$0xff]   ;;  %v4524_v20 = vld [vmem:[#allocation2 + $0x340] ss:$8 sps:$4 sm:$0xff]  }
  0x41   :  { %397 = vmatprep.mubr.bf16.mxu1 %v5334_v0  ;;  %945 = vmatpush1.bf16.msra.mxu0 %v4479_v25  ;;  %v4527_v22 = vld [vmem:[#allocation2 + $0x330] ss:$8 sps:$4 sm:$0xff]   ;;  %v4530_v23 = vld [vmem:[#allocation2 + $0x320] ss:$8 sps:$4 sm:$0xff]   ;;  %v4538_v26 = vld [vmem:[#allocation2 + $0x304] ss:$8 sps:$4 sm:$0xff]  }
  0x42   :  { %946 = vmatprep.subr.bf16.mxu0 %v4484_v27  ;;  %1359 = vmatprep.subr.bf16.mxu1 %v4520_v15  ;;  %v4533_v25 = vld [vmem:[#allocation2 + $0x310] ss:$8 sps:$4 sm:$0xff]   ;;  %v4536_v27 = vld [vmem:[#allocation2 + $0x300] ss:$8 sps:$4 sm:$0xff]   ;;  %v4541_v28 = vld [vmem:[#allocation2 + $0x3f4] ss:$8 sps:$4 sm:$0xff]  }
  0x43   :  { %1360 = vmatpush1.bf16.msra.mxu1 %v4518_v16  ;;  %v4539_v29 = vld [vmem:[#allocation2 + $0x3f0] ss:$8 sps:$4 sm:$0xff]   ;;  %v4548_v35 = vld [vmem:[#allocation2 + $0x3c0] ss:$8 sps:$4 sm:$0xff]   ;;  %v4553_v36 = vld [vmem:[#allocation2 + $0x3b4] ss:$8 sps:$4 sm:$0xff]  }
  0x44   :  { %1361 = vmatprep.subr.bf16.mxu1 %v4523_v17  ;;  %v4562_v42 = vld [vmem:[#allocation2 + $0x384] ss:$8 sps:$4 sm:$0xff]   ;;  %v4560_v43 = vld [vmem:[#allocation2 + $0x380] ss:$8 sps:$4 sm:$0xff]  }
  0x45   :  { %947 = vmatpush1.bf16.msra.mxu0 %v4482_v30  ;;  %v4544_v30 = vld [vmem:[#allocation2 + $0x3e4] ss:$8 sps:$4 sm:$0xff]  }
  0x46   :  { %948 = vmatprep.subr.bf16.mxu0 %v4487_v32  ;;  %v4547_v32 = vld [vmem:[#allocation2 + $0x3d4] ss:$8 sps:$4 sm:$0xff]  }
  0x47   :  { %4104 = vmatmul.mubr.msk.bf16.gmra.mxu0 %vm132_vm0, %v98_v24  ;;  %1362 = vmatpush1.bf16.msra.mxu1 %v4521_v18 }
  0x48   :  { %244 = vmatprep.mubr.bf16.mxu0 %v5334_v0  ;;  %4117 = vmatmul.mubr.msk.bf16.gmra.mxu1 %vm132_vm0, %v98_v24  ;;  %v4535_v24 = vld [vmem:[#allocation2 + $0x314] ss:$8 sps:$4 sm:$0xff]  }
  0x49   :  { %407 = vmatprep.mubr.bf16.mxu1 %v5334_v0  ;;  %949 = vmatpush1.bf16.msra.mxu0 %v4485_v33  ;;  %v4545_v33 = vld [vmem:[#allocation2 + $0x3d0] ss:$8 sps:$4 sm:$0xff]  }
  0x4a   :  { %950 = vmatprep.subr.bf16.mxu0 %v4490_v34  ;;  %1363 = vmatprep.subr.bf16.mxu1 %v4526_v19  ;;  %v4550_v34 = vld [vmem:[#allocation2 + $0x3c4] ss:$8 sps:$4 sm:$0xff]  }
  0x4b   :  { %1364 = vmatpush1.bf16.msra.mxu1 %v4524_v20 }
  0x4c   :  { %1365 = vmatprep.subr.bf16.mxu1 %v4529_v21 }
  0x4d   :  { %951 = vmatpush1.bf16.msra.mxu0 %v4488_v37  ;;  %v4551_v37 = vld [vmem:[#allocation2 + $0x3b0] ss:$8 sps:$4 sm:$0xff]  }
  0x4e   :  { %952 = vmatprep.subr.bf16.mxu0 %v4493_v39  ;;  %v4554_v39 = vld [vmem:[#allocation2 + $0x3a0] ss:$8 sps:$4 sm:$0xff]  }
  0x4f   :  { %4105 = vmatmul.mubr.msk.bf16.gmra.mxu0 %vm132_vm0, %v99_v31  ;;  %1366 = vmatpush1.bf16.msra.mxu1 %v4527_v22 }
  0x50   :  { %254 = vmatprep.mubr.bf16.mxu0 %v5334_v0  ;;  %4118 = vmatmul.mubr.msk.bf16.gmra.mxu1 %vm132_vm0, %v99_v31  ;;  %v4542_v31 = vld [vmem:[#allocation2 + $0x3e0] ss:$8 sps:$4 sm:$0xff]  }
  0x51   :  { %417 = vmatprep.mubr.bf16.mxu1 %v5334_v0  ;;  %953 = vmatpush2.bf16.msra.mxu0 %v4491_v40  ;;  %v4559_v40 = vld [vmem:[#allocation2 + $0x394] ss:$8 sps:$4 sm:$0xff]  }
  0x52   :  { %954 = vmatprep.subr.bf16.mxu0 %v4496_v41  ;;  %v4557_v41 = vld [vmem:[#allocation2 + $0x390] ss:$8 sps:$4 sm:$0xff]  }
  0x55   :  { %955 = vmatpush2.bf16.msra.mxu0 %v4494_v44  ;;  %v500_v44 = vlaneseq }
  0x56   :  { %956 = vmatprep.subr.bf16.mxu0 %v4499_v46  ;;  %v4565_v46 = vld [vmem:[#allocation2 + $0x174] ss:$8 sps:$4 sm:$0xff]  }
  0x57   :  { %4106 = vmatmul.mubr.msk.bf16.gmra.mxu0 %vm132_vm0, %v100_v38 }
  0x58   :  { %264 = vmatprep.mubr.bf16.mxu0 %v5334_v0  ;;  %4119 = vmatmul.mubr.msk.bf16.gmra.mxu1 %vm132_vm0, %v100_v38  ;;  %v4556_v38 = vld [vmem:[#allocation2 + $0x3a4] ss:$8 sps:$4 sm:$0xff]  }
  0x59   :  { %427 = vmatprep.mubr.bf16.mxu1 %v5334_v0  ;;  %957 = vmatpush2.bf16.msra.mxu0 %v4497_v47 }
  0x5a   :  { %958 = vmatprep.subr.bf16.mxu0 %v4502_v48  ;;  %v498_v48 = vld [vmem:[#allocation7] ss:$8 sm:$0x3] }
  0x5d   :  { %959 = vmatpush2.bf16.msra.mxu0 %v4500_v51 }
  0x5e   :  { %960 = vmatprep.subr.bf16.mxu0 %v4505_v59 }
  0x5f   :  { %4107 = vmatmul.mubr.msk.bf16.gmra.mxu0 %vm132_vm0, %v101_v45 }
  0x60   :  { %274 = vmatprep.mubr.bf16.mxu0 %v5334_v0  ;;  %4120 = vmatmul.mubr.msk.bf16.gmra.mxu1 %vm132_vm0, %v101_v45  ;;  %v501_v45 = vshrl.u32 %v500_v44, 7 }
  0x61   :  { %437 = vmatprep.mubr.bf16.mxu1 %v5334_v0  ;;  %961 = vmatpush2.bf16.msra.mxu0 %v4503_v58 }
  0x62   :  { %962 = vmatprep.subr.bf16.mxu0 %v4508_v1  ;;  %v5530_v47 = vsub.s32 0, %v501_v45  ;;  %v5532_v49 = vsub.s32 1, %v501_v45  ;;  %v4568_v45 = vld [vmem:[#allocation2 + $0x164] ss:$8 sps:$4 sm:$0xff]  }
  0x64   :  { %v5535_v51 = vrot.slane %v498_v48, %v5530_v47  ;;  %v5538_v53 = vrot.slane %v498_v48, %v5532_v49 }
  0x65   :  { %963 = vmatpush2.bf16.msra.mxu0 %v4506_v63 }
  0x66   :  { %964 = vmatprep.subr.bf16.mxu0 %v4511_v6 }
  0x67   :  { %4108 = vmatmul.mubr.msk.bf16.gmra.mxu0 %vm132_vm0, %v102_v52 }
  0x68   :  { %284 = vmatprep.mubr.bf16.mxu0 %v5334_v0  ;;  %4121 = vmatmul.mubr.msk.bf16.gmra.mxu1 %vm132_vm0, %v102_v52 }
  0x69   :  { %447 = vmatprep.mubr.bf16.mxu1 %v5334_v0  ;;  %965 = vmatpush2.bf16.msra.mxu0 %v4509_v5 }
  0x6a   :  { %966 = vmatprep.subr.bf16.mxu0 %v4514_v8 }
  0x6d   :  { %967 = vmatpush2.bf16.msra.mxu0 %v4512_v9 }
  0x6e   :  { %1778 = vmatprep.subr.bf16.mxu0 %v4565_v46 }
  0x6f   :  { %4109 = vmatmul.mubr.msk.bf16.gmra.mxu0 %vm132_vm0, %v103_v55 }
  0x70   :  { %294 = vmatprep.mubr.bf16.mxu0 %v5334_v0  ;;  %4122 = vmatmul.mubr.msk.bf16.gmra.mxu1 %vm132_vm0, %v103_v55  ;;  %v615_v55 = vld [vmem:[#allocation7 + $0x1] ss:$8 sm:$0x3] }
  0x71   :  { %457 = vmatprep.mubr.bf16.mxu1 %v5334_v0  ;;  %v5545_v61 = vrot.slane %v615_v55, %v5530_v47  ;;  %v5548_v3 = vrot.slane %v615_v55, %v5532_v49 }
  0x77   :  { %4110 = vmatmul.mubr.msk.bf16.gmra.mxu0 %vm132_vm0, %v104_v60 }
  0x78   :  { %304 = vmatprep.mubr.bf16.mxu0 %v5334_v0  ;;  %4123 = vmatmul.mubr.msk.bf16.gmra.mxu1 %vm132_vm0, %v104_v60 }
  0x79   :  { %467 = vmatprep.mubr.bf16.mxu1 %v5334_v0 }
  0x7f   :  { %4111 = vmatmul.mubr.msk.bf16.gmra.mxu0 %vm132_vm0, %v105_v2 }
  0x80   :  { %314 = vmatprep.mubr.bf16.mxu0 %v5334_v0  ;;  %4124 = vmatmul.mubr.msk.bf16.gmra.mxu1 %vm132_vm0, %v105_v2 }
  0x81   :  { %477 = vmatprep.mubr.bf16.mxu1 %v5334_v0 }
  0x87   :  { %4112 = vmatmul.mubr.msk.bf16.gmra.mxu0 %vm132_vm0, %v106_v7 }
  0x88   :  { %324 = vmatprep.mubr.bf16.mxu0 %v5334_v0  ;;  %4125 = vmatmul.mubr.msk.bf16.gmra.mxu1 %vm132_vm0, %v106_v7 }
  0x89   :  { %487 = vmatprep.mubr.bf16.mxu1 %v5334_v0  ;;  %v4532_v0 = vld [vmem:[#allocation2 + $0x324] ss:$8 sps:$4 sm:$0xff]  }
  0x8a   :  { %1367 = vmatprep.subr.bf16.mxu1 %v4532_v0 }
  0x8b   :  { %1368 = vmatpush1.bf16.msra.mxu1 %v4530_v23 }
  0x8c   :  { %1369 = vmatprep.subr.bf16.mxu1 %v4535_v24 }
  0x8f   :  { %4113 = vmatmul.mubr.msk.bf16.gmra.mxu0 %vm132_vm0, %v107_v12  ;;  %1370 = vmatpush1.bf16.msra.mxu1 %v4533_v25 }
  0x90   :  { %4126 = vmatmul.mubr.msk.bf16.gmra.mxu1 %vm132_vm0, %v107_v12  ;;  %1371 = vmatprep.subr.bf16.mxu1 %v4538_v26 }
  0x93   :  { %1372 = vmatpush1.bf16.msra.mxu1 %v4536_v27 }
  0x94   :  { %1373 = vmatprep.subr.bf16.mxu1 %v4541_v28 }
  0x97   :  { %1374 = vmatpush2.bf16.msra.mxu1 %v4539_v29 }
  0x98   :  { %1375 = vmatprep.subr.bf16.mxu1 %v4544_v30 }
  0x9b   :  { %1376 = vmatpush2.bf16.msra.mxu1 %v4542_v31 }
  0x9c   :  { %1377 = vmatprep.subr.bf16.mxu1 %v4547_v32 }
  0x9f   :  { %1378 = vmatpush2.bf16.msra.mxu1 %v4545_v33 }
  0xa0   :  { %1379 = vmatprep.subr.bf16.mxu1 %v4550_v34 }
  0xa3   :  { %1380 = vmatpush2.bf16.msra.mxu1 %v4548_v35 }
  0xa4   :  { %1381 = vmatprep.subr.bf16.mxu1 %v4553_v36 }
  0xa7   :  { %1382 = vmatpush2.bf16.msra.mxu1 %v4551_v37 }
  0xa8   :  { %1383 = vmatprep.subr.bf16.mxu1 %v4556_v38 }
  0xab   :  { %1384 = vmatpush2.bf16.msra.mxu1 %v4554_v39 }
  0xac   :  { %1385 = vmatprep.subr.bf16.mxu1 %v4559_v40 }
  0xaf   :  { %1386 = vmatpush2.bf16.msra.mxu1 %v4557_v41  ;;  %v4563_v41 = vld [vmem:[#allocation2 + $0x170] ss:$8 sps:$4 sm:$0xff]  }
  0xb0   :  { %1387 = vmatprep.subr.bf16.mxu1 %v4562_v42 }
  0xb3   :  { %1388 = vmatpush2.bf16.msra.mxu1 %v4560_v43 }
  0xef   :  { %v206_v50 = vpop.f32.mrf.mxu0 }
  0xf0   :  { %v510_v57 = vadd.f32 %v5535_v51, %v206_v50  ;;  %v369_v1 = vpop.f32.mrf.mxu1 }
  0xf1   :  { %v208_v52 = vpop.f32.mrf.mxu0  ;;  %v627_v6 = vadd.f32 %v5545_v61, %v369_v1 }
  0xf2   :  { %v511_v59 = vadd.f32 %v5538_v53, %v208_v52  ;;  %v371_v5 = vpop.f32.mrf.mxu1 }
  0xf3   :  { %v210_v54 = vpop.f32.mrf.mxu0  ;;  %v628_v11 = vadd.f32 %v5548_v3, %v371_v5 }
  0xf4   :  { %v512_v56 = vadd.f32 %v5535_v51, %v210_v54  ;;  %v373_v8 = vpop.f32.mrf.mxu1 }
  0xf5   :  { %v212_v58 = vpop.f32.mrf.mxu0  ;;  %v629_v12 = vadd.f32 %v5545_v61, %v373_v8 }
  0xf6   :  { %v513_v60 = vadd.f32 %v5538_v53, %v212_v58  ;;  %v562_v62 = vpack.c.bf16 %v512_v56, %v510_v57  ;;  %v375_v15 = vpop.f32.mrf.mxu1  ;;  %v4566_v56 = vld [vmem:[#allocation2 + $0x160] ss:$8 sps:$4 sm:$0xff]  }
  0xf7   :  { %v216_v63 = vpop.f32.mrf.mxu0  ;;  %v679_v18 = vpack.c.bf16 %v629_v12, %v627_v6  ;;  %v630_v19 = vadd.f32 %v5548_v3, %v375_v15  ;;  %v4569_v12 = vld [vmem:[#allocation2 + $0x150] ss:$8 sps:$4 sm:$0xff]  }
  0xf8   :  { %v563_v2 = vpack.c.bf16 %v513_v60, %v511_v59  ;;  %v514_v9 = vadd.f32 %v5535_v51, %v216_v63  ;;  %v379_v21 = vpop.f32.mrf.mxu1 }
  0xf9   :  { %v218_v4 = vpop.f32.mrf.mxu0  ;;  %v680_v0 = vpack.c.bf16 %v630_v19, %v628_v11  ;;  %v631_v25 = vadd.f32 %v5545_v61, %v379_v21 }
  0xfa   :  { %4771 = vtanh.bf16 %v563_v2  ;;  %v515_v13 = vadd.f32 %v5538_v53, %v218_v4  ;;  %v381_v24 = vpop.f32.mrf.mxu1 }
  0xfb   :  { %4773 = vtanh.bf16 %v562_v62  ;;  %v220_v7 = vpop.f32.mrf.mxu0  ;;  %v632_v30 = vadd.f32 %v5548_v3, %v381_v24  ;;  %v4571_v62 = vld [vmem:[#allocation2 + $0x154] ss:$8 sps:$4 sm:$0xff]  }
  0xfc   :  { %v516_v10 = vadd.f32 %v5535_v51, %v220_v7  ;;  %v383_v27 = vpop.f32.mrf.mxu1 }
  0xfd   :  { %v222_v14 = vpop.f32.mrf.mxu0  ;;  %v633_v31 = vadd.f32 %v5545_v61, %v383_v27  ;;  %v4577_v27 = vld [vmem:[#allocation2 + $0x134] ss:$8 sps:$4 sm:$0xff]  }
  0xfe   :  { %v564_v16 = vpack.c.bf16 %v516_v10, %v514_v9  ;;  %v517_v17 = vadd.f32 %v5538_v53, %v222_v14  ;;  %v385_v34 = vpop.f32.mrf.mxu1 }
  0xff   :  { %v226_v20 = vpop.f32.mrf.mxu0  ;;  %v681_v37 = vpack.c.bf16 %v633_v31, %v631_v25  ;;  %v634_v38 = vadd.f32 %v5548_v3, %v385_v34 }
 0x100   :  { %4775 = vtanh.bf16 %v564_v16  ;;  %v565_v22 = vpack.c.bf16 %v517_v17, %v515_v13  ;;  %v518_v28 = vadd.f32 %v5535_v51, %v226_v20  ;;  %v389_v40 = vpop.f32.mrf.mxu1  ;;  %v4574_v16 = vld [vmem:[#allocation2 + $0x144] ss:$8 sps:$4 sm:$0xff]  }
 0x101   :  { %v228_v23 = vpop.f32.mrf.mxu0  ;;  %4777 = vtanh.bf16 %v679_v18  ;;  %v682_v44 = vpack.c.bf16 %v634_v38, %v632_v30  ;;  %v635_v52 = vadd.f32 %v5545_v61, %v389_v40 }
 0x102   :  { %4779 = vtanh.bf16 %v565_v22  ;;  %v519_v32 = vadd.f32 %v5538_v53, %v228_v23  ;;  %v391_v50 = vpop.f32.mrf.mxu1 }
 0x103   :  { %v230_v26 = vpop.f32.mrf.mxu0  ;;  %4781 = vtanh.bf16 %v680_v0  ;;  %v636_v59 = vadd.f32 %v5548_v3, %v391_v50  ;;  %v4572_v0 = vld [vmem:[#allocation2 + $0x140] ss:$8 sps:$4 sm:$0xff]  }
 0x104   :  { %v520_v29 = vadd.f32 %v5535_v51, %v230_v26  ;;  %v393_v55 = vpop.f32.mrf.mxu1 }
 0x105   :  { %v232_v33 = vpop.f32.mrf.mxu0  ;;  %v637_v60 = vadd.f32 %v5545_v61, %v393_v55 }
 0x106   :  { %v566_v35 = vpack.c.bf16 %v520_v29, %v518_v28  ;;  %v521_v36 = vadd.f32 %v5538_v53, %v232_v33  ;;  %v395_v2 = vpop.f32.mrf.mxu1 }
 0x107   :  { %v236_v39 = vpop.f32.mrf.mxu0  ;;  %v683_v7 = vpack.c.bf16 %v637_v60, %v635_v52  ;;  %v638_v8 = vadd.f32 %v5548_v3, %v395_v2 }
 0x108   :  { %v4772_v42 = vpop.eup %4771  ;;  %4783 = vtanh.bf16 %v566_v35  ;;  %v567_v43 = vpack.c.bf16 %v521_v36, %v519_v32  ;;  %v522_v57 = vadd.f32 %v5535_v51, %v236_v39  ;;  %v399_v11 = vpop.f32.mrf.mxu1  ;;  %v4575_v39 = vld [vmem:[#allocation2 + $0x130] ss:$8 sps:$4 sm:$0xff]  }
 0x109   :  { %v4774_v46 = vpop.eup %4773  ;;  %v238_v48 = vpop.f32.mrf.mxu0  ;;  %968 = vmatprep.mubr.bf16.mxu0 %v4772_v42  ;;  %4785 = vtanh.bf16 %v681_v37  ;;  %v684_v15 = vpack.c.bf16 %v638_v8, %v636_v59  ;;  %v639_v20 = vadd.f32 %v5545_v61, %v399_v11  ;;  %v4583_v59 = vld [vmem:[#allocation2 + $0x114] ss:$8 sps:$4 sm:$0xff]  }
 0x10a   :  { %4787 = vtanh.bf16 %v567_v43  ;;  %969 = vmatmul.mubr.bf16.vlgmr.msra.gmra.mxu0 %v4774_v46  ;;  %v523_v63 = vadd.f32 %v5538_v53, %v238_v48  ;;  %v401_v19 = vpop.f32.mrf.mxu1  ;;  %v4580_v43 = vld [vmem:[#allocation2 + $0x124] ss:$8 sps:$4 sm:$0xff]  }
 0x10b   :  { %v240_v54 = vpop.f32.mrf.mxu0  ;;  %4789 = vtanh.bf16 %v682_v44  ;;  %1779 = vmatpush1.bf16.msra.mxu0 %v4563_v41  ;;  %v640_v25 = vadd.f32 %v5548_v3, %v401_v19 }
 0x10c   :  { %v524_v58 = vadd.f32 %v5535_v51, %v240_v54  ;;  %1780 = vmatprep.subr.bf16.mxu0 %v4568_v45  ;;  %v403_v22 = vpop.f32.mrf.mxu1  ;;  %v4578_v54 = vld [vmem:[#allocation2 + $0x120] ss:$8 sps:$4 sm:$0xff]  }
 0x10d   :  { %v242_v1 = vpop.f32.mrf.mxu0  ;;  %v641_v26 = vadd.f32 %v5545_v61, %v403_v22 }
 0x10e   :  { %v4776_v4 = vpop.eup %4775  ;;  %v568_v5 = vpack.c.bf16 %v524_v58, %v522_v57  ;;  %v525_v6 = vadd.f32 %v5538_v53, %v242_v1  ;;  %v405_v30 = vpop.f32.mrf.mxu1 }
 0x10f   :  { %v4778_v9 = vpop.eup %4777  ;;  %v246_v10 = vpop.f32.mrf.mxu0  ;;  %1781 = vmatpush1.bf16.msra.mxu0 %v4566_v56  ;;  %v685_v34 = vpack.c.bf16 %v641_v26, %v639_v20  ;;  %v642_v35 = vadd.f32 %v5548_v3, %v405_v30 }
 0x110   :  { %v4780_v13 = vpop.eup %4779  ;;  %4791 = vtanh.bf16 %v568_v5  ;;  %v569_v14 = vpack.c.bf16 %v525_v6, %v523_v63  ;;  %1782 = vmatprep.subr.bf16.mxu0 %v4571_v62  ;;  %v526_v23 = vadd.f32 %v5535_v51, %v246_v10  ;;  %v409_v38 = vpop.f32.mrf.mxu1  ;;  %v4581_v10 = vld [vmem:[#allocation2 + $0x110] ss:$8 sps:$4 sm:$0xff]  }
 0x111   :  { %v4782_v17 = vpop.eup %4781  ;;  %v248_v18 = vpop.f32.mrf.mxu0  ;;  %978 = vmatprep.mubr.bf16.mxu0 %v4780_v13  ;;  %4793 = vtanh.bf16 %v683_v7  ;;  %v686_v42 = vpack.c.bf16 %v642_v35, %v640_v25  ;;  %v643_v48 = vadd.f32 %v5545_v61, %v409_v38  ;;  %v4589_v25 = vld [vmem:[#allocation2 + $0x1f4] ss:$8 sps:$4 sm:$0xff]  }
 0x112   :  { %4795 = vtanh.bf16 %v569_v14  ;;  %979 = vmatmul.mubr.bf16.gmra.mxu0 %v4776_v4  ;;  %1389 = vmatprep.mubr.bf16.mxu1 %v4782_v17  ;;  %v527_v28 = vadd.f32 %v5538_v53, %v248_v18  ;;  %v411_v46 = vpop.f32.mrf.mxu1  ;;  %v4586_v14 = vld [vmem:[#allocation2 + $0x104] ss:$8 sps:$4 sm:$0xff]  }
 0x113   :  { %v250_v21 = vpop.f32.mrf.mxu0  ;;  %4797 = vtanh.bf16 %v684_v15  ;;  %1390 = vmatmul.mubr.bf16.vlgmr.msra.gmra.mxu1 %v4778_v9  ;;  %1783 = vmatpush1.bf16.msra.mxu0 %v4569_v12  ;;  %v644_v57 = vadd.f32 %v5548_v3, %v411_v46 }
 0x114   :  { %v528_v24 = vadd.f32 %v5535_v51, %v250_v21  ;;  %1784 = vmatprep.subr.bf16.mxu0 %v4574_v16  ;;  %v413_v52 = vpop.f32.mrf.mxu1  ;;  %v4584_v21 = vld [vmem:[#allocation2 + $0x100] ss:$8 sps:$4 sm:$0xff]  }
 0x115   :  { %v252_v29 = vpop.f32.mrf.mxu0  ;;  %v645_v58 = vadd.f32 %v5545_v61, %v413_v52 }
 0x116   :  { %v4784_v31 = vpop.eup %4783  ;;  %v570_v32 = vpack.c.bf16 %v528_v24, %v526_v23  ;;  %v529_v33 = vadd.f32 %v5538_v53, %v252_v29  ;;  %v415_v63 = vpop.f32.mrf.mxu1 }
 0x117   :  { %v4786_v36 = vpop.eup %4785  ;;  %v256_v37 = vpop.f32.mrf.mxu0  ;;  %1785 = vmatpush1.bf16.msra.mxu0 %v4572_v0  ;;  %v687_v5 = vpack.c.bf16 %v645_v58, %v643_v48  ;;  %v646_v6 = vadd.f32 %v5548_v3, %v415_v63 }
 0x118   :  { %v4788_v40 = vpop.eup %4787  ;;  %4799 = vtanh.bf16 %v570_v32  ;;  %v571_v41 = vpack.c.bf16 %v529_v33, %v527_v28  ;;  %1786 = vmatprep.subr.bf16.mxu0 %v4577_v27  ;;  %v530_v55 = vadd.f32 %v5535_v51, %v256_v37  ;;  %v419_v9 = vpop.f32.mrf.mxu1  ;;  %v4587_v37 = vld [vmem:[#allocation2 + $0x1f0] ss:$8 sps:$4 sm:$0xff]  }
 0x119   :  { %v4790_v44 = vpop.eup %4789  ;;  %v258_v45 = vpop.f32.mrf.mxu0  ;;  %988 = vmatprep.mubr.bf16.mxu0 %v4788_v40  ;;  %4801 = vtanh.bf16 %v685_v34  ;;  %v688_v13 = vpack.c.bf16 %v646_v6, %v644_v57  ;;  %v647_v18 = vadd.f32 %v5545_v61, %v419_v9  ;;  %v4595_v57 = vld [vmem:[#allocation2 + $0x1d4] ss:$8 sps:$4 sm:$0xff]  }
 0x11a   :  { %4803 = vtanh.bf16 %v571_v41  ;;  %989 = vmatmul.mubr.bf16.gmra.mxu0 %v4784_v31  ;;  %1399 = vmatprep.mubr.bf16.mxu1 %v4790_v44  ;;  %v531_v60 = vadd.f32 %v5538_v53, %v258_v45  ;;  %v421_v17 = vpop.f32.mrf.mxu1  ;;  %v4592_v41 = vld [vmem:[#allocation2 + $0x1e4] ss:$8 sps:$4 sm:$0xff]  }
 0x11b   :  { %v260_v50 = vpop.f32.mrf.mxu0  ;;  %4805 = vtanh.bf16 %v686_v42  ;;  %1400 = vmatmul.mubr.bf16.gmra.mxu1 %v4786_v36  ;;  %1787 = vmatpush1.bf16.msra.mxu0 %v4575_v39  ;;  %v648_v23 = vadd.f32 %v5548_v3, %v421_v17 }
 0x11c   :  { %v532_v56 = vadd.f32 %v5535_v51, %v260_v50  ;;  %1788 = vmatprep.subr.bf16.mxu0 %v4580_v43  ;;  %v423_v20 = vpop.f32.mrf.mxu1  ;;  %v4590_v50 = vld [vmem:[#allocation2 + $0x1e0] ss:$8 sps:$4 sm:$0xff]  }
 0x11d   :  { %v262_v62 = vpop.f32.mrf.mxu0  ;;  %v649_v24 = vadd.f32 %v5545_v61, %v423_v20 }
 0x11e   :  { %v4792_v1 = vpop.eup %4791  ;;  %v572_v2 = vpack.c.bf16 %v532_v56, %v530_v55  ;;  %v533_v4 = vadd.f32 %v5538_v53, %v262_v62  ;;  %v425_v28 = vpop.f32.mrf.mxu1 }
 0x11f   :  { %v4794_v7 = vpop.eup %4793  ;;  %v266_v8 = vpop.f32.mrf.mxu0  ;;  %1789 = vmatpush1.bf16.msra.mxu0 %v4578_v54  ;;  %v689_v32 = vpack.c.bf16 %v649_v24, %v647_v18  ;;  %v650_v33 = vadd.f32 %v5548_v3, %v425_v28 }
 0x120   :  { %v4796_v11 = vpop.eup %4795  ;;  %4807 = vtanh.bf16 %v572_v2  ;;  %v573_v12 = vpack.c.bf16 %v533_v4, %v531_v60  ;;  %1790 = vmatprep.subr.bf16.mxu0 %v4583_v59  ;;  %v534_v22 = vadd.f32 %v5535_v51, %v266_v8  ;;  %v429_v36 = vpop.f32.mrf.mxu1  ;;  %v4593_v8 = vld [vmem:[#allocation2 + $0x1d0] ss:$8 sps:$4 sm:$0xff]  }
 0x121   :  { %v4798_v15 = vpop.eup %4797  ;;  %v268_v16 = vpop.f32.mrf.mxu0  ;;  %998 = vmatprep.mubr.bf16.mxu0 %v4796_v11  ;;  %4809 = vtanh.bf16 %v687_v5  ;;  %v690_v40 = vpack.c.bf16 %v650_v33, %v648_v23  ;;  %v651_v45 = vadd.f32 %v5545_v61, %v429_v36 }
 0x122   :  { %4811 = vtanh.bf16 %v573_v12  ;;  %999 = vmatmul.mubr.bf16.gmra.mxu0 %v4792_v1  ;;  %1409 = vmatprep.mubr.bf16.mxu1 %v4798_v15  ;;  %v535_v26 = vadd.f32 %v5538_v53, %v268_v16  ;;  %v431_v44 = vpop.f32.mrf.mxu1  ;;  %v4598_v12 = vld [vmem:[#allocation2 + $0x1c4] ss:$8 sps:$4 sm:$0xff]  }
 0x123   :  { %v270_v19 = vpop.f32.mrf.mxu0  ;;  %4813 = vtanh.bf16 %v688_v13  ;;  %1410 = vmatmul.mubr.bf16.gmra.mxu1 %v4794_v7  ;;  %1791 = vmatpush1.bf16.msra.mxu0 %v4581_v10  ;;  %v652_v55 = vadd.f32 %v5548_v3, %v431_v44 }
 0x124   :  { %v536_v0 = vadd.f32 %v5535_v51, %v270_v19  ;;  %1792 = vmatprep.subr.bf16.mxu0 %v4586_v14  ;;  %v433_v48 = vpop.f32.mrf.mxu1  ;;  %v4596_v19 = vld [vmem:[#allocation2 + $0x1c0] ss:$8 sps:$4 sm:$0xff]  }
 0x125   :  { %v272_v27 = vpop.f32.mrf.mxu0  ;;  %v653_v56 = vadd.f32 %v5545_v61, %v433_v48 }
 0x126   :  { %v4800_v29 = vpop.eup %4799  ;;  %v574_v30 = vpack.c.bf16 %v536_v0, %v534_v22  ;;  %v537_v31 = vadd.f32 %v5538_v53, %v272_v27  ;;  %v435_v60 = vpop.f32.mrf.mxu1 }
 0x127   :  { %v4802_v34 = vpop.eup %4801  ;;  %v276_v35 = vpop.f32.mrf.mxu0  ;;  %1793 = vmatpush1.bf16.msra.mxu0 %v4584_v21  ;;  %v691_v2 = vpack.c.bf16 %v653_v56, %v651_v45  ;;  %v654_v4 = vadd.f32 %v5548_v3, %v435_v60 }
 0x128   :  { %v4804_v38 = vpop.eup %4803  ;;  %4815 = vtanh.bf16 %v574_v30  ;;  %v575_v39 = vpack.c.bf16 %v537_v31, %v535_v26  ;;  %1794 = vmatprep.subr.bf16.mxu0 %v4589_v25  ;;  %v538_v52 = vadd.f32 %v5535_v51, %v276_v35  ;;  %v439_v7 = vpop.f32.mrf.mxu1 }
 0x129   :  { %v4806_v42 = vpop.eup %4805  ;;  %v278_v43 = vpop.f32.mrf.mxu0  ;;  %1008 = vmatprep.mubr.bf16.mxu0 %v4804_v38  ;;  %4817 = vtanh.bf16 %v689_v32  ;;  %v692_v11 = vpack.c.bf16 %v654_v4, %v652_v55  ;;  %v655_v16 = vadd.f32 %v5545_v61, %v439_v7 }
 0x12a   :  { %4819 = vtanh.bf16 %v575_v39  ;;  %1009 = vmatmul.mubr.bf16.gmra.mxu0 %v4800_v29  ;;  %1419 = vmatprep.mubr.bf16.mxu1 %v4806_v42  ;;  %v539_v58 = vadd.f32 %v5538_v53, %v278_v43  ;;  %v441_v15 = vpop.f32.mrf.mxu1 }
 0x12b   :  { %v280_v46 = vpop.f32.mrf.mxu0  ;;  %4821 = vtanh.bf16 %v690_v40  ;;  %1420 = vmatmul.mubr.bf16.gmra.mxu1 %v4802_v34  ;;  %1795 = vmatpush2.bf16.msra.mxu0 %v4587_v37  ;;  %v656_v22 = vadd.f32 %v5548_v3, %v441_v15 }
 0x12c   :  { %v540_v54 = vadd.f32 %v5535_v51, %v280_v46  ;;  %1796 = vmatprep.subr.bf16.mxu0 %v4592_v41  ;;  %v443_v18 = vpop.f32.mrf.mxu1 }
 0x12d   :  { %v282_v59 = vpop.f32.mrf.mxu0  ;;  %v657_v0 = vadd.f32 %v5545_v61, %v443_v18 }
 0x12e   :  { %v4808_v62 = vpop.eup %4807  ;;  %v576_v63 = vpack.c.bf16 %v540_v54, %v538_v52  ;;  %v541_v1 = vadd.f32 %v5538_v53, %v282_v59  ;;  %v445_v25 = vpop.f32.mrf.mxu1 }
 0x12f   :  { %v4810_v5 = vpop.eup %4809  ;;  %v286_v6 = vpop.f32.mrf.mxu0  ;;  %1797 = vmatpush2.bf16.msra.mxu0 %v4590_v50  ;;  %v693_v29 = vpack.c.bf16 %v657_v0, %v655_v16  ;;  %v658_v30 = vadd.f32 %v5548_v3, %v445_v25 }
 0x130   :  { %v4812_v9 = vpop.eup %4811  ;;  %4823 = vtanh.bf16 %v576_v63  ;;  %v577_v10 = vpack.c.bf16 %v541_v1, %v539_v58  ;;  %1798 = vmatprep.subr.bf16.mxu0 %v4595_v57  ;;  %v542_v20 = vadd.f32 %v5535_v51, %v286_v6  ;;  %v449_v33 = vpop.f32.mrf.mxu1 }
 0x131   :  { %v4814_v13 = vpop.eup %4813  ;;  %v288_v14 = vpop.f32.mrf.mxu0  ;;  %1018 = vmatprep.mubr.bf16.mxu0 %v4812_v9  ;;  %4825 = vtanh.bf16 %v691_v2  ;;  %v694_v36 = vpack.c.bf16 %v658_v30, %v656_v22  ;;  %v659_v40 = vadd.f32 %v5545_v61, %v449_v33  ;;  %v4599_v33 = vld [vmem:[#allocation2 + $0x1b0] ss:$8 sps:$4 sm:$0xff]  }
 0x132   :  { %4827 = vtanh.bf16 %v577_v10  ;;  %1019 = vmatmul.mubr.bf16.gmra.mxu0 %v4808_v62  ;;  %1429 = vmatprep.mubr.bf16.mxu1 %v4814_v13  ;;  %v543_v23 = vadd.f32 %v5538_v53, %v288_v14  ;;  %v451_v39 = vpop.f32.mrf.mxu1 }
 0x133   :  { %v290_v17 = vpop.f32.mrf.mxu0  ;;  %4829 = vtanh.bf16 %v692_v11  ;;  %1430 = vmatmul.mubr.bf16.gmra.mxu1 %v4810_v5  ;;  %1799 = vmatpush2.bf16.msra.mxu0 %v4593_v8  ;;  %v660_v45 = vadd.f32 %v5548_v3, %v451_v39 }
 0x134   :  { %v544_v21 = vadd.f32 %v5535_v51, %v290_v17  ;;  %1800 = vmatprep.subr.bf16.mxu0 %v4598_v12  ;;  %v453_v42 = vpop.f32.mrf.mxu1 }
 0x135   :  { %v292_v24 = vpop.f32.mrf.mxu0  ;;  %v661_v46 = vadd.f32 %v5545_v61, %v453_v42 }
 0x136   :  { %v4816_v26 = vpop.eup %4815  ;;  %v578_v27 = vpack.c.bf16 %v544_v21, %v542_v20  ;;  %v545_v28 = vadd.f32 %v5538_v53, %v292_v24  ;;  %v455_v52 = vpop.f32.mrf.mxu1 }
 0x137   :  { %v4818_v31 = vpop.eup %4817  ;;  %v296_v32 = vpop.f32.mrf.mxu0  ;;  %1801 = vmatpush2.bf16.msra.mxu0 %v4596_v19  ;;  %v695_v57 = vpack.c.bf16 %v661_v46, %v659_v40  ;;  %v662_v58 = vadd.f32 %v5548_v3, %v455_v52 }
 0x138   :  { %v4820_v34 = vpop.eup %4819  ;;  %4831 = vtanh.bf16 %v578_v27  ;;  %v579_v35 = vpack.c.bf16 %v545_v28, %v543_v23  ;;  %v546_v43 = vadd.f32 %v5535_v51, %v296_v32  ;;  %v459_v62 = vpop.f32.mrf.mxu1 }
 0x139   :  { %v4822_v37 = vpop.eup %4821  ;;  %v298_v38 = vpop.f32.mrf.mxu0  ;;  %1028 = vmatprep.mubr.bf16.mxu0 %v4820_v34  ;;  %4833 = vtanh.bf16 %v693_v29  ;;  %v696_v2 = vpack.c.bf16 %v662_v58, %v660_v45  ;;  %v663_v7 = vadd.f32 %v5545_v61, %v459_v62  ;;  %v4601_v34 = vld [vmem:[#allocation2 + $0x1b4] ss:$8 sps:$4 sm:$0xff]  }
 0x13a   :  { %4835 = vtanh.bf16 %v579_v35  ;;  %1029 = vmatmul.mubr.bf16.gmra.mxu0 %v4816_v26  ;;  %1439 = vmatprep.mubr.bf16.mxu1 %v4822_v37  ;;  %v547_v48 = vadd.f32 %v5538_v53, %v298_v38  ;;  %v461_v6 = vpop.f32.mrf.mxu1 }
 0x13b   :  { %v300_v41 = vpop.f32.mrf.mxu0  ;;  %4837 = vtanh.bf16 %v694_v36  ;;  %1440 = vmatmul.mubr.bf16.gmra.mxu1 %v4818_v31  ;;  %v664_v12 = vadd.f32 %v5548_v3, %v461_v6  ;;  %1802 = vmatprep.subr.bf16.mxu0 %v4601_v34  ;;  %v4608_v34 = vld [vmem:[#allocation2 + $0x180] ss:$8 sps:$4 sm:$0xff]  }
 0x13c   :  { %v548_v44 = vadd.f32 %v5535_v51, %v300_v41  ;;  %v463_v9 = vpop.f32.mrf.mxu1  ;;  %1803 = vmatpush2.bf16.msra.mxu0 %v4599_v33 }
 0x13d   :  { %v302_v50 = vpop.f32.mrf.mxu0  ;;  %v665_v13 = vadd.f32 %v5545_v61, %v463_v9  ;;  %v4602_v9 = vld [vmem:[#allocation2 + $0x1a0] ss:$8 sps:$4 sm:$0xff]  }
 0x13e   :  { %v4824_v54 = vpop.eup %4823  ;;  %v580_v55 = vpack.c.bf16 %v548_v44, %v546_v43  ;;  %v549_v56 = vadd.f32 %v5538_v53, %v302_v50  ;;  %v465_v16 = vpop.f32.mrf.mxu1 }
 0x13f   :  { %v4826_v59 = vpop.eup %4825  ;;  %v306_v60 = vpop.f32.mrf.mxu0  ;;  %v697_v20 = vpack.c.bf16 %v665_v13, %v663_v7  ;;  %v666_v21 = vadd.f32 %v5548_v3, %v465_v16 }
 0x140   :  { %v4828_v63 = vpop.eup %4827  ;;  %4839 = vtanh.bf16 %v580_v55  ;;  %v581_v1 = vpack.c.bf16 %v549_v56, %v547_v48  ;;  %v550_v10 = vadd.f32 %v5535_v51, %v306_v60  ;;  %v469_v23 = vpop.f32.mrf.mxu1 }
 0x141   :  { %v4830_v4 = vpop.eup %4829  ;;  %v308_v5 = vpop.f32.mrf.mxu0  ;;  %1038 = vmatprep.mubr.bf16.mxu0 %v4828_v63  ;;  %4841 = vtanh.bf16 %v695_v57  ;;  %v698_v26 = vpack.c.bf16 %v666_v21, %v664_v12  ;;  %v667_v30 = vadd.f32 %v5545_v61, %v469_v23  ;;  %v4607_v23 = vld [vmem:[#allocation2 + $0x194] ss:$8 sps:$4 sm:$0xff]  }
 0x142   :  { %4843 = vtanh.bf16 %v581_v1  ;;  %1039 = vmatmul.mubr.bf16.gmra.mxu0 %v4824_v54  ;;  %1449 = vmatprep.mubr.bf16.mxu1 %v4830_v4  ;;  %v551_v14 = vadd.f32 %v5538_v53, %v308_v5  ;;  %v471_v29 = vpop.f32.mrf.mxu1 }
 0x143   :  { %v310_v8 = vpop.f32.mrf.mxu0  ;;  %4845 = vtanh.bf16 %v696_v2  ;;  %1450 = vmatmul.mubr.bf16.gmra.mxu1 %v4826_v59  ;;  %v668_v37 = vadd.f32 %v5548_v3, %v471_v29 }
 0x144   :  { %v552_v11 = vadd.f32 %v5535_v51, %v310_v8  ;;  %v473_v32 = vpop.f32.mrf.mxu1 }
 0x145   :  { %v312_v15 = vpop.f32.mrf.mxu0  ;;  %v669_v38 = vadd.f32 %v5545_v61, %v473_v32 }
 0x146   :  { %v4832_v17 = vpop.eup %4831  ;;  %v582_v18 = vpack.c.bf16 %v552_v11, %v550_v10  ;;  %v553_v19 = vadd.f32 %v5538_v53, %v312_v15  ;;  %v475_v41 = vpop.f32.mrf.mxu1  ;;  %v4604_v10 = vld [vmem:[#allocation2 + $0x1a4] ss:$8 sps:$4 sm:$0xff]  }
 0x147   :  { %v4834_v22 = vpop.eup %4833  ;;  %v316_v0 = vpop.f32.mrf.mxu0  ;;  %v699_v45 = vpack.c.bf16 %v669_v38, %v667_v30  ;;  %v670_v46 = vadd.f32 %v5548_v3, %v475_v41  ;;  %1804 = vmatprep.subr.bf16.mxu0 %v4604_v10  ;;  %v4614_v41 = vld [vmem:[#allocation2 + $0x460] ss:$8 sps:$4 sm:$0xff]  }
 0x148   :  { %v4836_v24 = vpop.eup %4835  ;;  %4847 = vtanh.bf16 %v582_v18  ;;  %v583_v25 = vpack.c.bf16 %v553_v19, %v551_v14  ;;  %v554_v35 = vadd.f32 %v5535_v51, %v316_v0  ;;  %v479_v52 = vpop.f32.mrf.mxu1  ;;  %1805 = vmatpush2.bf16.msra.mxu0 %v4602_v9  ;;  %v4605_v0 = vld [vmem:[#allocation2 + $0x190] ss:$8 sps:$4 sm:$0xff]   ;;  %v4652_v9 = vld [vmem:[#allocation2 + $0x4a4] ss:$8 sps:$4 sm:$0xff]   ;;  %v4650_v10 = vld [vmem:[#allocation2 + $0x4a0] ss:$8 sps:$4 sm:$0xff]  }
 0x149   :  { %v4838_v27 = vpop.eup %4837  ;;  %v318_v28 = vpop.f32.mrf.mxu0  ;;  %1048 = vmatprep.mubr.bf16.mxu0 %v4836_v24  ;;  %4849 = vtanh.bf16 %v697_v20  ;;  %v700_v56 = vpack.c.bf16 %v670_v46, %v668_v37  ;;  %v671_v60 = vadd.f32 %v5545_v61, %v479_v52  ;;  %1806 = vmatprep.subr.bf16.mxu0 %v4607_v23  ;;  %v4613_v37 = vld [vmem:[#allocation2 + $0x474] ss:$8 sps:$4 sm:$0xff]   ;;  %v4622_v46 = vld [vmem:[#allocation2 + $0x444] ss:$8 sps:$4 sm:$0xff]   ;;  %v4623_v52 = vld [vmem:[#allocation2 + $0x430] ss:$8 sps:$4 sm:$0xff]  }
 0x14a   :  { %4851 = vtanh.bf16 %v583_v25  ;;  %1049 = vmatmul.mubr.bf16.gmra.mxu0 %v4832_v17  ;;  %1459 = vmatprep.mubr.bf16.mxu1 %v4838_v27  ;;  %v555_v39 = vadd.f32 %v5538_v53, %v318_v28  ;;  %v481_v59 = vpop.f32.mrf.mxu1 }
 0x14b   :  { %v320_v31 = vpop.f32.mrf.mxu0  ;;  %4853 = vtanh.bf16 %v698_v26  ;;  %1460 = vmatmul.mubr.bf16.gmra.mxu1 %v4834_v22  ;;  %v672_v4 = vadd.f32 %v5548_v3, %v481_v59  ;;  %2199 = vmatprep.subr.bf16.mxu1 %v4613_v37  ;;  %v4632_v59 = vld [vmem:[#allocation2 + $0x400] ss:$8 sps:$4 sm:$0xff]  }
 0x14c   :  { %v556_v36 = vadd.f32 %v5535_v51, %v320_v31  ;;  %v483_v63 = vpop.f32.mrf.mxu1  ;;  %1807 = vmatpush2.bf16.msra.mxu0 %v4605_v0  ;;  %v4610_v31 = vld [vmem:[#allocation2 + $0x184] ss:$8 sps:$4 sm:$0xff]  }
 0x14d   :  { %v322_v40 = vpop.f32.mrf.mxu0  ;;  %v673_v5 = vadd.f32 %v5545_v61, %v483_v63  ;;  %1808 = vmatprep.subr.bf16.mxu0 %v4610_v31  ;;  %v4640_v63 = vld [vmem:[#allocation2 + $0x4e4] ss:$8 sps:$4 sm:$0xff]  }
 0x14e   :  { %v4840_v42 = vpop.eup %4839  ;;  %v584_v43 = vpack.c.bf16 %v556_v36, %v554_v35  ;;  %v557_v44 = vadd.f32 %v5538_v53, %v322_v40  ;;  %v485_v8 = vpop.f32.mrf.mxu1  ;;  %v4616_v40 = vld [vmem:[#allocation2 + $0x464] ss:$8 sps:$4 sm:$0xff]  }
 0x14f   :  { %v4842_v48 = vpop.eup %4841  ;;  %v326_v50 = vpop.f32.mrf.mxu0  ;;  %v701_v14 = vpack.c.bf16 %v673_v5, %v671_v60  ;;  %v674_v15 = vadd.f32 %v5548_v3, %v485_v8  ;;  %v4637_v60 = vld [vmem:[#allocation2 + $0x4f4] ss:$8 sps:$4 sm:$0xff]   ;;  %v4646_v5 = vld [vmem:[#allocation2 + $0x4c4] ss:$8 sps:$4 sm:$0xff]   ;;  %v4647_v8 = vld [vmem:[#allocation2 + $0x4b0] ss:$8 sps:$4 sm:$0xff]  }
 0x150   :  { %v4844_v54 = vpop.eup %4843  ;;  %4855 = vtanh.bf16 %v584_v43  ;;  %v585_v55 = vpack.c.bf16 %v557_v44, %v555_v39  ;;  %v558_v1 = vadd.f32 %v5535_v51, %v326_v50  ;;  %v489_v17 = vpop.f32.mrf.mxu1  ;;  %1809 = vmatpush2.bf16.msra.mxu0 %v4608_v34  ;;  %v4619_v43 = vld [vmem:[#allocation2 + $0x454] ss:$8 sps:$4 sm:$0xff]  }
 0x151   :  { %v4846_v57 = vpop.eup %4845  ;;  %v328_v58 = vpop.f32.mrf.mxu0  ;;  %1058 = vmatprep.mubr.bf16.mxu0 %v4844_v54  ;;  %4857 = vtanh.bf16 %v699_v45  ;;  %v702_v19 = vpack.c.bf16 %v674_v15, %v672_v4  ;;  %v675_v22 = vadd.f32 %v5545_v61, %v489_v17  ;;  %v4617_v45 = vld [vmem:[#allocation2 + $0x450] ss:$8 sps:$4 sm:$0xff]   ;;  %v4625_v50 = vld [vmem:[#allocation2 + $0x434] ss:$8 sps:$4 sm:$0xff]   ;;  %v4628_v54 = vld [vmem:[#allocation2 + $0x424] ss:$8 sps:$4 sm:$0xff]  }
 0x152   :  { %4859 = vtanh.bf16 %v585_v55  ;;  %1059 = vmatmul.mubr.bf16.gmra.mxu0 %v4840_v42  ;;  %1469 = vmatprep.mubr.bf16.mxu1 %v4846_v57  ;;  %v559_v6 = vadd.f32 %v5538_v53, %v328_v58  ;;  %v491_v21 = vpop.f32.mrf.mxu1  ;;  %v4626_v55 = vld [vmem:[#allocation2 + $0x420] ss:$8 sps:$4 sm:$0xff]   ;;  %v4629_v57 = vld [vmem:[#allocation2 + $0x410] ss:$8 sps:$4 sm:$0xff]   ;;  %v4634_v58 = vld [vmem:[#allocation2 + $0x404] ss:$8 sps:$4 sm:$0xff]  }
 0x153   :  { %v330_v62 = vpop.f32.mrf.mxu0  ;;  %4861 = vtanh.bf16 %v700_v56  ;;  %1470 = vmatmul.mubr.bf16.gmra.mxu1 %v4842_v48  ;;  %v676_v24 = vadd.f32 %v5548_v3, %v491_v21  ;;  %v4620_v48 = vld [vmem:[#allocation2 + $0x440] ss:$8 sps:$4 sm:$0xff]   ;;  %v4631_v56 = vld [vmem:[#allocation2 + $0x414] ss:$8 sps:$4 sm:$0xff]   ;;  %v4641_v4 = vld [vmem:[#allocation2 + $0x4d0] ss:$8 sps:$4 sm:$0xff]  }
 0x154   :  { %v560_v2 = vadd.f32 %v5535_v51, %v330_v62  ;;  %v4635_v62 = vld [vmem:[#allocation2 + $0x4f0] ss:$8 sps:$4 sm:$0xff]   ;;  %v4661_v15 = vld [vmem:[#allocation2 + $0x274] ss:$8 sps:$4 sm:$0xff]  }
 0x155   :  { %v332_v7 = vpop.f32.mrf.mxu0  ;;  %2620 = vmatprep.subr.bf16.mxu0 %v4661_v15 }
 0x156   :  { %v4848_v11 = vpop.eup %4847  ;;  %v586_v12 = vpack.c.bf16 %v560_v2, %v558_v1  ;;  %v561_v13 = vadd.f32 %v5538_v53, %v332_v7  ;;  %v493_v53 = vpop.f32.mrf.mxu1  ;;  %v4638_v1 = vld [vmem:[#allocation2 + $0x4e0] ss:$8 sps:$4 sm:$0xff]   ;;  %v4643_v2 = vld [vmem:[#allocation2 + $0x4d4] ss:$8 sps:$4 sm:$0xff]  }
 0x157   :  { %v4850_v16 = vpop.eup %4849  ;;  %v677_v25 = vadd.f32 %v5545_v61, %v493_v53  ;;  %v4649_v7 = vld [vmem:[#allocation2 + $0x4b4] ss:$8 sps:$4 sm:$0xff]  }
 0x158   :  { %v4852_v51 = vpop.eup %4851  ;;  %4863 = vtanh.bf16 %v586_v12  ;;  %v587_v18 = vpack.c.bf16 %v561_v13, %v559_v6  ;;  %v495_v26 = vpop.f32.mrf.mxu1  ;;  %v4644_v6 = vld [vmem:[#allocation2 + $0x4c0] ss:$8 sps:$4 sm:$0xff]   ;;  %v4653_v12 = vld [vmem:[#allocation2 + $0x490] ss:$8 sps:$4 sm:$0xff]   ;;  %v4658_v13 = vld [vmem:[#allocation2 + $0x484] ss:$8 sps:$4 sm:$0xff]  }
 0x159   :  { %v4854_v20 = vpop.eup %4853  ;;  %1068 = vmatprep.mubr.bf16.mxu0 %v4852_v51  ;;  %4865 = vtanh.bf16 %v701_v14  ;;  %v703_v28 = vpack.c.bf16 %v677_v25, %v675_v22  ;;  %v678_v29 = vadd.f32 %v5548_v3, %v495_v26  ;;  %v4611_v3 = vld [vmem:[#allocation2 + $0x470] ss:$8 sps:$4 sm:$0xff]   ;;  %v4656_v14 = vld [vmem:[#allocation2 + $0x480] ss:$8 sps:$4 sm:$0xff]  }
 0x15a   :  { %4867 = vtanh.bf16 %v587_v18  ;;  %1069 = vmatmul.mubr.bf16.gmra.mxu0 %v4848_v11  ;;  %1479 = vmatprep.mubr.bf16.mxu1 %v4854_v20  ;;  %v4655_v11 = vld [vmem:[#allocation2 + $0x494] ss:$8 sps:$4 sm:$0xff]   ;;  %v1185_v22 = vld [vmem:[#allocation7 + $0x5] ss:$8 sm:$0x3] }
 0x15b   :  { %4869 = vtanh.bf16 %v702_v19  ;;  %1480 = vmatmul.mubr.bf16.gmra.mxu1 %v4850_v16  ;;  %v704_v33 = vpack.c.bf16 %v678_v29, %v676_v24  ;;  %v764_v16 = vld [vmem:[#allocation7 + $0x2] ss:$8 sm:$0x3]  ;;  %v5664_v31 = vrot.slane %v1185_v22, %v5532_v49 }
 0x15c   :  { %4871 = vtanh.bf16 %v703_v28  ;;  %2200 = vmatpush1.bf16.msra.mxu1 %v4611_v3  ;;  %v5651_v51 = vrot.slane %v764_v16, %v5530_v47  ;;  %v5654_v19 = vrot.slane %v764_v16, %v5532_v49 }
 0x15d   :  { %4873 = vtanh.bf16 %v704_v33  ;;  %2201 = vmatprep.subr.bf16.mxu1 %v4616_v40 }
 0x15e   :  { %v4856_v27 = vpop.eup %4855 }
 0x15f   :  { %v4858_v30 = vpop.eup %4857 }
 0x160   :  { %v4860_v32 = vpop.eup %4859  ;;  %2202 = vmatpush1.bf16.msra.mxu1 %v4614_v41 }
 0x161   :  { %v4862_v35 = vpop.eup %4861  ;;  %1078 = vmatprep.mubr.bf16.mxu0 %v4860_v32  ;;  %2203 = vmatprep.subr.bf16.mxu1 %v4619_v43 }
 0x162   :  { %1079 = vmatmul.mubr.bf16.gmra.mxu0 %v4856_v27  ;;  %1489 = vmatprep.mubr.bf16.mxu1 %v4862_v35  ;;  %v5661_v27 = vrot.slane %v1185_v22, %v5530_v47 }
 0x163   :  { %1490 = vmatmul.mubr.bf16.gmra.mxu1 %v4858_v30 }
 0x164   :  { %2204 = vmatpush1.bf16.msra.mxu1 %v4617_v45 }
 0x165   :  { %2205 = vmatprep.subr.bf16.mxu1 %v4622_v46 }
 0x166   :  { %v4864_v61 = vpop.eup %4863 }
 0x167   :  { %v4866_v36 = vpop.eup %4865 }
 0x168   :  { %v4868_v38 = vpop.eup %4867  ;;  %2206 = vmatpush1.bf16.msra.mxu1 %v4620_v48 }
 0x169   :  { %v4870_v39 = vpop.eup %4869  ;;  %1088 = vmatprep.mubr.bf16.mxu0 %v4868_v38  ;;  %2207 = vmatprep.subr.bf16.mxu1 %v4625_v50 }
 0x16a   :  { %1089 = vmatmul.mubr.bf16.gmra.mxu0 %v4864_v61  ;;  %1499 = vmatprep.mubr.bf16.mxu1 %v4870_v39  ;;  %v4872_v42 = vpop.eup %4871 }
 0x16b   :  { %1500 = vmatmul.mubr.bf16.gmra.mxu1 %v4866_v36  ;;  %v4874_v44 = vpop.eup %4873 }
 0x16c   :  { %1509 = vmatprep.mubr.bf16.mxu1 %v4874_v44  ;;  %2208 = vmatpush1.bf16.msra.mxu1 %v4623_v52 }
 0x16d   :  { %2209 = vmatprep.subr.bf16.mxu1 %v4628_v54 }
 0x170   :  { %2210 = vmatpush1.bf16.msra.mxu1 %v4626_v55 }
 0x171   :  { %2211 = vmatprep.subr.bf16.mxu1 %v4631_v56 }
 0x173   :  { %1510 = vmatmul.mubr.bf16.gmra.mxu1 %v4872_v42 }
 0x174   :  { %2212 = vmatpush1.bf16.msra.mxu1 %v4629_v57 }
 0x175   :  { %2213 = vmatprep.subr.bf16.mxu1 %v4634_v58 }
 0x178   :  { %2214 = vmatpush1.bf16.msra.mxu1 %v4632_v59 }
 0x179   :  { %2215 = vmatprep.subr.bf16.mxu1 %v4637_v60 }
 0x17c   :  { %2216 = vmatpush2.bf16.msra.mxu1 %v4635_v62 }
 0x17d   :  { %2217 = vmatprep.subr.bf16.mxu1 %v4640_v63 }
 0x180   :  { %2218 = vmatpush2.bf16.msra.mxu1 %v4638_v1 }
 0x181   :  { %2219 = vmatprep.subr.bf16.mxu1 %v4643_v2 }
 0x184   :  { %2220 = vmatpush2.bf16.msra.mxu1 %v4641_v4 }
 0x185   :  { %2221 = vmatprep.subr.bf16.mxu1 %v4646_v5 }
 0x188   :  { %2222 = vmatpush2.bf16.msra.mxu1 %v4644_v6 }
 0x189   :  { %2223 = vmatprep.subr.bf16.mxu1 %v4649_v7 }
 0x18c   :  { %2224 = vmatpush2.bf16.msra.mxu1 %v4647_v8 }
 0x18d   :  { %2225 = vmatprep.subr.bf16.mxu1 %v4652_v9  ;;  %v4659_v9 = vld [vmem:[#allocation2 + $0x270] ss:$8 sps:$4 sm:$0xff]  }
 0x190   :  { %2226 = vmatpush2.bf16.msra.mxu1 %v4650_v10 }
 0x191   :  { %2227 = vmatprep.subr.bf16.mxu1 %v4655_v11 }
 0x194   :  { %2228 = vmatpush2.bf16.msra.mxu1 %v4653_v12 }
 0x195   :  { %2229 = vmatprep.subr.bf16.mxu1 %v4658_v13  ;;  %v4664_v13 = vld [vmem:[#allocation2 + $0x264] ss:$8 sps:$4 sm:$0xff]  }
 0x198   :  { %2230 = vmatpush2.bf16.msra.mxu1 %v4656_v14 }
 0x1ca   :  { %v970_v17 = vpop.f32.mrf.mxu0 }
 0x1cb   :  { %v971_v53 = vadd.f32 %v970_v17, %v5651_v51 }
 0x1cc   :  { %v972_v18 = vpop.f32.mrf.mxu0 }
 0x1cd   :  { %v973_v23 = vadd.f32 %v972_v18, %v5654_v19 }
 0x1ce   :  { %v974_v20 = vpop.f32.mrf.mxu0 }
 0x1cf   :  { %v975_v21 = vadd.f32 %v974_v20, %v5651_v51 }
 0x1d0   :  { %v976_v0 = vpop.f32.mrf.mxu0 }
 0x1d1   :  { %v977_v24 = vadd.f32 %v976_v0, %v5654_v19  ;;  %v1099_v25 = vpack.c.bf16 %v975_v21, %v971_v53  ;;  %v4662_v21 = vld [vmem:[#allocation2 + $0x260] ss:$8 sps:$4 sm:$0xff]  }
 0x1d2   :  { %v980_v26 = vpop.f32.mrf.mxu0 }
 0x1d3   :  { %v1100_v28 = vpack.c.bf16 %v977_v24, %v973_v23  ;;  %v1391_v29 = vpop.f32.mrf.mxu1  ;;  %v981_v35 = vadd.f32 %v980_v26, %v5651_v51  ;;  %v4667_v23 = vld [vmem:[#allocation2 + $0x254] ss:$8 sps:$4 sm:$0xff]  }
 0x1d4   :  { %v982_v30 = vpop.f32.mrf.mxu0  ;;  %v1392_v34 = vadd.f32 %v1391_v29, %v5661_v27 }
 0x1d5   :  { %4875 = vtanh.bf16 %v1100_v28  ;;  %v1393_v32 = vpop.f32.mrf.mxu1  ;;  %v983_v39 = vadd.f32 %v982_v30, %v5654_v19 }
 0x1d6   :  { %4877 = vtanh.bf16 %v1099_v25  ;;  %v984_v33 = vpop.f32.mrf.mxu0  ;;  %v1394_v38 = vadd.f32 %v1393_v32, %v5664_v31 }
 0x1d7   :  { %v985_v61 = vadd.f32 %v984_v33, %v5651_v51  ;;  %v1395_v36 = vpop.f32.mrf.mxu1 }
 0x1d8   :  { %v986_v37 = vpop.f32.mrf.mxu0  ;;  %v1396_v3 = vadd.f32 %v1395_v36, %v5661_v27 }
 0x1d9   :  { %v1101_v40 = vpack.c.bf16 %v985_v61, %v981_v35  ;;  %v987_v41 = vadd.f32 %v986_v37, %v5654_v19  ;;  %v1397_v42 = vpop.f32.mrf.mxu1  ;;  %v4665_v37 = vld [vmem:[#allocation2 + $0x250] ss:$8 sps:$4 sm:$0xff]  }
 0x1da   :  { %v990_v43 = vpop.f32.mrf.mxu0  ;;  %v1520_v44 = vpack.c.bf16 %v1396_v3, %v1392_v34  ;;  %v1398_v45 = vadd.f32 %v1397_v42, %v5664_v31 }
 0x1db   :  { %4879 = vtanh.bf16 %v1101_v40  ;;  %v1102_v46 = vpack.c.bf16 %v987_v41, %v983_v39  ;;  %v1401_v48 = vpop.f32.mrf.mxu1  ;;  %v991_v57 = vadd.f32 %v990_v43, %v5651_v51  ;;  %v4670_v40 = vld [vmem:[#allocation2 + $0x244] ss:$8 sps:$4 sm:$0xff]  }
 0x1dc   :  { %v992_v50 = vpop.f32.mrf.mxu0  ;;  %4881 = vtanh.bf16 %v1520_v44  ;;  %v1521_v52 = vpack.c.bf16 %v1398_v45, %v1394_v38  ;;  %v1402_v56 = vadd.f32 %v1401_v48, %v5661_v27  ;;  %v4668_v48 = vld [vmem:[#allocation2 + $0x240] ss:$8 sps:$4 sm:$0xff]  }
 0x1dd   :  { %4883 = vtanh.bf16 %v1102_v46  ;;  %v1403_v54 = vpop.f32.mrf.mxu1  ;;  %v993_v1 = vadd.f32 %v992_v50, %v5654_v19 }
 0x1de   :  { %v994_v55 = vpop.f32.mrf.mxu0  ;;  %4885 = vtanh.bf16 %v1521_v52  ;;  %v1404_v62 = vadd.f32 %v1403_v54, %v5664_v31 }
 0x1df   :  { %v995_v58 = vadd.f32 %v994_v55, %v5651_v51  ;;  %v1405_v59 = vpop.f32.mrf.mxu1  ;;  %v4673_v55 = vld [vmem:[#allocation2 + $0x234] ss:$8 sps:$4 sm:$0xff]  }
 0x1e0   :  { %v996_v60 = vpop.f32.mrf.mxu0  ;;  %v1406_v63 = vadd.f32 %v1405_v59, %v5661_v27 }
 0x1e1   :  { %v1103_v2 = vpack.c.bf16 %v995_v58, %v991_v57  ;;  %v997_v4 = vadd.f32 %v996_v60, %v5654_v19  ;;  %v1407_v5 = vpop.f32.mrf.mxu1 }
 0x1e2   :  { %v1000_v6 = vpop.f32.mrf.mxu0  ;;  %v1522_v7 = vpack.c.bf16 %v1406_v63, %v1402_v56  ;;  %v1408_v8 = vadd.f32 %v1407_v5, %v5664_v31 }
 0x1e3   :  { %v4876_v10 = vpop.eup %4875  ;;  %4887 = vtanh.bf16 %v1103_v2  ;;  %v1104_v11 = vpack.c.bf16 %v997_v4, %v993_v1  ;;  %v1411_v12 = vpop.f32.mrf.mxu1  ;;  %v1001_v22 = vadd.f32 %v1000_v6, %v5651_v51 }
 0x1e4   :  { %v4878_v14 = vpop.eup %4877  ;;  %v1002_v15 = vpop.f32.mrf.mxu0  ;;  %1810 = vmatprep.mubr.bf16.mxu0 %v4876_v10  ;;  %4889 = vtanh.bf16 %v1522_v7  ;;  %v1523_v16 = vpack.c.bf16 %v1408_v8, %v1404_v62  ;;  %v1412_v20 = vadd.f32 %v1411_v12, %v5661_v27  ;;  %v4671_v7 = vld [vmem:[#allocation2 + $0x230] ss:$8 sps:$4 sm:$0xff]  }
 0x1e5   :  { %4891 = vtanh.bf16 %v1104_v11  ;;  %1811 = vmatmul.mubr.bf16.vlgmr.msra.gmra.mxu0 %v4878_v14  ;;  %v1413_v17 = vpop.f32.mrf.mxu1  ;;  %v1003_v29 = vadd.f32 %v1002_v15, %v5654_v19  ;;  %v4676_v11 = vld [vmem:[#allocation2 + $0x224] ss:$8 sps:$4 sm:$0xff]  }
 0x1e6   :  { %v1004_v18 = vpop.f32.mrf.mxu0  ;;  %4893 = vtanh.bf16 %v1523_v16  ;;  %2621 = vmatpush1.bf16.msra.mxu0 %v4659_v9  ;;  %v1414_v25 = vadd.f32 %v1413_v17, %v5664_v31 }
 0x1e7   :  { %v1005_v53 = vadd.f32 %v1004_v18, %v5651_v51  ;;  %v1415_v0 = vpop.f32.mrf.mxu1  ;;  %2622 = vmatprep.subr.bf16.mxu0 %v4664_v13  ;;  %v4674_v18 = vld [vmem:[#allocation2 + $0x220] ss:$8 sps:$4 sm:$0xff]  }
 0x1e8   :  { %v1006_v24 = vpop.f32.mrf.mxu0  ;;  %v1416_v26 = vadd.f32 %v1415_v0, %v5661_v27 }
 0x1e9   :  { %v4880_v28 = vpop.eup %4879  ;;  %v1105_v30 = vpack.c.bf16 %v1005_v53, %v1001_v22  ;;  %v1007_v32 = vadd.f32 %v1006_v24, %v5654_v19  ;;  %v1417_v33 = vpop.f32.mrf.mxu1  ;;  %v4679_v53 = vld [vmem:[#allocation2 + $0x214] ss:$8 sps:$4 sm:$0xff]  }
 0x1ea   :  { %v4882_v34 = vpop.eup %4881  ;;  %v1010_v35 = vpop.f32.mrf.mxu0  ;;  %v1524_v61 = vpack.c.bf16 %v1416_v26, %v1412_v20  ;;  %v1418_v36 = vadd.f32 %v1417_v33, %v5664_v31  ;;  %2623 = vmatpush1.bf16.msra.mxu0 %v4662_v21 }
 0x1eb   :  { %v4884_v38 = vpop.eup %4883  ;;  %4895 = vtanh.bf16 %v1105_v30  ;;  %v1106_v3 = vpack.c.bf16 %v1007_v32, %v1003_v29  ;;  %v1421_v39 = vpop.f32.mrf.mxu1  ;;  %2624 = vmatprep.subr.bf16.mxu0 %v4667_v23  ;;  %v1011_v50 = vadd.f32 %v1010_v35, %v5651_v51 }
 0x1ec   :  { %v4886_v41 = vpop.eup %4885  ;;  %v1012_v42 = vpop.f32.mrf.mxu0  ;;  %1820 = vmatprep.mubr.bf16.mxu0 %v4884_v38  ;;  %4897 = vtanh.bf16 %v1524_v61  ;;  %v1525_v43 = vpack.c.bf16 %v1418_v36, %v1414_v25  ;;  %v1422_v46 = vadd.f32 %v1421_v39, %v5661_v27  ;;  %v4677_v61 = vld [vmem:[#allocation2 + $0x210] ss:$8 sps:$4 sm:$0xff]  }
 0x1ed   :  { %4899 = vtanh.bf16 %v1106_v3  ;;  %1821 = vmatmul.mubr.bf16.gmra.mxu0 %v4880_v28  ;;  %v1423_v44 = vpop.f32.mrf.mxu1  ;;  %2231 = vmatprep.mubr.bf16.mxu1 %v4886_v41  ;;  %v1013_v60 = vadd.f32 %v1012_v42, %v5654_v19  ;;  %v4682_v3 = vld [vmem:[#allocation2 + $0x204] ss:$8 sps:$4 sm:$0xff]  }
 0x1ee   :  { %v1014_v45 = vpop.f32.mrf.mxu0  ;;  %4901 = vtanh.bf16 %v1525_v43  ;;  %2232 = vmatmul.mubr.bf16.vlgmr.msra.gmra.mxu1 %v4882_v34  ;;  %2625 = vmatpush1.bf16.msra.mxu0 %v4665_v37  ;;  %v1424_v57 = vadd.f32 %v1423_v44, %v5664_v31 }
 0x1ef   :  { %v1015_v52 = vadd.f32 %v1014_v45, %v5651_v51  ;;  %v1425_v54 = vpop.f32.mrf.mxu1  ;;  %2626 = vmatprep.subr.bf16.mxu0 %v4670_v40  ;;  %v4680_v45 = vld [vmem:[#allocation2 + $0x200] ss:$8 sps:$4 sm:$0xff]  }
 0x1f0   :  { %v1016_v56 = vpop.f32.mrf.mxu0  ;;  %v1426_v58 = vadd.f32 %v1425_v54, %v5661_v27 }
 0x1f1   :  { %v4888_v59 = vpop.eup %4887  ;;  %v1107_v62 = vpack.c.bf16 %v1015_v52, %v1011_v50  ;;  %v1017_v63 = vadd.f32 %v1016_v56, %v5654_v19  ;;  %v1427_v1 = vpop.f32.mrf.mxu1  ;;  %v4685_v52 = vld [vmem:[#allocation2 + $0x2f4] ss:$8 sps:$4 sm:$0xff]  }
 0x1f2   :  { %v4890_v2 = vpop.eup %4889  ;;  %v1020_v4 = vpop.f32.mrf.mxu0  ;;  %v1526_v5 = vpack.c.bf16 %v1426_v58, %v1422_v46  ;;  %v1428_v6 = vadd.f32 %v1427_v1, %v5664_v31  ;;  %2627 = vmatpush1.bf16.msra.mxu0 %v4668_v48 }
 0x1f3   :  { %v4892_v8 = vpop.eup %4891  ;;  %4903 = vtanh.bf16 %v1107_v62  ;;  %v1108_v9 = vpack.c.bf16 %v1017_v63, %v1013_v60  ;;  %v1431_v10 = vpop.f32.mrf.mxu1  ;;  %2628 = vmatprep.subr.bf16.mxu0 %v4673_v55  ;;  %v1021_v20 = vadd.f32 %v1020_v4, %v5651_v51 }
 0x1f4   :  { %v4894_v12 = vpop.eup %4893  ;;  %v1022_v13 = vpop.f32.mrf.mxu0  ;;  %1830 = vmatprep.mubr.bf16.mxu0 %v4892_v8  ;;  %4905 = vtanh.bf16 %v1526_v5  ;;  %v1527_v14 = vpack.c.bf16 %v1428_v6, %v1424_v57  ;;  %v1432_v17 = vadd.f32 %v1431_v10, %v5661_v27  ;;  %v4683_v5 = vld [vmem:[#allocation2 + $0x2f0] ss:$8 sps:$4 sm:$0xff]  }
 0x1f5   :  { %4907 = vtanh.bf16 %v1108_v9  ;;  %1831 = vmatmul.mubr.bf16.gmra.mxu0 %v4888_v59  ;;  %v1433_v15 = vpop.f32.mrf.mxu1  ;;  %2241 = vmatprep.mubr.bf16.mxu1 %v4894_v12  ;;  %v1023_v26 = vadd.f32 %v1022_v13, %v5654_v19  ;;  %v4688_v9 = vld [vmem:[#allocation2 + $0x2e4] ss:$8 sps:$4 sm:$0xff]  }
 0x1f6   :  { %v1024_v16 = vpop.f32.mrf.mxu0  ;;  %4909 = vtanh.bf16 %v1527_v14  ;;  %2242 = vmatmul.mubr.bf16.gmra.mxu1 %v4890_v2  ;;  %2629 = vmatpush1.bf16.msra.mxu0 %v4671_v7  ;;  %v1434_v23 = vadd.f32 %v1433_v15, %v5664_v31 }
 0x1f7   :  { %v1025_v21 = vadd.f32 %v1024_v16, %v5651_v51  ;;  %v1435_v22 = vpop.f32.mrf.mxu1  ;;  %2630 = vmatprep.subr.bf16.mxu0 %v4676_v11  ;;  %v4686_v16 = vld [vmem:[#allocation2 + $0x2e0] ss:$8 sps:$4 sm:$0xff]  }
 0x1f8   :  { %v1026_v0 = vpop.f32.mrf.mxu0  ;;  %v1436_v24 = vadd.f32 %v1435_v22, %v5661_v27 }
 0x1f9   :  { %v4896_v25 = vpop.eup %4895  ;;  %v1109_v28 = vpack.c.bf16 %v1025_v21, %v1021_v20  ;;  %v1027_v29 = vadd.f32 %v1026_v0, %v5654_v19  ;;  %v1437_v30 = vpop.f32.mrf.mxu1  ;;  %v4691_v21 = vld [vmem:[#allocation2 + $0x2d4] ss:$8 sps:$4 sm:$0xff]  }
 0x1fa   :  { %v4898_v32 = vpop.eup %4897  ;;  %v1030_v33 = vpop.f32.mrf.mxu0  ;;  %v1528_v34 = vpack.c.bf16 %v1436_v24, %v1432_v17  ;;  %v1438_v35 = vadd.f32 %v1437_v30, %v5664_v31  ;;  %2631 = vmatpush1.bf16.msra.mxu0 %v4674_v18 }
 0x1fb   :  { %v4900_v36 = vpop.eup %4899  ;;  %4911 = vtanh.bf16 %v1109_v28  ;;  %v1110_v37 = vpack.c.bf16 %v1027_v29, %v1023_v26  ;;  %v1441_v38 = vpop.f32.mrf.mxu1  ;;  %2632 = vmatprep.subr.bf16.mxu0 %v4679_v53  ;;  %v1031_v46 = vadd.f32 %v1030_v33, %v5651_v51 }
 0x1fc   :  { %v4902_v39 = vpop.eup %4901  ;;  %v1032_v40 = vpop.f32.mrf.mxu0  ;;  %1840 = vmatprep.mubr.bf16.mxu0 %v4900_v36  ;;  %4913 = vtanh.bf16 %v1528_v34  ;;  %v1529_v41 = vpack.c.bf16 %v1438_v35, %v1434_v23  ;;  %v1442_v44 = vadd.f32 %v1441_v38, %v5661_v27  ;;  %v4689_v34 = vld [vmem:[#allocation2 + $0x2d0] ss:$8 sps:$4 sm:$0xff]  }
 0x1fd   :  { %4915 = vtanh.bf16 %v1110_v37  ;;  %1841 = vmatmul.mubr.bf16.gmra.mxu0 %v4896_v25  ;;  %v1443_v42 = vpop.f32.mrf.mxu1  ;;  %2251 = vmatprep.mubr.bf16.mxu1 %v4902_v39  ;;  %v1033_v58 = vadd.f32 %v1032_v40, %v5654_v19  ;;  %v4694_v37 = vld [vmem:[#allocation2 + $0x2c4] ss:$8 sps:$4 sm:$0xff]  }
 0x1fe   :  { %v1034_v43 = vpop.f32.mrf.mxu0  ;;  %4917 = vtanh.bf16 %v1529_v41  ;;  %2252 = vmatmul.mubr.bf16.gmra.mxu1 %v4898_v32  ;;  %2633 = vmatpush1.bf16.msra.mxu0 %v4677_v61  ;;  %v1444_v55 = vadd.f32 %v1443_v42, %v5664_v31 }
 0x1ff   :  { %v1035_v48 = vadd.f32 %v1034_v43, %v5651_v51  ;;  %v1445_v50 = vpop.f32.mrf.mxu1  ;;  %2634 = vmatprep.subr.bf16.mxu0 %v4682_v3  ;;  %v4692_v43 = vld [vmem:[#allocation2 + $0x2c0] ss:$8 sps:$4 sm:$0xff]  }
 0x200   :  { %v1036_v54 = vpop.f32.mrf.mxu0  ;;  %v1446_v56 = vadd.f32 %v1445_v50, %v5661_v27 }
 0x201   :  { %v4904_v57 = vpop.eup %4903  ;;  %v1111_v59 = vpack.c.bf16 %v1035_v48, %v1031_v46  ;;  %v1037_v60 = vadd.f32 %v1036_v54, %v5654_v19  ;;  %v1447_v62 = vpop.f32.mrf.mxu1 }
 0x202   :  { %v4906_v63 = vpop.eup %4905  ;;  %v1040_v1 = vpop.f32.mrf.mxu0  ;;  %v1530_v2 = vpack.c.bf16 %v1446_v56, %v1442_v44  ;;  %v1448_v4 = vadd.f32 %v1447_v62, %v5664_v31  ;;  %2635 = vmatpush1.bf16.msra.mxu0 %v4680_v45 }
 0x203   :  { %v4908_v6 = vpop.eup %4907  ;;  %4919 = vtanh.bf16 %v1111_v59  ;;  %v1112_v7 = vpack.c.bf16 %v1037_v60, %v1033_v58  ;;  %v1451_v8 = vpop.f32.mrf.mxu1  ;;  %2636 = vmatprep.subr.bf16.mxu0 %v4685_v52  ;;  %v1041_v17 = vadd.f32 %v1040_v1, %v5651_v51 }
 0x204   :  { %v4910_v10 = vpop.eup %4909  ;;  %v1042_v11 = vpop.f32.mrf.mxu0  ;;  %1850 = vmatprep.mubr.bf16.mxu0 %v4908_v6  ;;  %4921 = vtanh.bf16 %v1530_v2  ;;  %v1531_v12 = vpack.c.bf16 %v1448_v4, %v1444_v55  ;;  %v1452_v15 = vadd.f32 %v1451_v8, %v5661_v27 }
 0x205   :  { %4923 = vtanh.bf16 %v1112_v7  ;;  %1851 = vmatmul.mubr.bf16.gmra.mxu0 %v4904_v57  ;;  %v1453_v13 = vpop.f32.mrf.mxu1  ;;  %2261 = vmatprep.mubr.bf16.mxu1 %v4910_v10  ;;  %v1043_v24 = vadd.f32 %v1042_v11, %v5654_v19 }
 0x206   :  { %v1044_v14 = vpop.f32.mrf.mxu0  ;;  %4925 = vtanh.bf16 %v1531_v12  ;;  %2262 = vmatmul.mubr.bf16.gmra.mxu1 %v4906_v63  ;;  %2637 = vmatpush2.bf16.msra.mxu0 %v4683_v5  ;;  %v1454_v53 = vadd.f32 %v1453_v13, %v5664_v31 }
 0x207   :  { %v1045_v18 = vadd.f32 %v1044_v14, %v5651_v51  ;;  %v1455_v20 = vpop.f32.mrf.mxu1  ;;  %2638 = vmatprep.subr.bf16.mxu0 %v4688_v9 }
 0x208   :  { %v1046_v22 = vpop.f32.mrf.mxu0  ;;  %v1456_v0 = vadd.f32 %v1455_v20, %v5661_v27 }
 0x209   :  { %v4912_v23 = vpop.eup %4911  ;;  %v1113_v25 = vpack.c.bf16 %v1045_v18, %v1041_v17  ;;  %v1047_v26 = vadd.f32 %v1046_v22, %v5654_v19  ;;  %v1457_v28 = vpop.f32.mrf.mxu1 }
 0x20a   :  { %v4914_v29 = vpop.eup %4913  ;;  %v1050_v30 = vpop.f32.mrf.mxu0  ;;  %v1532_v32 = vpack.c.bf16 %v1456_v0, %v1452_v15  ;;  %v1458_v33 = vadd.f32 %v1457_v28, %v5664_v31  ;;  %2639 = vmatpush2.bf16.msra.mxu0 %v4686_v16 }
 0x20b   :  { %v4916_v35 = vpop.eup %4915  ;;  %4927 = vtanh.bf16 %v1113_v25  ;;  %v1114_v61 = vpack.c.bf16 %v1047_v26, %v1043_v24  ;;  %v1461_v36 = vpop.f32.mrf.mxu1  ;;  %2640 = vmatprep.subr.bf16.mxu0 %v4691_v21  ;;  %v1051_v44 = vadd.f32 %v1050_v30, %v5651_v51 }
 0x20c   :  { %v4918_v38 = vpop.eup %4917  ;;  %v1052_v3 = vpop.f32.mrf.mxu0  ;;  %1860 = vmatprep.mubr.bf16.mxu0 %v4916_v35  ;;  %4929 = vtanh.bf16 %v1532_v32  ;;  %v1533_v39 = vpack.c.bf16 %v1458_v33, %v1454_v53  ;;  %v1462_v42 = vadd.f32 %v1461_v36, %v5661_v27 }
 0x20d   :  { %4931 = vtanh.bf16 %v1114_v61  ;;  %1861 = vmatmul.mubr.bf16.gmra.mxu0 %v4912_v23  ;;  %v1463_v40 = vpop.f32.mrf.mxu1  ;;  %2271 = vmatprep.mubr.bf16.mxu1 %v4918_v38  ;;  %v1053_v55 = vadd.f32 %v1052_v3, %v5654_v19 }
 0x20e   :  { %v1054_v41 = vpop.f32.mrf.mxu0  ;;  %4933 = vtanh.bf16 %v1533_v39  ;;  %2272 = vmatmul.mubr.bf16.gmra.mxu1 %v4914_v29  ;;  %2641 = vmatpush2.bf16.msra.mxu0 %v4689_v34  ;;  %v1464_v50 = vadd.f32 %v1463_v40, %v5664_v31 }
 0x20f   :  { %v1055_v45 = vadd.f32 %v1054_v41, %v5651_v51  ;;  %v1465_v46 = vpop.f32.mrf.mxu1  ;;  %2642 = vmatprep.subr.bf16.mxu0 %v4694_v37 }
 0x210   :  { %v1056_v48 = vpop.f32.mrf.mxu0  ;;  %v1466_v52 = vadd.f32 %v1465_v46, %v5661_v27 }
 0x211   :  { %v4920_v54 = vpop.eup %4919  ;;  %v1115_v56 = vpack.c.bf16 %v1055_v45, %v1051_v44  ;;  %v1057_v57 = vadd.f32 %v1056_v48, %v5654_v19  ;;  %v1467_v58 = vpop.f32.mrf.mxu1 }
 0x212   :  { %v4922_v59 = vpop.eup %4921  ;;  %v1060_v60 = vpop.f32.mrf.mxu0  ;;  %v1534_v62 = vpack.c.bf16 %v1466_v52, %v1462_v42  ;;  %v1468_v63 = vadd.f32 %v1467_v58, %v5664_v31  ;;  %2643 = vmatpush2.bf16.msra.mxu0 %v4692_v43 }
 0x213   :  { %v4924_v1 = vpop.eup %4923  ;;  %4935 = vtanh.bf16 %v1115_v56  ;;  %v1116_v2 = vpack.c.bf16 %v1057_v57, %v1053_v55  ;;  %v1471_v4 = vpop.f32.mrf.mxu1  ;;  %v1061_v11 = vadd.f32 %v1060_v60, %v5651_v51 }
 0x214   :  { %v4926_v5 = vpop.eup %4925  ;;  %v1062_v6 = vpop.f32.mrf.mxu0  ;;  %1870 = vmatprep.mubr.bf16.mxu0 %v4924_v1  ;;  %4937 = vtanh.bf16 %v1534_v62  ;;  %v1535_v7 = vpack.c.bf16 %v1468_v63, %v1464_v50  ;;  %v1472_v10 = vadd.f32 %v1471_v4, %v5661_v27  ;;  %v4695_v63 = vld [vmem:[#allocation2 + $0x2b0] ss:$8 sps:$4 sm:$0xff]   ;;  %v4697_v1 = vld [vmem:[#allocation2 + $0x2b4] ss:$8 sps:$4 sm:$0xff]  }
 0x215   :  { %4939 = vtanh.bf16 %v1116_v2  ;;  %1871 = vmatmul.mubr.bf16.gmra.mxu0 %v4920_v54  ;;  %v1473_v8 = vpop.f32.mrf.mxu1  ;;  %2281 = vmatprep.mubr.bf16.mxu1 %v4926_v5  ;;  %v1063_v18 = vadd.f32 %v1062_v6, %v5654_v19 }
 0x216   :  { %v1064_v9 = vpop.f32.mrf.mxu0  ;;  %4941 = vtanh.bf16 %v1535_v7  ;;  %2282 = vmatmul.mubr.bf16.gmra.mxu1 %v4922_v59  ;;  %v1474_v15 = vadd.f32 %v1473_v8, %v5664_v31  ;;  %2644 = vmatprep.subr.bf16.mxu0 %v4697_v1  ;;  %v4704_v1 = vld [vmem:[#allocation2 + $0x280] ss:$8 sps:$4 sm:$0xff]  }
 0x217   :  { %v1065_v12 = vadd.f32 %v1064_v9, %v5651_v51  ;;  %v1475_v13 = vpop.f32.mrf.mxu1  ;;  %2645 = vmatpush2.bf16.msra.mxu0 %v4695_v63 }
 0x218   :  { %v1066_v14 = vpop.f32.mrf.mxu0  ;;  %v1476_v16 = vadd.f32 %v1475_v13, %v5661_v27 }
 0x219   :  { %v4928_v17 = vpop.eup %4927  ;;  %v1117_v20 = vpack.c.bf16 %v1065_v12, %v1061_v11  ;;  %v1067_v21 = vadd.f32 %v1066_v14, %v5654_v19  ;;  %v1477_v22 = vpop.f32.mrf.mxu1 }
 0x21a   :  { %v4930_v53 = vpop.eup %4929  ;;  %v1070_v0 = vpop.f32.mrf.mxu0  ;;  %v1536_v23 = vpack.c.bf16 %v1476_v16, %v1472_v10  ;;  %v1478_v24 = vadd.f32 %v1477_v22, %v5664_v31 }
 0x21b   :  { %v4932_v25 = vpop.eup %4931  ;;  %4943 = vtanh.bf16 %v1117_v20  ;;  %v1118_v26 = vpack.c.bf16 %v1067_v21, %v1063_v18  ;;  %v1481_v28 = vpop.f32.mrf.mxu1  ;;  %v1071_v61 = vadd.f32 %v1070_v0, %v5651_v51 }
 0x21c   :  { %v4934_v29 = vpop.eup %4933  ;;  %v1072_v30 = vpop.f32.mrf.mxu0  ;;  %1880 = vmatprep.mubr.bf16.mxu0 %v4932_v25  ;;  %4945 = vtanh.bf16 %v1536_v23  ;;  %v1537_v32 = vpack.c.bf16 %v1478_v24, %v1474_v15  ;;  %v1482_v35 = vadd.f32 %v1481_v28, %v5661_v27 }
 0x21d   :  { %4947 = vtanh.bf16 %v1118_v26  ;;  %1881 = vmatmul.mubr.bf16.gmra.mxu0 %v4928_v17  ;;  %v1483_v33 = vpop.f32.mrf.mxu1  ;;  %2291 = vmatprep.mubr.bf16.mxu1 %v4934_v29  ;;  %v1073_v41 = vadd.f32 %v1072_v30, %v5654_v19 }
 0x21e   :  { %v1074_v34 = vpop.f32.mrf.mxu0  ;;  %4949 = vtanh.bf16 %v1537_v32  ;;  %2292 = vmatmul.mubr.bf16.gmra.mxu1 %v4930_v53  ;;  %v1484_v3 = vadd.f32 %v1483_v33, %v5664_v31 }
 0x21f   :  { %v1075_v36 = vadd.f32 %v1074_v34, %v5651_v51  ;;  %v1485_v37 = vpop.f32.mrf.mxu1  ;;  %v4698_v34 = vld [vmem:[#allocation2 + $0x2a0] ss:$8 sps:$4 sm:$0xff]  }
 0x220   :  { %v1076_v38 = vpop.f32.mrf.mxu0  ;;  %v1486_v39 = vadd.f32 %v1485_v37, %v5661_v27 }
 0x221   :  { %v4936_v40 = vpop.eup %4935  ;;  %v1119_v42 = vpack.c.bf16 %v1075_v36, %v1071_v61  ;;  %v1077_v43 = vadd.f32 %v1076_v38, %v5654_v19  ;;  %v1487_v44 = vpop.f32.mrf.mxu1 }
 0x222   :  { %v4938_v45 = vpop.eup %4937  ;;  %v1080_v46 = vpop.f32.mrf.mxu0  ;;  %v1538_v48 = vpack.c.bf16 %v1486_v39, %v1482_v35  ;;  %v1488_v50 = vadd.f32 %v1487_v44, %v5664_v31  ;;  %v4700_v35 = vld [vmem:[#allocation2 + $0x2a4] ss:$8 sps:$4 sm:$0xff]  }
 0x223   :  { %v4940_v52 = vpop.eup %4939  ;;  %4951 = vtanh.bf16 %v1119_v42  ;;  %v1120_v54 = vpack.c.bf16 %v1077_v43, %v1073_v41  ;;  %v1491_v55 = vpop.f32.mrf.mxu1  ;;  %v1081_v2 = vadd.f32 %v1080_v46, %v5651_v51  ;;  %2646 = vmatprep.subr.bf16.mxu0 %v4700_v35  ;;  %v4743_v35 = vld [vmem:[#allocation2 + $0x5b0] ss:$8 sps:$4 sm:$0xff]  }
 0x224   :  { %v4942_v56 = vpop.eup %4941  ;;  %v1082_v57 = vpop.f32.mrf.mxu0  ;;  %1890 = vmatprep.mubr.bf16.mxu0 %v4940_v52  ;;  %4953 = vtanh.bf16 %v1538_v48  ;;  %v1539_v58 = vpack.c.bf16 %v1488_v50, %v1484_v3  ;;  %v1492_v62 = vadd.f32 %v1491_v55, %v5661_v27  ;;  %2647 = vmatpush2.bf16.msra.mxu0 %v4698_v34  ;;  %v4701_v48 = vld [vmem:[#allocation2 + $0x290] ss:$8 sps:$4 sm:$0xff]   ;;  %v4703_v50 = vld [vmem:[#allocation2 + $0x294] ss:$8 sps:$4 sm:$0xff]  }
 0x225   :  { %4955 = vtanh.bf16 %v1120_v54  ;;  %1891 = vmatmul.mubr.bf16.gmra.mxu0 %v4936_v40  ;;  %v1493_v59 = vpop.f32.mrf.mxu1  ;;  %2301 = vmatprep.mubr.bf16.mxu1 %v4942_v56  ;;  %v1083_v10 = vadd.f32 %v1082_v57, %v5654_v19  ;;  %v4745_v34 = vld [vmem:[#allocation2 + $0x5b4] ss:$8 sps:$4 sm:$0xff]  }
 0x226   :  { %v1084_v60 = vpop.f32.mrf.mxu0  ;;  %4957 = vtanh.bf16 %v1539_v58  ;;  %2302 = vmatmul.mubr.bf16.gmra.mxu1 %v4938_v45  ;;  %v1494_v7 = vadd.f32 %v1493_v59, %v5664_v31  ;;  %2648 = vmatprep.subr.bf16.mxu0 %v4703_v50 }
 0x227   :  { %v1085_v4 = vadd.f32 %v1084_v60, %v5651_v51  ;;  %v1495_v5 = vpop.f32.mrf.mxu1 }
 0x228   :  { %v1086_v6 = vpop.f32.mrf.mxu0  ;;  %v1496_v8 = vadd.f32 %v1495_v5, %v5661_v27  ;;  %2649 = vmatpush2.bf16.msra.mxu0 %v4701_v48 }
 0x229   :  { %v4944_v9 = vpop.eup %4943  ;;  %v1121_v11 = vpack.c.bf16 %v1085_v4, %v1081_v2  ;;  %v1087_v12 = vadd.f32 %v1086_v6, %v5654_v19  ;;  %v1497_v13 = vpop.f32.mrf.mxu1  ;;  %v4709_v6 = vld [vmem:[#allocation2 + $0x574] ss:$8 sps:$4 sm:$0xff]  }
 0x22a   :  { %v4946_v14 = vpop.eup %4945  ;;  %v1090_v15 = vpop.f32.mrf.mxu0  ;;  %v1540_v16 = vpack.c.bf16 %v1496_v8, %v1492_v62  ;;  %v1498_v17 = vadd.f32 %v1497_v13, %v5664_v31  ;;  %v4706_v62 = vld [vmem:[#allocation2 + $0x284] ss:$8 sps:$4 sm:$0xff]   ;;  %v4707_v8 = vld [vmem:[#allocation2 + $0x570] ss:$8 sps:$4 sm:$0xff]   ;;  %3041 = vmatprep.subr.bf16.mxu1 %v4709_v6 }
 0x22b   :  { %v4948_v18 = vpop.eup %4947  ;;  %4959 = vtanh.bf16 %v1121_v11  ;;  %v1122_v20 = vpack.c.bf16 %v1087_v12, %v1083_v10  ;;  %v1501_v21 = vpop.f32.mrf.mxu1  ;;  %v1091_v26 = vadd.f32 %v1090_v15, %v5651_v51  ;;  %2650 = vmatprep.subr.bf16.mxu0 %v4706_v62  ;;  %3042 = vmatpush1.bf16.msra.mxu1 %v4707_v8  ;;  %v4710_v10 = vld [vmem:[#allocation2 + $0x560] ss:$8 sps:$4 sm:$0xff]   ;;  %v4715_v11 = vld [vmem:[#allocation2 + $0x554] ss:$8 sps:$4 sm:$0xff]   ;;  %v4713_v13 = vld [vmem:[#allocation2 + $0x550] ss:$8 sps:$4 sm:$0xff]  }
 0x22c   :  { %v4950_v22 = vpop.eup %4949  ;;  %v1092_v53 = vpop.f32.mrf.mxu0  ;;  %1900 = vmatprep.mubr.bf16.mxu0 %v4948_v18  ;;  %4961 = vtanh.bf16 %v1540_v16  ;;  %v1541_v0 = vpack.c.bf16 %v1498_v17, %v1494_v7  ;;  %v1502_v25 = vadd.f32 %v1501_v21, %v5661_v27  ;;  %2651 = vmatpush2.bf16.msra.mxu0 %v4704_v1  ;;  %v4718_v15 = vld [vmem:[#allocation2 + $0x544] ss:$8 sps:$4 sm:$0xff]   ;;  %v4716_v16 = vld [vmem:[#allocation2 + $0x540] ss:$8 sps:$4 sm:$0xff]   ;;  %v4721_v17 = vld [vmem:[#allocation2 + $0x534] ss:$8 sps:$4 sm:$0xff]  }
 0x22d   :  { %4963 = vtanh.bf16 %v1122_v20  ;;  %1901 = vmatmul.mubr.bf16.gmra.mxu0 %v4944_v9  ;;  %v1503_v23 = vpop.f32.mrf.mxu1  ;;  %2311 = vmatprep.mubr.bf16.mxu1 %v4950_v22  ;;  %v1093_v36 = vadd.f32 %v1092_v53, %v5654_v19  ;;  %v4719_v18 = vld [vmem:[#allocation2 + $0x530] ss:$8 sps:$4 sm:$0xff]   ;;  %v4724_v20 = vld [vmem:[#allocation2 + $0x524] ss:$8 sps:$4 sm:$0xff]   ;;  %v4722_v21 = vld [vmem:[#allocation2 + $0x520] ss:$8 sps:$4 sm:$0xff]  }
 0x22e   :  { %v1094_v24 = vpop.f32.mrf.mxu0  ;;  %4965 = vtanh.bf16 %v1541_v0  ;;  %2312 = vmatmul.mubr.bf16.gmra.mxu1 %v4946_v14  ;;  %v1504_v32 = vadd.f32 %v1503_v23, %v5664_v31  ;;  %v4727_v22 = vld [vmem:[#allocation2 + $0x514] ss:$8 sps:$4 sm:$0xff]   ;;  %v4725_v53 = vld [vmem:[#allocation2 + $0x510] ss:$8 sps:$4 sm:$0xff]   ;;  %v4730_v0 = vld [vmem:[#allocation2 + $0x504] ss:$8 sps:$4 sm:$0xff]  }
 0x22f   :  { %v1095_v28 = vadd.f32 %v1094_v24, %v5651_v51  ;;  %v1505_v29 = vpop.f32.mrf.mxu1  ;;  %v4728_v23 = vld [vmem:[#allocation2 + $0x500] ss:$8 sps:$4 sm:$0xff]   ;;  %v4733_v24 = vld [vmem:[#allocation2 + $0x5f4] ss:$8 sps:$4 sm:$0xff]  }
 0x230   :  { %v1096_v30 = vpop.f32.mrf.mxu0  ;;  %v1506_v33 = vadd.f32 %v1505_v29, %v5661_v27  ;;  %v4739_v29 = vld [vmem:[#allocation2 + $0x5d4] ss:$8 sps:$4 sm:$0xff]  }
 0x231   :  { %v4952_v61 = vpop.eup %4951  ;;  %v1123_v37 = vpack.c.bf16 %v1095_v28, %v1091_v26  ;;  %v1097_v38 = vadd.f32 %v1096_v30, %v5654_v19  ;;  %v1507_v3 = vpop.f32.mrf.mxu1  ;;  %v4736_v26 = vld [vmem:[#allocation2 + $0x5e4] ss:$8 sps:$4 sm:$0xff]   ;;  %v4734_v28 = vld [vmem:[#allocation2 + $0x5e0] ss:$8 sps:$4 sm:$0xff]   ;;  %v4737_v30 = vld [vmem:[#allocation2 + $0x5d0] ss:$8 sps:$4 sm:$0xff]  }
 0x232   :  { %v4954_v39 = vpop.eup %4953  ;;  %v1542_v40 = vpack.c.bf16 %v1506_v33, %v1502_v25  ;;  %v1508_v41 = vadd.f32 %v1507_v3, %v5664_v31  ;;  %v4731_v25 = vld [vmem:[#allocation2 + $0x5f0] ss:$8 sps:$4 sm:$0xff]   ;;  %v4740_v33 = vld [vmem:[#allocation2 + $0x5c0] ss:$8 sps:$4 sm:$0xff]   ;;  %v4754_v3 = vld [vmem:[#allocation2 + $0x584] ss:$8 sps:$4 sm:$0xff]  }
 0x233   :  { %v4956_v51 = vpop.eup %4955  ;;  %4967 = vtanh.bf16 %v1123_v37  ;;  %v1124_v42 = vpack.c.bf16 %v1097_v38, %v1093_v36  ;;  %v1511_v43 = vpop.f32.mrf.mxu1  ;;  %v4746_v36 = vld [vmem:[#allocation2 + $0x5a0] ss:$8 sps:$4 sm:$0xff]   ;;  %v4751_v37 = vld [vmem:[#allocation2 + $0x594] ss:$8 sps:$4 sm:$0xff]   ;;  %v4749_v38 = vld [vmem:[#allocation2 + $0x590] ss:$8 sps:$4 sm:$0xff]  }
 0x234   :  { %v4958_v44 = vpop.eup %4957  ;;  %1910 = vmatprep.mubr.bf16.mxu0 %v4956_v51  ;;  %4969 = vtanh.bf16 %v1542_v40  ;;  %v1543_v45 = vpack.c.bf16 %v1508_v41, %v1504_v32  ;;  %v1512_v19 = vadd.f32 %v1511_v43, %v5661_v27  ;;  %v4742_v32 = vld [vmem:[#allocation2 + $0x5c4] ss:$8 sps:$4 sm:$0xff]   ;;  %v4755_v40 = vld [vmem:[#allocation5 + $0x78] sm:$0xff]   ;;  %v1606_v41 = vld [vmem:[#allocation7 + $0x3] ss:$8 sm:$0x3] }
 0x235   :  { %4971 = vtanh.bf16 %v1124_v42  ;;  %1911 = vmatmul.mubr.bf16.gmra.mxu0 %v4952_v61  ;;  %v1513_v46 = vpop.f32.mrf.mxu1  ;;  %2321 = vmatprep.mubr.bf16.mxu1 %v4958_v44  ;;  %v4748_v61 = vld [vmem:[#allocation2 + $0x5a4] ss:$8 sps:$4 sm:$0xff]   ;;  %v5767_v42 = vrot.slane %v1606_v41, %v5530_v47  ;;  %v5770_v44 = vrot.slane %v1606_v41, %v5532_v49 }
 0x236   :  { %4973 = vtanh.bf16 %v1543_v45  ;;  %2322 = vmatmul.mubr.bf16.gmra.mxu1 %v4954_v39  ;;  %v1514_v54 = vadd.f32 %v1513_v46, %v5664_v31  ;;  %v4752_v39 = vld [vmem:[#allocation2 + $0x580] ss:$8 sps:$4 sm:$0xff]   ;;  %4340 = vmatprep.subr.bf16.mxu0 %v4755_v40 }
 0x237   :  { %v1515_v52 = vpop.f32.mrf.mxu1 }
 0x238   :  { %v1516_v55 = vadd.f32 %v1515_v52, %v5661_v27 }
 0x239   :  { %v4960_v56 = vpop.eup %4959  ;;  %v1517_v57 = vpop.f32.mrf.mxu1 }
 0x23a   :  { %v4962_v58 = vpop.eup %4961  ;;  %v1544_v59 = vpack.c.bf16 %v1516_v55, %v1512_v19  ;;  %v1518_v60 = vadd.f32 %v1517_v57, %v5664_v31  ;;  %v4712_v31 = vld [vmem:[#allocation2 + $0x564] ss:$8 sps:$4 sm:$0xff]  }
 0x23b   :  { %v4964_v63 = vpop.eup %4963  ;;  %3043 = vmatprep.subr.bf16.mxu1 %v4712_v31  ;;  %v2027_v19 = vld [vmem:[#allocation7 + $0x6] ss:$8 sm:$0x3] }
 0x23c   :  { %v4966_v2 = vpop.eup %4965  ;;  %1920 = vmatprep.mubr.bf16.mxu0 %v4964_v63  ;;  %v1545_v4 = vpack.c.bf16 %v1518_v60, %v1514_v54  ;;  %4975 = vtanh.bf16 %v1544_v59  ;;  %3044 = vmatpush1.bf16.msra.mxu1 %v4710_v10  ;;  %v5777_v57 = vrot.slane %v2027_v19, %v5530_v47  ;;  %v5780_v62 = vrot.slane %v2027_v19, %v5532_v49 }
 0x23d   :  { %1921 = vmatmul.mubr.bf16.gmra.mxu0 %v4960_v56  ;;  %2331 = vmatprep.mubr.bf16.mxu1 %v4966_v2 }
 0x23e   :  { %4977 = vtanh.bf16 %v1545_v4  ;;  %2332 = vmatmul.mubr.bf16.gmra.mxu1 %v4962_v58  ;;  %3045 = vmatprep.subr.bf16.mxu1 %v4715_v11 }
 0x240   :  { %3046 = vmatpush1.bf16.msra.mxu1 %v4713_v13 }
 0x241   :  { %v4968_v27 = vpop.eup %4967  ;;  %3047 = vmatprep.subr.bf16.mxu1 %v4718_v15 }
 0x242   :  { %v4970_v5 = vpop.eup %4969 }
 0x243   :  { %v4972_v7 = vpop.eup %4971 }
 0x244   :  { %v4974_v9 = vpop.eup %4973  ;;  %1930 = vmatprep.mubr.bf16.mxu0 %v4972_v7  ;;  %3048 = vmatpush1.bf16.msra.mxu1 %v4716_v16 }
 0x245   :  { %1931 = vmatmul.mubr.bf16.gmra.mxu0 %v4968_v27  ;;  %2341 = vmatprep.mubr.bf16.mxu1 %v4974_v9 }
 0x246   :  { %2342 = vmatmul.mubr.bf16.gmra.mxu1 %v4970_v5  ;;  %3049 = vmatprep.subr.bf16.mxu1 %v4721_v17 }
 0x248   :  { %3050 = vmatpush1.bf16.msra.mxu1 %v4719_v18 }
 0x249   :  { %3051 = vmatprep.subr.bf16.mxu1 %v4724_v20 }
 0x24a   :  { %v4976_v12 = vpop.eup %4975 }
 0x24c   :  { %v4978_v14 = vpop.eup %4977  ;;  %3052 = vmatpush1.bf16.msra.mxu1 %v4722_v21 }
 0x24d   :  { %2351 = vmatprep.mubr.bf16.mxu1 %v4978_v14  ;;  %3053 = vmatprep.subr.bf16.mxu1 %v4727_v22 }
 0x24e   :  { %2352 = vmatmul.mubr.bf16.gmra.mxu1 %v4976_v12 }
 0x250   :  { %3054 = vmatpush1.bf16.msra.mxu1 %v4725_v53 }
 0x251   :  { %3055 = vmatprep.subr.bf16.mxu1 %v4730_v0 }
 0x254   :  { %3056 = vmatpush1.bf16.msra.mxu1 %v4728_v23 }
 0x255   :  { %3057 = vmatprep.subr.bf16.mxu1 %v4733_v24 }
 0x258   :  { %3058 = vmatpush2.bf16.msra.mxu1 %v4731_v25 }
 0x259   :  { %3059 = vmatprep.subr.bf16.mxu1 %v4736_v26 }
 0x25c   :  { %3060 = vmatpush2.bf16.msra.mxu1 %v4734_v28 }
 0x25d   :  { %3061 = vmatprep.subr.bf16.mxu1 %v4739_v29 }
 0x260   :  { %3062 = vmatpush2.bf16.msra.mxu1 %v4737_v30 }
 0x261   :  { %3063 = vmatprep.subr.bf16.mxu1 %v4742_v32 }
 0x264   :  { %3064 = vmatpush2.bf16.msra.mxu1 %v4740_v33 }
 0x265   :  { %3065 = vmatprep.subr.bf16.mxu1 %v4745_v34 }
 0x268   :  { %3066 = vmatpush2.bf16.msra.mxu1 %v4743_v35 }
 0x269   :  { %3067 = vmatprep.subr.bf16.mxu1 %v4748_v61  ;;  %v4756_v61 = vld [vmem:[#allocation5 + $0x38] sm:$0xff]  }
 0x26c   :  { %3068 = vmatpush2.bf16.msra.mxu1 %v4746_v36 }
 0x26d   :  { %3069 = vmatprep.subr.bf16.mxu1 %v4751_v37 }
 0x270   :  { %3070 = vmatpush2.bf16.msra.mxu1 %v4749_v38 }
 0x271   :  { %3071 = vmatprep.subr.bf16.mxu1 %v4754_v3  ;;  %v5798_v3 = vld [vmem:[#allocation5 + $0x70] sm:$0xff]  }
 0x274   :  { %3072 = vmatpush2.bf16.msra.mxu1 %v4752_v39 }
 0x275   :  { %4434 = vmatprep.subr.bf16.mxu1 %v4755_v40 }
 0x2a5   :  { %v1812_v51 = vpop.f32.mrf.mxu0 }
 0x2a6   :  { %v1813_v48 = vadd.f32 %v1812_v51, %v5767_v42 }
 0x2a7   :  { %v1814_v43 = vpop.f32.mrf.mxu0 }
 0x2a8   :  { %v1815_v52 = vadd.f32 %v1814_v43, %v5770_v44 }
 0x2a9   :  { %v1816_v45 = vpop.f32.mrf.mxu0 }
 0x2aa   :  { %v1817_v46 = vadd.f32 %v1816_v45, %v5767_v42 }
 0x2ab   :  { %v1818_v50 = vpop.f32.mrf.mxu0 }
 0x2ac   :  { %v1819_v54 = vadd.f32 %v1818_v50, %v5770_v44  ;;  %v1941_v55 = vpack.c.bf16 %v1817_v46, %v1813_v48  ;;  %v5801_v46 = vld [vmem:[#allocation5 + $0x30] sm:$0xff]  }
 0x2ad   :  { %v1822_v56 = vpop.f32.mrf.mxu0 }
 0x2ae   :  { %v1942_v58 = vpack.c.bf16 %v1819_v54, %v1815_v52  ;;  %v2233_v59 = vpop.f32.mrf.mxu1  ;;  %v1823_v4 = vadd.f32 %v1822_v56, %v5767_v42  ;;  %v5806_v52 = vld [vmem:[#allocation5 + $0x68] sm:$0xff]  }
 0x2af   :  { %v1824_v60 = vpop.f32.mrf.mxu0  ;;  %v2234_v2 = vadd.f32 %v2233_v59, %v5777_v57 }
 0x2b0   :  { %4979 = vtanh.bf16 %v1942_v58  ;;  %v2235_v63 = vpop.f32.mrf.mxu1  ;;  %v1825_v9 = vadd.f32 %v1824_v60, %v5770_v44 }
 0x2b1   :  { %4981 = vtanh.bf16 %v1941_v55  ;;  %v1826_v1 = vpop.f32.mrf.mxu0  ;;  %v2236_v7 = vadd.f32 %v2235_v63, %v5780_v62 }
 0x2b2   :  { %v1827_v27 = vadd.f32 %v1826_v1, %v5767_v42  ;;  %v2237_v5 = vpop.f32.mrf.mxu1 }
 0x2b3   :  { %v1828_v6 = vpop.f32.mrf.mxu0  ;;  %v2238_v8 = vadd.f32 %v2237_v5, %v5777_v57 }
 0x2b4   :  { %v1943_v31 = vpack.c.bf16 %v1827_v27, %v1823_v4  ;;  %v1829_v10 = vadd.f32 %v1828_v6, %v5770_v44  ;;  %v2239_v11 = vpop.f32.mrf.mxu1  ;;  %v5814_v6 = vld [vmem:[#allocation5 + $0x28] sm:$0xff]  }
 0x2b5   :  { %v1832_v12 = vpop.f32.mrf.mxu0  ;;  %v2362_v13 = vpack.c.bf16 %v2238_v8, %v2234_v2  ;;  %v2240_v14 = vadd.f32 %v2239_v11, %v5780_v62 }
 0x2b6   :  { %4983 = vtanh.bf16 %v1943_v31  ;;  %v1944_v15 = vpack.c.bf16 %v1829_v10, %v1825_v9  ;;  %v2243_v16 = vpop.f32.mrf.mxu1  ;;  %v1833_v53 = vadd.f32 %v1832_v12, %v5767_v42  ;;  %v5817_v31 = vld [vmem:[#allocation5 + $0x60] sm:$0xff]  }
 0x2b7   :  { %v1834_v17 = vpop.f32.mrf.mxu0  ;;  %4985 = vtanh.bf16 %v2362_v13  ;;  %v2363_v18 = vpack.c.bf16 %v2240_v14, %v2236_v7  ;;  %v2244_v22 = vadd.f32 %v2243_v16, %v5777_v57  ;;  %v5821_v16 = vld [vmem:[#allocation5 + $0x20] sm:$0xff]  }
 0x2b8   :  { %4987 = vtanh.bf16 %v1944_v15  ;;  %v2245_v20 = vpop.f32.mrf.mxu1  ;;  %v1835_v28 = vadd.f32 %v1834_v17, %v5770_v44 }
 0x2b9   :  { %v1836_v21 = vpop.f32.mrf.mxu0  ;;  %4989 = vtanh.bf16 %v2363_v18  ;;  %v2246_v25 = vadd.f32 %v2245_v20, %v5780_v62 }
 0x2ba   :  { %v1837_v0 = vadd.f32 %v1836_v21, %v5767_v42  ;;  %v2247_v23 = vpop.f32.mrf.mxu1  ;;  %v5826_v21 = vld [vmem:[#allocation5 + $0x58] sm:$0xff]  }
 0x2bb   :  { %v1838_v24 = vpop.f32.mrf.mxu0  ;;  %v2248_v26 = vadd.f32 %v2247_v23, %v5777_v57 }
 0x2bc   :  { %v1945_v29 = vpack.c.bf16 %v1837_v0, %v1833_v53  ;;  %v1839_v30 = vadd.f32 %v1838_v24, %v5770_v44  ;;  %v2249_v32 = vpop.f32.mrf.mxu1 }
 0x2bd   :  { %v1842_v33 = vpop.f32.mrf.mxu0  ;;  %v2364_v34 = vpack.c.bf16 %v2248_v26, %v2244_v22  ;;  %v2250_v35 = vadd.f32 %v2249_v32, %v5780_v62 }
 0x2be   :  { %v4980_v36 = vpop.eup %4979  ;;  %4991 = vtanh.bf16 %v1945_v29  ;;  %v1946_v37 = vpack.c.bf16 %v1839_v30, %v1835_v28  ;;  %v2253_v38 = vpop.f32.mrf.mxu1  ;;  %v1843_v19 = vadd.f32 %v1842_v33, %v5767_v42 }
 0x2bf   :  { %v4982_v39 = vpop.eup %4981  ;;  %v1844_v40 = vpop.f32.mrf.mxu0  ;;  %2652 = vmatprep.mubr.bf16.mxu0 %v4980_v36  ;;  %4993 = vtanh.bf16 %v2364_v34  ;;  %v2365_v41 = vpack.c.bf16 %v2250_v35, %v2246_v25  ;;  %v2254_v45 = vadd.f32 %v2253_v38, %v5777_v57  ;;  %v4764_v34 = vld [vmem:[#allocation5 + $0x18] sm:$0xff]  }
 0x2c0   :  { %4995 = vtanh.bf16 %v1946_v37  ;;  %2653 = vmatmul.mubr.bf16.vlgmr.msra.gmra.mxu0 %v4982_v39  ;;  %v2255_v51 = vpop.f32.mrf.mxu1  ;;  %v1845_v59 = vadd.f32 %v1844_v40, %v5770_v44 }
 0x2c1   :  { %v1846_v43 = vpop.f32.mrf.mxu0  ;;  %4997 = vtanh.bf16 %v2365_v41  ;;  %4341 = vmatpush3.bf16.msra.mxu0 %v4756_v61  ;;  %v2256_v55 = vadd.f32 %v2255_v51, %v5780_v62 }
 0x2c2   :  { %v1847_v48 = vadd.f32 %v1846_v43, %v5767_v42  ;;  %v2257_v50 = vpop.f32.mrf.mxu1  ;;  %4342 = vmatprep.subr.bf16.mxu0 %v5798_v3 }
 0x2c3   :  { %v1848_v54 = vpop.f32.mrf.mxu0  ;;  %v2258_v56 = vadd.f32 %v2257_v50, %v5777_v57 }
 0x2c4   :  { %v4984_v58 = vpop.eup %4983  ;;  %v1947_v60 = vpack.c.bf16 %v1847_v48, %v1843_v19  ;;  %v1849_v63 = vadd.f32 %v1848_v54, %v5770_v44  ;;  %v2259_v1 = vpop.f32.mrf.mxu1 }
 0x2c5   :  { %v4986_v2 = vpop.eup %4985  ;;  %v1852_v4 = vpop.f32.mrf.mxu0  ;;  %v2366_v27 = vpack.c.bf16 %v2258_v56, %v2254_v45  ;;  %v2260_v5 = vadd.f32 %v2259_v1, %v5780_v62  ;;  %4343 = vmatpush3.bf16.msra.mxu0 %v5801_v46 }
 0x2c6   :  { %v4988_v7 = vpop.eup %4987  ;;  %4999 = vtanh.bf16 %v1947_v60  ;;  %v1948_v8 = vpack.c.bf16 %v1849_v63, %v1845_v59  ;;  %v2263_v9 = vpop.f32.mrf.mxu1  ;;  %4344 = vmatprep.subr.bf16.mxu0 %v5806_v52  ;;  %v1853_v17 = vadd.f32 %v1852_v4, %v5767_v42 }
 0x2c7   :  { %v4990_v10 = vpop.eup %4989  ;;  %v1854_v11 = vpop.f32.mrf.mxu0  ;;  %2662 = vmatprep.mubr.bf16.mxu0 %v4988_v7  ;;  %5001 = vtanh.bf16 %v2366_v27  ;;  %v2367_v12 = vpack.c.bf16 %v2260_v5, %v2256_v55  ;;  %v2264_v15 = vadd.f32 %v2263_v9, %v5777_v57 }
 0x2c8   :  { %5003 = vtanh.bf16 %v1948_v8  ;;  %2663 = vmatmul.mubr.bf16.gmra.mxu0 %v4984_v58  ;;  %v2265_v13 = vpop.f32.mrf.mxu1  ;;  %3073 = vmatprep.mubr.bf16.mxu1 %v4990_v10  ;;  %v1855_v24 = vadd.f32 %v1854_v11, %v5770_v44 }
 0x2c9   :  { %v1856_v14 = vpop.f32.mrf.mxu0  ;;  %5005 = vtanh.bf16 %v2367_v12  ;;  %3074 = vmatmul.mubr.bf16.vlgmr.msra.gmra.mxu1 %v4986_v2  ;;  %4345 = vmatpush3.bf16.msra.mxu0 %v5814_v6  ;;  %v2266_v53 = vadd.f32 %v2265_v13, %v5780_v62 }
 0x2ca   :  { %v1857_v18 = vadd.f32 %v1856_v14, %v5767_v42  ;;  %v2267_v20 = vpop.f32.mrf.mxu1  ;;  %4442 = vmatpush3.bf16.msra.mxu1 %v4756_v61  ;;  %4346 = vmatprep.subr.bf16.mxu0 %v5817_v31 }
 0x2cb   :  { %v1858_v22 = vpop.f32.mrf.mxu0  ;;  %v2268_v0 = vadd.f32 %v2267_v20, %v5777_v57  ;;  %4435 = vmatprep.subr.bf16.mxu1 %v5798_v3 }
 0x2cc   :  { %v4992_v23 = vpop.eup %4991  ;;  %v1949_v25 = vpack.c.bf16 %v1857_v18, %v1853_v17  ;;  %v1859_v26 = vadd.f32 %v1858_v22, %v5770_v44  ;;  %v2269_v28 = vpop.f32.mrf.mxu1 }
 0x2cd   :  { %v4994_v29 = vpop.eup %4993  ;;  %v1862_v30 = vpop.f32.mrf.mxu0  ;;  %v2368_v32 = vpack.c.bf16 %v2268_v0, %v2264_v15  ;;  %v2270_v33 = vadd.f32 %v2269_v28, %v5780_v62  ;;  %4347 = vmatpush3.bf16.msra.mxu0 %v5821_v16 }
 0x2ce   :  { %v4996_v35 = vpop.eup %4995  ;;  %5007 = vtanh.bf16 %v1949_v25  ;;  %v1950_v61 = vpack.c.bf16 %v1859_v26, %v1855_v24  ;;  %v2273_v36 = vpop.f32.mrf.mxu1  ;;  %4443 = vmatpush3.bf16.msra.mxu1 %v5801_v46  ;;  %4348 = vmatprep.subr.bf16.mxu0 %v5826_v21  ;;  %v1863_v51 = vadd.f32 %v1862_v30, %v5767_v42 }
 0x2cf   :  { %v4998_v37 = vpop.eup %4997  ;;  %v1864_v38 = vpop.f32.mrf.mxu0  ;;  %2672 = vmatprep.mubr.bf16.mxu0 %v4996_v35  ;;  %5009 = vtanh.bf16 %v2368_v32  ;;  %v2369_v3 = vpack.c.bf16 %v2270_v33, %v2266_v53  ;;  %4436 = vmatprep.subr.bf16.mxu1 %v5806_v52  ;;  %v2274_v41 = vadd.f32 %v2273_v36, %v5777_v57 }
 0x2d0   :  { %5011 = vtanh.bf16 %v1950_v61  ;;  %2673 = vmatmul.mubr.bf16.gmra.mxu0 %v4992_v23  ;;  %v2275_v39 = vpop.f32.mrf.mxu1  ;;  %3083 = vmatprep.mubr.bf16.mxu1 %v4998_v37  ;;  %v1865_v52 = vadd.f32 %v1864_v38, %v5770_v44 }
 0x2d1   :  { %v1866_v40 = vpop.f32.mrf.mxu0  ;;  %5013 = vtanh.bf16 %v2369_v3  ;;  %3084 = vmatmul.mubr.bf16.gmra.mxu1 %v4994_v29  ;;  %4349 = vmatpush3.bf16.msra.mxu0 %v4764_v34  ;;  %v2276_v19 = vadd.f32 %v2275_v39, %v5780_v62 }
 0x2d2   :  { %v1867_v43 = vadd.f32 %v1866_v40, %v5767_v42  ;;  %v2277_v45 = vpop.f32.mrf.mxu1  ;;  %4444 = vmatpush3.bf16.msra.mxu1 %v5814_v6 }
 0x2d3   :  { %v1868_v46 = vpop.f32.mrf.mxu0  ;;  %v2278_v48 = vadd.f32 %v2277_v45, %v5777_v57  ;;  %4437 = vmatprep.subr.bf16.mxu1 %v5817_v31 }
 0x2d4   :  { %v5000_v50 = vpop.eup %4999  ;;  %v1951_v54 = vpack.c.bf16 %v1867_v43, %v1863_v51  ;;  %v1869_v55 = vadd.f32 %v1868_v46, %v5770_v44  ;;  %v2279_v56 = vpop.f32.mrf.mxu1 }
 0x2d5   :  { %v5002_v58 = vpop.eup %5001  ;;  %v1872_v59 = vpop.f32.mrf.mxu0  ;;  %v2370_v60 = vpack.c.bf16 %v2278_v48, %v2274_v41  ;;  %v2280_v63 = vadd.f32 %v2279_v56, %v5780_v62 }
 0x2d6   :  { %v5004_v1 = vpop.eup %5003  ;;  %5015 = vtanh.bf16 %v1951_v54  ;;  %v1952_v2 = vpack.c.bf16 %v1869_v55, %v1865_v52  ;;  %v2283_v4 = vpop.f32.mrf.mxu1  ;;  %4445 = vmatpush3.bf16.msra.mxu1 %v5821_v16  ;;  %v1873_v31 = vadd.f32 %v1872_v59, %v5767_v42 }
 0x2d7   :  { %v5006_v27 = vpop.eup %5005  ;;  %v1874_v5 = vpop.f32.mrf.mxu0  ;;  %2682 = vmatprep.mubr.bf16.mxu0 %v5004_v1  ;;  %5017 = vtanh.bf16 %v2370_v60  ;;  %v2371_v6 = vpack.c.bf16 %v2280_v63, %v2276_v19  ;;  %4438 = vmatprep.subr.bf16.mxu1 %v5826_v21  ;;  %v2284_v9 = vadd.f32 %v2283_v4, %v5777_v57 }
 0x2d8   :  { %5019 = vtanh.bf16 %v1952_v2  ;;  %2683 = vmatmul.mubr.bf16.gmra.mxu0 %v5000_v50  ;;  %v2285_v7 = vpop.f32.mrf.mxu1  ;;  %3093 = vmatprep.mubr.bf16.mxu1 %v5006_v27  ;;  %v1875_v16 = vadd.f32 %v1874_v5, %v5770_v44 }
 0x2d9   :  { %v1876_v8 = vpop.f32.mrf.mxu0  ;;  %5021 = vtanh.bf16 %v2371_v6  ;;  %3094 = vmatmul.mubr.bf16.gmra.mxu1 %v5002_v58  ;;  %v2286_v13 = vadd.f32 %v2285_v7, %v5780_v62 }
 0x2da   :  { %v1877_v10 = vadd.f32 %v1876_v8, %v5767_v42  ;;  %v2287_v11 = vpop.f32.mrf.mxu1  ;;  %4446 = vmatpush3.bf16.msra.mxu1 %v4764_v34 }
 0x2db   :  { %v1878_v12 = vpop.f32.mrf.mxu0  ;;  %v2288_v14 = vadd.f32 %v2287_v11, %v5777_v57 }
 0x2dc   :  { %v5008_v15 = vpop.eup %5007  ;;  %v1953_v17 = vpack.c.bf16 %v1877_v10, %v1873_v31  ;;  %v1879_v18 = vadd.f32 %v1878_v12, %v5770_v44  ;;  %v2289_v20 = vpop.f32.mrf.mxu1 }
 0x2dd   :  { %v5010_v21 = vpop.eup %5009  ;;  %v1882_v22 = vpop.f32.mrf.mxu0  ;;  %v2372_v53 = vpack.c.bf16 %v2288_v14, %v2284_v9  ;;  %v2290_v0 = vadd.f32 %v2289_v20, %v5780_v62 }
 0x2de   :  { %v5012_v23 = vpop.eup %5011  ;;  %5023 = vtanh.bf16 %v1953_v17  ;;  %v1954_v24 = vpack.c.bf16 %v1879_v18, %v1875_v16  ;;  %v2293_v25 = vpop.f32.mrf.mxu1  ;;  %v1883_v34 = vadd.f32 %v1882_v22, %v5767_v42 }
 0x2df   :  { %v5014_v26 = vpop.eup %5013  ;;  %v1884_v28 = vpop.f32.mrf.mxu0  ;;  %2692 = vmatprep.mubr.bf16.mxu0 %v5012_v23  ;;  %5025 = vtanh.bf16 %v2372_v53  ;;  %v2373_v29 = vpack.c.bf16 %v2290_v0, %v2286_v13  ;;  %v2294_v33 = vadd.f32 %v2293_v25, %v5777_v57 }
 0x2e0   :  { %5027 = vtanh.bf16 %v1954_v24  ;;  %2693 = vmatmul.mubr.bf16.gmra.mxu0 %v5008_v15  ;;  %v2295_v30 = vpop.f32.mrf.mxu1  ;;  %3103 = vmatprep.mubr.bf16.mxu1 %v5014_v26  ;;  %v1885_v39 = vadd.f32 %v1884_v28, %v5770_v44 }
 0x2e1   :  { %v1886_v32 = vpop.f32.mrf.mxu0  ;;  %5029 = vtanh.bf16 %v2373_v29  ;;  %3104 = vmatmul.mubr.bf16.gmra.mxu1 %v5010_v21  ;;  %v2296_v37 = vadd.f32 %v2295_v30, %v5780_v62 }
 0x2e2   :  { %v1887_v35 = vadd.f32 %v1886_v32, %v5767_v42  ;;  %v2297_v61 = vpop.f32.mrf.mxu1 }
 0x2e3   :  { %v1888_v36 = vpop.f32.mrf.mxu0  ;;  %v2298_v38 = vadd.f32 %v2297_v61, %v5777_v57 }
 0x2e4   :  { %v5016_v3 = vpop.eup %5015  ;;  %v1955_v40 = vpack.c.bf16 %v1887_v35, %v1883_v34  ;;  %v1889_v41 = vadd.f32 %v1888_v36, %v5770_v44  ;;  %v2299_v51 = vpop.f32.mrf.mxu1 }
 0x2e5   :  { %v5018_v43 = vpop.eup %5017  ;;  %v1892_v45 = vpop.f32.mrf.mxu0  ;;  %v2374_v46 = vpack.c.bf16 %v2298_v38, %v2294_v33  ;;  %v2300_v19 = vadd.f32 %v2299_v51, %v5780_v62 }
 0x2e6   :  { %v5020_v48 = vpop.eup %5019  ;;  %5031 = vtanh.bf16 %v1955_v40  ;;  %v1956_v50 = vpack.c.bf16 %v1889_v41, %v1885_v39  ;;  %v2303_v52 = vpop.f32.mrf.mxu1  ;;  %v1893_v63 = vadd.f32 %v1892_v45, %v5767_v42 }
 0x2e7   :  { %v5022_v54 = vpop.eup %5021  ;;  %v1894_v55 = vpop.f32.mrf.mxu0  ;;  %2702 = vmatprep.mubr.bf16.mxu0 %v5020_v48  ;;  %5033 = vtanh.bf16 %v2374_v46  ;;  %v2375_v56 = vpack.c.bf16 %v2300_v19, %v2296_v37  ;;  %v2304_v60 = vadd.f32 %v2303_v52, %v5777_v57 }
 0x2e8   :  { %5035 = vtanh.bf16 %v1956_v50  ;;  %2703 = vmatmul.mubr.bf16.gmra.mxu0 %v5016_v3  ;;  %v2305_v58 = vpop.f32.mrf.mxu1  ;;  %3113 = vmatprep.mubr.bf16.mxu1 %v5022_v54  ;;  %v1895_v7 = vadd.f32 %v1894_v55, %v5770_v44 }
 0x2e9   :  { %v1896_v59 = vpop.f32.mrf.mxu0  ;;  %5037 = vtanh.bf16 %v2375_v56  ;;  %3114 = vmatmul.mubr.bf16.gmra.mxu1 %v5018_v43  ;;  %v2306_v27 = vadd.f32 %v2305_v58, %v5780_v62 }
 0x2ea   :  { %v1897_v1 = vadd.f32 %v1896_v59, %v5767_v42  ;;  %v2307_v2 = vpop.f32.mrf.mxu1 }
 0x2eb   :  { %v1898_v4 = vpop.f32.mrf.mxu0  ;;  %v2308_v5 = vadd.f32 %v2307_v2, %v5777_v57 }
 0x2ec   :  { %v5024_v6 = vpop.eup %5023  ;;  %v1957_v8 = vpack.c.bf16 %v1897_v1, %v1893_v63  ;;  %v1899_v9 = vadd.f32 %v1898_v4, %v5770_v44  ;;  %v2309_v31 = vpop.f32.mrf.mxu1 }
 0x2ed   :  { %v5026_v10 = vpop.eup %5025  ;;  %v1902_v11 = vpop.f32.mrf.mxu0  ;;  %v2376_v12 = vpack.c.bf16 %v2308_v5, %v2304_v60  ;;  %v2310_v13 = vadd.f32 %v2309_v31, %v5780_v62 }
 0x2ee   :  { %v5028_v14 = vpop.eup %5027  ;;  %5039 = vtanh.bf16 %v1957_v8  ;;  %v1958_v15 = vpack.c.bf16 %v1899_v9, %v1895_v7  ;;  %v2313_v16 = vpop.f32.mrf.mxu1  ;;  %v1903_v0 = vadd.f32 %v1902_v11, %v5767_v42 }
 0x2ef   :  { %v5030_v17 = vpop.eup %5029  ;;  %v1904_v18 = vpop.f32.mrf.mxu0  ;;  %2712 = vmatprep.mubr.bf16.mxu0 %v5028_v14  ;;  %5041 = vtanh.bf16 %v2376_v12  ;;  %v2377_v20 = vpack.c.bf16 %v2310_v13, %v2306_v27  ;;  %v2314_v53 = vadd.f32 %v2313_v16, %v5777_v57 }
 0x2f0   :  { %5043 = vtanh.bf16 %v1958_v15  ;;  %2713 = vmatmul.mubr.bf16.gmra.mxu0 %v5024_v6  ;;  %v2315_v21 = vpop.f32.mrf.mxu1  ;;  %3123 = vmatprep.mubr.bf16.mxu1 %v5030_v17  ;;  %v1905_v30 = vadd.f32 %v1904_v18, %v5770_v44 }
 0x2f1   :  { %v1906_v22 = vpop.f32.mrf.mxu0  ;;  %5045 = vtanh.bf16 %v2377_v20  ;;  %3124 = vmatmul.mubr.bf16.gmra.mxu1 %v5026_v10  ;;  %v2316_v26 = vadd.f32 %v2315_v21, %v5780_v62 }
 0x2f2   :  { %v1907_v23 = vadd.f32 %v1906_v22, %v5767_v42  ;;  %v2317_v24 = vpop.f32.mrf.mxu1 }
 0x2f3   :  { %v1908_v25 = vpop.f32.mrf.mxu0  ;;  %v2318_v28 = vadd.f32 %v2317_v24, %v5777_v57 }
 0x2f4   :  { %v5032_v29 = vpop.eup %5031  ;;  %v1959_v32 = vpack.c.bf16 %v1907_v23, %v1903_v0  ;;  %v1909_v33 = vadd.f32 %v1908_v25, %v5770_v44  ;;  %v2319_v34 = vpop.f32.mrf.mxu1 }
 0x2f5   :  { %v5034_v35 = vpop.eup %5033  ;;  %v1912_v61 = vpop.f32.mrf.mxu0  ;;  %v2378_v36 = vpack.c.bf16 %v2318_v28, %v2314_v53  ;;  %v2320_v37 = vadd.f32 %v2319_v34, %v5780_v62 }
 0x2f6   :  { %v5036_v38 = vpop.eup %5035  ;;  %5047 = vtanh.bf16 %v1959_v32  ;;  %v1960_v3 = vpack.c.bf16 %v1909_v33, %v1905_v30  ;;  %v2323_v39 = vpop.f32.mrf.mxu1  ;;  %v1913_v19 = vadd.f32 %v1912_v61, %v5767_v42 }
 0x2f7   :  { %v5038_v40 = vpop.eup %5037  ;;  %v1914_v41 = vpop.f32.mrf.mxu0  ;;  %2722 = vmatprep.mubr.bf16.mxu0 %v5036_v38  ;;  %5049 = vtanh.bf16 %v2378_v36  ;;  %v2379_v51 = vpack.c.bf16 %v2320_v37, %v2316_v26  ;;  %v2324_v46 = vadd.f32 %v2323_v39, %v5777_v57 }
 0x2f8   :  { %5051 = vtanh.bf16 %v1960_v3  ;;  %2723 = vmatmul.mubr.bf16.gmra.mxu0 %v5032_v29  ;;  %v2325_v43 = vpop.f32.mrf.mxu1  ;;  %3133 = vmatprep.mubr.bf16.mxu1 %v5038_v40  ;;  %v1915_v58 = vadd.f32 %v1914_v41, %v5770_v44 }
 0x2f9   :  { %v1916_v45 = vpop.f32.mrf.mxu0  ;;  %5053 = vtanh.bf16 %v2379_v51  ;;  %3134 = vmatmul.mubr.bf16.gmra.mxu1 %v5034_v35  ;;  %v2326_v54 = vadd.f32 %v2325_v43, %v5780_v62  ;;  %v4765_v51 = vld [vmem:[#allocation5 + $0x50] sm:$0xff]  }
 0x2fa   :  { %v1917_v48 = vadd.f32 %v1916_v45, %v5767_v42  ;;  %v2327_v50 = vpop.f32.mrf.mxu1  ;;  %4350 = vmatprep.subr.bf16.mxu0 %v4765_v51  ;;  %4439 = vmatprep.subr.bf16.mxu1 %v4765_v51 }
 0x2fb   :  { %v1918_v52 = vpop.f32.mrf.mxu0  ;;  %v2328_v55 = vadd.f32 %v2327_v50, %v5777_v57 }
 0x2fc   :  { %v5040_v56 = vpop.eup %5039  ;;  %v1961_v59 = vpack.c.bf16 %v1917_v48, %v1913_v19  ;;  %v1919_v60 = vadd.f32 %v1918_v52, %v5770_v44  ;;  %v2329_v63 = vpop.f32.mrf.mxu1 }
 0x2fd   :  { %v5042_v1 = vpop.eup %5041  ;;  %v1922_v2 = vpop.f32.mrf.mxu0  ;;  %v2380_v4 = vpack.c.bf16 %v2328_v55, %v2324_v46  ;;  %v2330_v27 = vadd.f32 %v2329_v63, %v5780_v62 }
 0x2fe   :  { %v5044_v5 = vpop.eup %5043  ;;  %5055 = vtanh.bf16 %v1961_v59  ;;  %v1962_v6 = vpack.c.bf16 %v1919_v60, %v1915_v58  ;;  %v2333_v7 = vpop.f32.mrf.mxu1  ;;  %v1923_v13 = vadd.f32 %v1922_v2, %v5767_v42  ;;  %v4766_v58 = vld [vmem:[#allocation5 + $0x10] sm:$0xff]  }
 0x2ff   :  { %v5046_v8 = vpop.eup %5045  ;;  %v1924_v9 = vpop.f32.mrf.mxu0  ;;  %2732 = vmatprep.mubr.bf16.mxu0 %v5044_v5  ;;  %5057 = vtanh.bf16 %v2380_v4  ;;  %v2381_v31 = vpack.c.bf16 %v2330_v27, %v2326_v54  ;;  %v2334_v12 = vadd.f32 %v2333_v7, %v5777_v57  ;;  %4351 = vmatpush3.bf16.msra.mxu0 %v4766_v58  ;;  %v4768_v4 = vld [vmem:[#allocation5 + $0x8] sm:$0xff]  }
 0x300   :  { %5059 = vtanh.bf16 %v1962_v6  ;;  %2733 = vmatmul.mubr.bf16.gmra.mxu0 %v5040_v56  ;;  %v2335_v10 = vpop.f32.mrf.mxu1  ;;  %3143 = vmatprep.mubr.bf16.mxu1 %v5046_v8  ;;  %v1925_v21 = vadd.f32 %v1924_v9, %v5770_v44 }
 0x301   :  { %v1926_v11 = vpop.f32.mrf.mxu0  ;;  %5061 = vtanh.bf16 %v2381_v31  ;;  %3144 = vmatmul.mubr.bf16.gmra.mxu1 %v5042_v1  ;;  %v2336_v17 = vadd.f32 %v2335_v10, %v5780_v62  ;;  %v4767_v1 = vld [vmem:[#allocation5 + $0x48] sm:$0xff]   ;;  %v4769_v10 = vld [vmem:[#allocation5 + $0x40] sm:$0xff]  }
 0x302   :  { %v1927_v14 = vadd.f32 %v1926_v11, %v5767_v42  ;;  %v2337_v15 = vpop.f32.mrf.mxu1  ;;  %4447 = vmatpush3.bf16.msra.mxu1 %v4766_v58  ;;  %4352 = vmatprep.subr.bf16.mxu0 %v4767_v1 }
 0x303   :  { %v1928_v16 = vpop.f32.mrf.mxu0  ;;  %v2338_v18 = vadd.f32 %v2337_v15, %v5777_v57  ;;  %4440 = vmatprep.subr.bf16.mxu1 %v4767_v1  ;;  %4353 = vmatpush3.bf16.msra.mxu0 %v4768_v4 }
 0x304   :  { %v5048_v20 = vpop.eup %5047  ;;  %v1963_v22 = vpack.c.bf16 %v1927_v14, %v1923_v13  ;;  %v1929_v53 = vadd.f32 %v1928_v16, %v5770_v44  ;;  %v2339_v0 = vpop.f32.mrf.mxu1  ;;  %4354 = vmatprep.subr.bf16.mxu0 %v4769_v10 }
 0x305   :  { %v5050_v23 = vpop.eup %5049  ;;  %v1932_v24 = vpop.f32.mrf.mxu0  ;;  %v2382_v25 = vpack.c.bf16 %v2338_v18, %v2334_v12  ;;  %v2340_v26 = vadd.f32 %v2339_v0, %v5780_v62  ;;  %v4770_v12 = vld [vmem:[#allocation5] sm:$0xff]  }
 0x306   :  { %v5052_v28 = vpop.eup %5051  ;;  %5063 = vtanh.bf16 %v1963_v22  ;;  %v1964_v29 = vpack.c.bf16 %v1929_v53, %v1925_v21  ;;  %v2343_v30 = vpop.f32.mrf.mxu1  ;;  %v1933_v37 = vadd.f32 %v1932_v24, %v5767_v42  ;;  %4448 = vmatpush3.bf16.msra.mxu1 %v4768_v4 }
 0x307   :  { %v5054_v32 = vpop.eup %5053  ;;  %v1934_v33 = vpop.f32.mrf.mxu0  ;;  %2742 = vmatprep.mubr.bf16.mxu0 %v5052_v28  ;;  %5065 = vtanh.bf16 %v2382_v25  ;;  %v2383_v34 = vpack.c.bf16 %v2340_v26, %v2336_v17  ;;  %v2344_v36 = vadd.f32 %v2343_v30, %v5777_v57  ;;  %4355 = vmatpush3.bf16.msra.mxu0 %v4770_v12  ;;  %v2869_v25 = vld [vmem:[#allocation7 + $0x7] ss:$8 sm:$0x3] }
 0x308   :  { %5067 = vtanh.bf16 %v1964_v29  ;;  %2743 = vmatmul.mubr.bf16.gmra.mxu0 %v5048_v20  ;;  %v2345_v35 = vpop.f32.mrf.mxu1  ;;  %3153 = vmatprep.mubr.bf16.mxu1 %v5054_v32  ;;  %v1935_v45 = vadd.f32 %v1934_v33, %v5770_v44  ;;  %v2448_v20 = vld [vmem:[#allocation7 + $0x4] ss:$8 sm:$0x3] }
 0x309   :  { %v1936_v61 = vpop.f32.mrf.mxu0  ;;  %5069 = vtanh.bf16 %v2383_v34  ;;  %3154 = vmatmul.mubr.bf16.gmra.mxu1 %v5050_v23  ;;  %v2346_v40 = vadd.f32 %v2345_v35, %v5780_v62  ;;  %4441 = vmatprep.subr.bf16.mxu1 %v4769_v10  ;;  %v5911_v22 = vrot.slane %v2448_v20, %v5530_v47  ;;  %v5914_v0 = vrot.slane %v2448_v20, %v5532_v49 }
 0x30a   :  { %v1937_v38 = vadd.f32 %v1936_v61, %v5767_v42  ;;  %v2347_v3 = vpop.f32.mrf.mxu1  ;;  %4449 = vmatpush3.bf16.msra.mxu1 %v4770_v12  ;;  %v5921_v34 = vrot.slane %v2869_v25, %v5530_v47 }
 0x30b   :  { %v1938_v39 = vpop.f32.mrf.mxu0  ;;  %v2348_v41 = vadd.f32 %v2347_v3, %v5777_v57 }
 0x30c   :  { %v5056_v43 = vpop.eup %5055  ;;  %v1965_v46 = vpack.c.bf16 %v1937_v38, %v1933_v37  ;;  %v1939_v19 = vadd.f32 %v1938_v39, %v5770_v44  ;;  %v2349_v48 = vpop.f32.mrf.mxu1  ;;  %v5924_v37 = vrot.slane %v2869_v25, %v5532_v49 }
 0x30d   :  { %v5058_v50 = vpop.eup %5057  ;;  %v2384_v52 = vpack.c.bf16 %v2348_v41, %v2344_v36  ;;  %v2350_v54 = vadd.f32 %v2349_v48, %v5780_v62 }
 0x30e   :  { %v5060_v42 = vpop.eup %5059  ;;  %5071 = vtanh.bf16 %v1965_v46  ;;  %v1966_v55 = vpack.c.bf16 %v1939_v19, %v1935_v45  ;;  %v2353_v56 = vpop.f32.mrf.mxu1 }
 0x30f   :  { %v5062_v59 = vpop.eup %5061  ;;  %2752 = vmatprep.mubr.bf16.mxu0 %v5060_v42  ;;  %5073 = vtanh.bf16 %v2384_v52  ;;  %v2385_v60 = vpack.c.bf16 %v2350_v54, %v2346_v40  ;;  %v2354_v44 = vadd.f32 %v2353_v56, %v5777_v57 }
 0x310   :  { %5075 = vtanh.bf16 %v1966_v55  ;;  %2753 = vmatmul.mubr.bf16.gmra.mxu0 %v5056_v43  ;;  %v2355_v63 = vpop.f32.mrf.mxu1  ;;  %3163 = vmatprep.mubr.bf16.mxu1 %v5062_v59 }
 0x311   :  { %5077 = vtanh.bf16 %v2385_v60  ;;  %3164 = vmatmul.mubr.bf16.gmra.mxu1 %v5058_v50  ;;  %v2356_v27 = vadd.f32 %v2355_v63, %v5780_v62 }
 0x312   :  { %v2357_v2 = vpop.f32.mrf.mxu1 }
 0x313   :  { %v2358_v5 = vadd.f32 %v2357_v2, %v5777_v57 }
 0x314   :  { %v5064_v6 = vpop.eup %5063  ;;  %v2359_v7 = vpop.f32.mrf.mxu1 }
 0x315   :  { %v5066_v8 = vpop.eup %5065  ;;  %v2386_v9 = vpack.c.bf16 %v2358_v5, %v2354_v44  ;;  %v2360_v31 = vadd.f32 %v2359_v7, %v5780_v62 }
 0x316   :  { %v5068_v11 = vpop.eup %5067 }
 0x317   :  { %v5070_v13 = vpop.eup %5069  ;;  %2762 = vmatprep.mubr.bf16.mxu0 %v5068_v11  ;;  %v2387_v14 = vpack.c.bf16 %v2360_v31, %v2356_v27  ;;  %5079 = vtanh.bf16 %v2386_v9 }
 0x318   :  { %2763 = vmatmul.mubr.bf16.gmra.mxu0 %v5064_v6  ;;  %3173 = vmatprep.mubr.bf16.mxu1 %v5070_v13 }
 0x319   :  { %5081 = vtanh.bf16 %v2387_v14  ;;  %3174 = vmatmul.mubr.bf16.gmra.mxu1 %v5066_v8 }
 0x31c   :  { %v5072_v57 = vpop.eup %5071 }
 0x31d   :  { %v5074_v15 = vpop.eup %5073 }
 0x31e   :  { %v5076_v62 = vpop.eup %5075 }
 0x31f   :  { %v5078_v16 = vpop.eup %5077  ;;  %2772 = vmatprep.mubr.bf16.mxu0 %v5076_v62 }
 0x320   :  { %2773 = vmatmul.mubr.bf16.gmra.mxu0 %v5072_v57  ;;  %3183 = vmatprep.mubr.bf16.mxu1 %v5078_v16 }
 0x321   :  { %3184 = vmatmul.mubr.bf16.gmra.mxu1 %v5074_v15 }
 0x325   :  { %v5080_v17 = vpop.eup %5079 }
 0x327   :  { %v5082_v18 = vpop.eup %5081 }
 0x328   :  { %3193 = vmatprep.mubr.bf16.mxu1 %v5082_v18 }
 0x329   :  { %3194 = vmatmul.mubr.bf16.gmra.mxu1 %v5080_v17 }
 0x380   :  { %v2654_v21 = vpop.f32.mrf.mxu0 }
 0x381   :  { %v2655_v26 = vadd.f32 %v2654_v21, %v5911_v22 }
 0x382   :  { %v2656_v53 = vpop.f32.mrf.mxu0 }
 0x383   :  { %v2657_v29 = vadd.f32 %v2656_v53, %v5914_v0  ;;  %v3605_v53 = vld [vmem:[#allocation7 + $0x10] ss:$8 sm:$0x3] }
 0x384   :  { %v2658_v23 = vpop.f32.mrf.mxu0 }
 0x385   :  { %v2659_v24 = vadd.f32 %v2658_v23, %v5911_v22 }
 0x386   :  { %v2660_v28 = vpop.f32.mrf.mxu0 }
 0x387   :  { %v2661_v30 = vadd.f32 %v2660_v28, %v5914_v0  ;;  %v2783_v32 = vpack.c.bf16 %v2659_v24, %v2655_v26 }
 0x388   :  { %v2664_v33 = vpop.f32.mrf.mxu0 }
 0x389   :  { %v2784_v35 = vpack.c.bf16 %v2661_v30, %v2657_v29  ;;  %v3075_v61 = vpop.f32.mrf.mxu1  ;;  %v2665_v40 = vadd.f32 %v2664_v33, %v5911_v22 }
 0x38a   :  { %v2666_v36 = vpop.f32.mrf.mxu0  ;;  %v3076_v39 = vadd.f32 %v3075_v61, %v5921_v34 }
 0x38b   :  { %5083 = vtanh.bf16 %v2784_v35  ;;  %v3077_v38 = vpop.f32.mrf.mxu1  ;;  %v2667_v19 = vadd.f32 %v2666_v36, %v5914_v0  ;;  %v5950_v36 = vrot.slane %v3605_v53, %v5530_v47 }
 0x38c   :  { %5085 = vtanh.bf16 %v2783_v32  ;;  %v2668_v3 = vpop.f32.mrf.mxu0  ;;  %v3078_v45 = vadd.f32 %v3077_v38, %v5924_v37 }
 0x38d   :  { %v2669_v41 = vadd.f32 %v2668_v3, %v5911_v22  ;;  %v3079_v51 = vpop.f32.mrf.mxu1 }
 0x38e   :  { %v2670_v43 = vpop.f32.mrf.mxu0  ;;  %v3080_v46 = vadd.f32 %v3079_v51, %v5921_v34 }
 0x38f   :  { %v2785_v48 = vpack.c.bf16 %v2669_v41, %v2665_v40  ;;  %v2671_v50 = vadd.f32 %v2670_v43, %v5914_v0  ;;  %v3081_v52 = vpop.f32.mrf.mxu1 }
 0x390   :  { %v2674_v54 = vpop.f32.mrf.mxu0  ;;  %v3204_v42 = vpack.c.bf16 %v3080_v46, %v3076_v39  ;;  %v3082_v55 = vadd.f32 %v3081_v52, %v5924_v37  ;;  %v5954_v46 = vrot.slane %v3605_v53, %v5532_v49 }
 0x391   :  { %5087 = vtanh.bf16 %v2785_v48  ;;  %v2786_v56 = vpack.c.bf16 %v2671_v50, %v2667_v19  ;;  %v3085_v58 = vpop.f32.mrf.mxu1  ;;  %v2675_v2 = vadd.f32 %v2674_v54, %v5911_v22 }
 0x392   :  { %v2676_v59 = vpop.f32.mrf.mxu0  ;;  %5089 = vtanh.bf16 %v3204_v42  ;;  %v3205_v60 = vpack.c.bf16 %v3082_v55, %v3078_v45  ;;  %v3086_v1 = vadd.f32 %v3085_v58, %v5921_v34 }
 0x393   :  { %5091 = vtanh.bf16 %v2786_v56  ;;  %v3087_v63 = vpop.f32.mrf.mxu1  ;;  %v2677_v8 = vadd.f32 %v2676_v59, %v5914_v0 }
 0x394   :  { %v2678_v44 = vpop.f32.mrf.mxu0  ;;  %5093 = vtanh.bf16 %v3205_v60  ;;  %v3088_v6 = vadd.f32 %v3087_v63, %v5924_v37 }
 0x395   :  { %v2679_v4 = vadd.f32 %v2678_v44, %v5911_v22  ;;  %v3089_v27 = vpop.f32.mrf.mxu1 }
 0x396   :  { %v2680_v5 = vpop.f32.mrf.mxu0  ;;  %v3090_v7 = vadd.f32 %v3089_v27, %v5921_v34 }
 0x397   :  { %v2787_v9 = vpack.c.bf16 %v2679_v4, %v2675_v2  ;;  %v2681_v31 = vadd.f32 %v2680_v5, %v5914_v0  ;;  %v3091_v10 = vpop.f32.mrf.mxu1 }
 0x398   :  { %v2684_v11 = vpop.f32.mrf.mxu0  ;;  %v3206_v12 = vpack.c.bf16 %v3090_v7, %v3086_v1  ;;  %v3092_v13 = vadd.f32 %v3091_v10, %v5924_v37 }
 0x399   :  { %v5084_v14 = vpop.eup %5083  ;;  %5095 = vtanh.bf16 %v2787_v9  ;;  %v2788_v57 = vpack.c.bf16 %v2681_v31, %v2677_v8  ;;  %v3095_v15 = vpop.f32.mrf.mxu1  ;;  %v2685_v23 = vadd.f32 %v2684_v11, %v5911_v22 }
 0x39a   :  { %v5086_v62 = vpop.eup %5085  ;;  %v2686_v16 = vpop.f32.mrf.mxu0  ;;  %3421 = vmatprep.mubr.bf16.mxu0 %v5084_v14  ;;  %5097 = vtanh.bf16 %v3206_v12  ;;  %v3207_v17 = vpack.c.bf16 %v3092_v13, %v3088_v6  ;;  %v3096_v21 = vadd.f32 %v3095_v15, %v5921_v34 }
 0x39b   :  { %5099 = vtanh.bf16 %v2788_v57  ;;  %3422 = vmatmul.mubr.bf16.vlgmr.msra.gmra.mxu0 %v5086_v62  ;;  %v3097_v18 = vpop.f32.mrf.mxu1  ;;  %v2687_v32 = vadd.f32 %v2686_v16, %v5914_v0 }
 0x39c   :  { %v2688_v20 = vpop.f32.mrf.mxu0  ;;  %5101 = vtanh.bf16 %v3207_v17  ;;  %v3098_v28 = vadd.f32 %v3097_v18, %v5924_v37 }
 0x39d   :  { %v2689_v24 = vadd.f32 %v2688_v20, %v5911_v22  ;;  %v3099_v25 = vpop.f32.mrf.mxu1 }
 0x39e   :  { %v2690_v26 = vpop.f32.mrf.mxu0  ;;  %v3100_v29 = vadd.f32 %v3099_v25, %v5921_v34 }
 0x39f   :  { %v5088_v30 = vpop.eup %5087  ;;  %v2789_v33 = vpack.c.bf16 %v2689_v24, %v2685_v23  ;;  %v2691_v35 = vadd.f32 %v2690_v26, %v5914_v0  ;;  %v3101_v61 = vpop.f32.mrf.mxu1 }
 0x3a0   :  { %v5090_v38 = vpop.eup %5089  ;;  %v2694_v3 = vpop.f32.mrf.mxu0  ;;  %v3208_v39 = vpack.c.bf16 %v3100_v29, %v3096_v21  ;;  %v3102_v40 = vadd.f32 %v3101_v61, %v5924_v37 }
 0x3a1   :  { %v5092_v41 = vpop.eup %5091  ;;  %5103 = vtanh.bf16 %v2789_v33  ;;  %v2790_v51 = vpack.c.bf16 %v2691_v35, %v2687_v32  ;;  %v3105_v43 = vpop.f32.mrf.mxu1  ;;  %v3552_v45 = vunpack.c.l.bf16 %v5090_v38  ;;  %v3554_v47 = vunpack.c.h.bf16 %v5090_v38 }
 0x3a2   :  { %v5094_v19 = vpop.eup %5093  ;;  %v2696_v48 = vpop.f32.mrf.mxu0  ;;  %3429 = vmatprep.mubr.bf16.mxu0 %v5092_v41  ;;  %5105 = vtanh.bf16 %v3208_v39  ;;  %v3209_v50 = vpack.c.bf16 %v3102_v40, %v3098_v28  ;;  %v3106_v56 = vadd.f32 %v3105_v43, %v5921_v34  ;;  %v2695_v49 = vadd.f32 %v2694_v3, %v5911_v22 }
 0x3a3   :  { %5107 = vtanh.bf16 %v2790_v51  ;;  %3430 = vmatmul.mubr.bf16.gmra.mxu0 %v5088_v30  ;;  %v3107_v52 = vpop.f32.mrf.mxu1  ;;  %v3553_v54 = vunpack.c.l.bf16 %v5094_v19  ;;  %v3617_v42 = vmul.f32 %v5950_v36, %v3552_v45  ;;  %v3555_v58 = vunpack.c.h.bf16 %v5094_v19 }
 0x3a4   :  { %v2698_v55 = vpop.f32.mrf.mxu0  ;;  %5109 = vtanh.bf16 %v3209_v50  ;;  %v3619_v44 = vmul.f32 %v5950_v36, %v3554_v47  ;;  %v3108_v2 = vadd.f32 %v3107_v52, %v5924_v37  ;;  %v2697_v6 = vadd.f32 %v2696_v48, %v5914_v0 }
 0x3a5   :  { %v2699_v59 = vadd.f32 %v2698_v55, %v5911_v22  ;;  %v3109_v60 = vpop.f32.mrf.mxu1  ;;  %v3618_v63 = vmul.f32 %v5954_v46, %v3553_v54  ;;  %v3620_v27 = vmul.f32 %v5954_v46, %v3555_v58 }
 0x3a6   :  { %v2700_v1 = vpop.f32.mrf.mxu0  ;;  %v3110_v4 = vadd.f32 %v3109_v60, %v5921_v34 }
 0x3a7   :  { %v5096_v5 = vpop.eup %5095  ;;  %v2791_v7 = vpack.c.bf16 %v2699_v59, %v2695_v49  ;;  %v2701_v8 = vadd.f32 %v2700_v1, %v5914_v0  ;;  %v3111_v9 = vpop.f32.mrf.mxu1  ;;  %v3669_v31 = vadd.f32 %v3618_v63, %v3617_v42  ;;  %v3672_v62 = vadd.f32 %v3620_v27, %v3619_v44 }
 0x3a8   :  { %v5098_v10 = vpop.eup %5097  ;;  %v2704_v11 = vpop.f32.mrf.mxu0  ;;  %v3210_v12 = vpack.c.bf16 %v3110_v4, %v3106_v56  ;;  %v3112_v13 = vadd.f32 %v3111_v9, %v5924_v37 }
 0x3a9   :  { %v5100_v14 = vpop.eup %5099  ;;  %5111 = vtanh.bf16 %v2791_v7  ;;  %v2792_v57 = vpack.c.bf16 %v2701_v8, %v2697_v6  ;;  %v3115_v15 = vpop.f32.mrf.mxu1  ;;  %3670 = vadd.xlane.f32.xlu0 %v3669_v31  ;;  %v3556_v16 = vunpack.c.l.bf16 %v5098_v10  ;;  %v3558_v21 = vunpack.c.h.bf16 %v5098_v10 }
 0x3aa   :  { %v5102_v17 = vpop.eup %5101  ;;  %v2706_v18 = vpop.f32.mrf.mxu0  ;;  %3437 = vmatprep.mubr.bf16.mxu0 %v5100_v14  ;;  %5113 = vtanh.bf16 %v3210_v12  ;;  %v3211_v20 = vpack.c.bf16 %v3112_v13, %v3108_v2  ;;  %v3116_v26 = vadd.f32 %v3115_v15, %v5921_v34  ;;  %v2705_v29 = vadd.f32 %v2704_v11, %v5911_v22 }
 0x3ab   :  { %5115 = vtanh.bf16 %v2792_v57  ;;  %3438 = vmatmul.mubr.bf16.gmra.mxu0 %v5096_v5  ;;  %v3117_v53 = vpop.f32.mrf.mxu1  ;;  %v3557_v23 = vunpack.c.l.bf16 %v5102_v17  ;;  %v3621_v24 = vmul.f32 %v5950_v36, %v3556_v16  ;;  %v3559_v28 = vunpack.c.h.bf16 %v5102_v17 }
 0x3ac   :  { %v2708_v25 = vpop.f32.mrf.mxu0  ;;  %5117 = vtanh.bf16 %v3211_v20  ;;  %v3623_v35 = vmul.f32 %v5950_v36, %v3558_v21  ;;  %v3118_v38 = vadd.f32 %v3117_v53, %v5924_v37  ;;  %v2707_v41 = vadd.f32 %v2706_v18, %v5914_v0 }
 0x3ad   :  { %v2709_v30 = vadd.f32 %v2708_v25, %v5911_v22  ;;  %v3119_v32 = vpop.f32.mrf.mxu1  ;;  %3673 = vadd.xlane.f32.xlu0 %v3672_v62  ;;  %v3622_v33 = vmul.f32 %v5954_v46, %v3557_v23  ;;  %v3624_v39 = vmul.f32 %v5954_v46, %v3559_v28 }
 0x3ae   :  { %v2710_v61 = vpop.f32.mrf.mxu0  ;;  %v3120_v3 = vadd.f32 %v3119_v32, %v5921_v34 }
 0x3af   :  { %v5104_v40 = vpop.eup %5103  ;;  %v2793_v51 = vpack.c.bf16 %v2709_v30, %v2705_v29  ;;  %v2711_v43 = vadd.f32 %v2710_v61, %v5914_v0  ;;  %v3121_v45 = vpop.f32.mrf.mxu1  ;;  %v3675_v19 = vadd.f32 %v3622_v33, %v3621_v24  ;;  %v3678_v56 = vadd.f32 %v3624_v39, %v3623_v35 }
 0x3b0   :  { %v5106_v48 = vpop.eup %5105  ;;  %v2714_v50 = vpop.f32.mrf.mxu0  ;;  %v3212_v47 = vpack.c.bf16 %v3120_v3, %v3116_v26  ;;  %v3122_v52 = vadd.f32 %v3121_v45, %v5924_v37 }
 0x3b1   :  { %v5108_v54 = vpop.eup %5107  ;;  %5119 = vtanh.bf16 %v2793_v51  ;;  %v2794_v42 = vpack.c.bf16 %v2711_v43, %v2707_v41  ;;  %v3125_v55 = vpop.f32.mrf.mxu1  ;;  %3676 = vadd.xlane.f32.xlu1 %v3675_v19  ;;  %v3560_v58 = vunpack.c.l.bf16 %v5106_v48  ;;  %v3562_v63 = vunpack.c.h.bf16 %v5106_v48 }
 0x3b2   :  { %v5110_v49 = vpop.eup %5109  ;;  %v2716_v59 = vpop.f32.mrf.mxu0  ;;  %3445 = vmatprep.mubr.bf16.mxu0 %v5108_v54  ;;  %5121 = vtanh.bf16 %v3212_v47  ;;  %v3213_v60 = vpack.c.bf16 %v3122_v52, %v3118_v38  ;;  %v3126_v27 = vadd.f32 %v3125_v55, %v5921_v34  ;;  %v2715_v7 = vadd.f32 %v2714_v50, %v5911_v22 }
 0x3b3   :  { %5123 = vtanh.bf16 %v2794_v42  ;;  %3446 = vmatmul.mubr.bf16.gmra.mxu0 %v5104_v40  ;;  %v3127_v44 = vpop.f32.mrf.mxu1  ;;  %v3561_v1 = vunpack.c.l.bf16 %v5110_v49  ;;  %v3625_v2 = vmul.f32 %v5950_v36, %v3560_v58  ;;  %v3563_v5 = vunpack.c.h.bf16 %v5110_v49 }
 0x3b4   :  { %v2718_v4 = vpop.f32.mrf.mxu0  ;;  %5125 = vtanh.bf16 %v3213_v60  ;;  %v3627_v6 = vmul.f32 %v5950_v36, %v3562_v63  ;;  %v3128_v11 = vadd.f32 %v3127_v44, %v5924_v37  ;;  %v2717_v57 = vadd.f32 %v2716_v59, %v5914_v0 }
 0x3b5   :  { %v2719_v8 = vadd.f32 %v2718_v4, %v5911_v22  ;;  %v3129_v9 = vpop.f32.mrf.mxu1  ;;  %3679 = vadd.xlane.f32.xlu1 %v3678_v56  ;;  %v3626_v31 = vmul.f32 %v5954_v46, %v3561_v1  ;;  %v3628_v13 = vmul.f32 %v5954_v46, %v3563_v5 }
 0x3b6   :  { %v2720_v10 = vpop.f32.mrf.mxu0  ;;  %v3130_v12 = vadd.f32 %v3129_v9, %v5921_v34 }
 0x3b7   :  { %v5112_v14 = vpop.eup %5111  ;;  %v2795_v15 = vpack.c.bf16 %v2719_v8, %v2715_v7  ;;  %v2721_v62 = vadd.f32 %v2720_v10, %v5914_v0  ;;  %v3131_v16 = vpop.f32.mrf.mxu1  ;;  %v3681_v17 = vadd.f32 %v3626_v31, %v3625_v2  ;;  %v3684_v23 = vadd.f32 %v3628_v13, %v3627_v6 }
 0x3b8   :  { %v5114_v18 = vpop.eup %5113  ;;  %v2724_v20 = vpop.f32.mrf.mxu0  ;;  %v3214_v21 = vpack.c.bf16 %v3130_v12, %v3126_v27  ;;  %v3132_v53 = vadd.f32 %v3131_v16, %v5924_v37 }
 0x3b9   :  { %v5116_v24 = vpop.eup %5115  ;;  %5127 = vtanh.bf16 %v2795_v15  ;;  %v2796_v25 = vpack.c.bf16 %v2721_v62, %v2717_v57  ;;  %v3135_v26 = vpop.f32.mrf.mxu1  ;;  %3682 = vadd.xlane.f32.xlu0 %v3681_v17  ;;  %v3564_v28 = vunpack.c.l.bf16 %v5114_v18  ;;  %3685 = vadd.xlane.f32.xlu1 %v3684_v23  ;;  %v3566_v33 = vunpack.c.h.bf16 %v5114_v18 }
 0x3ba   :  { %v5118_v29 = vpop.eup %5117  ;;  %v2726_v30 = vpop.f32.mrf.mxu0  ;;  %3453 = vmatprep.mubr.bf16.mxu0 %v5116_v24  ;;  %5129 = vtanh.bf16 %v3214_v21  ;;  %v3215_v32 = vpack.c.bf16 %v3132_v53, %v3128_v11  ;;  %v3136_v39 = vadd.f32 %v3135_v26, %v5921_v34  ;;  %v2725_v51 = vadd.f32 %v2724_v20, %v5911_v22 }
 0x3bb   :  { %5131 = vtanh.bf16 %v2796_v25  ;;  %3454 = vmatmul.mubr.bf16.gmra.mxu0 %v5112_v14  ;;  %v3137_v35 = vpop.f32.mrf.mxu1  ;;  %v3565_v61 = vunpack.c.l.bf16 %v5118_v29  ;;  %v3629_v38 = vmul.f32 %v5950_v36, %v3564_v28  ;;  %v3567_v40 = vunpack.c.h.bf16 %v5118_v29 }
 0x3bc   :  { %v2728_v3 = vpop.f32.mrf.mxu0  ;;  %5133 = vtanh.bf16 %v3215_v32  ;;  %v3631_v41 = vmul.f32 %v5950_v36, %v3566_v33  ;;  %v3138_v50 = vadd.f32 %v3137_v35, %v5924_v37  ;;  %v2727_v42 = vadd.f32 %v2726_v30, %v5914_v0 }
 0x3bd   :  { %v2729_v43 = vadd.f32 %v2728_v3, %v5911_v22  ;;  %v3139_v45 = vpop.f32.mrf.mxu1  ;;  %v3630_v19 = vmul.f32 %v5954_v46, %v3565_v61  ;;  %v3632_v52 = vmul.f32 %v5954_v46, %v3567_v40 }
 0x3be   :  { %v2730_v48 = vpop.f32.mrf.mxu0  ;;  %v3140_v47 = vadd.f32 %v3139_v45, %v5921_v34 }
 0x3bf   :  { %v5120_v54 = vpop.eup %5119  ;;  %v2797_v55 = vpack.c.bf16 %v2729_v43, %v2725_v51  ;;  %v2731_v56 = vadd.f32 %v2730_v48, %v5914_v0  ;;  %v3141_v58 = vpop.f32.mrf.mxu1  ;;  %v3687_v49 = vadd.f32 %v3630_v19, %v3629_v38  ;;  %v3690_v1 = vadd.f32 %v3632_v52, %v3631_v41 }
 0x3c0   :  { %v5122_v59 = vpop.eup %5121  ;;  %v2734_v60 = vpop.f32.mrf.mxu0  ;;  %v3216_v63 = vpack.c.bf16 %v3140_v47, %v3136_v39  ;;  %v3142_v44 = vadd.f32 %v3141_v58, %v5924_v37 }
 0x3c1   :  { %v5124_v2 = vpop.eup %5123  ;;  %5135 = vtanh.bf16 %v2797_v55  ;;  %v2798_v4 = vpack.c.bf16 %v2731_v56, %v2727_v42  ;;  %v3145_v27 = vpop.f32.mrf.mxu1  ;;  %3688 = vadd.xlane.f32.xlu0 %v3687_v49  ;;  %v3568_v5 = vunpack.c.l.bf16 %v5122_v59  ;;  %3691 = vadd.xlane.f32.xlu1 %v3690_v1  ;;  %v3570_v9 = vunpack.c.h.bf16 %v5122_v59 }
 0x3c2   :  { %v5126_v6 = vpop.eup %5125  ;;  %v2736_v7 = vpop.f32.mrf.mxu0  ;;  %3461 = vmatprep.mubr.bf16.mxu0 %v5124_v2  ;;  %5137 = vtanh.bf16 %v3216_v63  ;;  %v3217_v8 = vpack.c.bf16 %v3142_v44, %v3138_v50  ;;  %v3146_v13 = vadd.f32 %v3145_v27, %v5921_v34  ;;  %v2735_v15 = vadd.f32 %v2734_v60, %v5911_v22 }
 0x3c3   :  { %5139 = vtanh.bf16 %v2798_v4  ;;  %3462 = vmatmul.mubr.bf16.gmra.mxu0 %v5120_v54  ;;  %v3147_v31 = vpop.f32.mrf.mxu1  ;;  %v3569_v10 = vunpack.c.l.bf16 %v5126_v6  ;;  %v3633_v11 = vmul.f32 %v5950_v36, %v3568_v5  ;;  %v3571_v14 = vunpack.c.h.bf16 %v5126_v6 }
 0x3c4   :  { %v2738_v12 = vpop.f32.mrf.mxu0  ;;  %5141 = vtanh.bf16 %v3217_v8  ;;  %v3635_v57 = vmul.f32 %v5950_v36, %v3570_v9  ;;  %v3148_v20 = vadd.f32 %v3147_v31, %v5924_v37  ;;  %v2737_v24 = vadd.f32 %v2736_v7, %v5914_v0 }
 0x3c5   :  { %v2739_v62 = vadd.f32 %v2738_v12, %v5911_v22  ;;  %v3149_v16 = vpop.f32.mrf.mxu1  ;;  %v3634_v17 = vmul.f32 %v5954_v46, %v3569_v10  ;;  %v3636_v53 = vmul.f32 %v5954_v46, %v3571_v14 }
 0x3c6   :  { %v2740_v18 = vpop.f32.mrf.mxu0  ;;  %v3150_v21 = vadd.f32 %v3149_v16, %v5921_v34 }
 0x3c7   :  { %v5128_v23 = vpop.eup %5127  ;;  %v2799_v25 = vpack.c.bf16 %v2739_v62, %v2735_v15  ;;  %v2741_v26 = vadd.f32 %v2740_v18, %v5914_v0  ;;  %v3151_v28 = vpop.f32.mrf.mxu1  ;;  %v3693_v29 = vadd.f32 %v3634_v17, %v3633_v11  ;;  %v3696_v61 = vadd.f32 %v3636_v53, %v3635_v57 }
 0x3c8   :  { %v5130_v30 = vpop.eup %5129  ;;  %v2744_v32 = vpop.f32.mrf.mxu0  ;;  %v3218_v33 = vpack.c.bf16 %v3150_v21, %v3146_v13  ;;  %v3152_v35 = vadd.f32 %v3151_v28, %v5924_v37 }
 0x3c9   :  { %v5132_v38 = vpop.eup %5131  ;;  %5143 = vtanh.bf16 %v2799_v25  ;;  %v2800_v3 = vpack.c.bf16 %v2741_v26, %v2737_v24  ;;  %v3155_v39 = vpop.f32.mrf.mxu1  ;;  %3694 = vadd.xlane.f32.xlu0 %v3693_v29  ;;  %v3572_v40 = vunpack.c.l.bf16 %v5130_v30  ;;  %3697 = vadd.xlane.f32.xlu1 %v3696_v61  ;;  %v3574_v45 = vunpack.c.h.bf16 %v5130_v30 }
 0x3ca   :  { %v5134_v41 = vpop.eup %5133  ;;  %v2746_v51 = vpop.f32.mrf.mxu0  ;;  %3469 = vmatprep.mubr.bf16.mxu0 %v5132_v38  ;;  %5145 = vtanh.bf16 %v3218_v33  ;;  %v3219_v43 = vpack.c.bf16 %v3152_v35, %v3148_v20  ;;  %v3156_v52 = vadd.f32 %v3155_v39, %v5921_v34  ;;  %v2745_v55 = vadd.f32 %v2744_v32, %v5911_v22 }
 0x3cb   :  { %5147 = vtanh.bf16 %v2800_v3  ;;  %3470 = vmatmul.mubr.bf16.gmra.mxu0 %v5128_v23  ;;  %v3157_v19 = vpop.f32.mrf.mxu1  ;;  %v3573_v48 = vunpack.c.l.bf16 %v5134_v41  ;;  %v3637_v50 = vmul.f32 %v5950_v36, %v3572_v40  ;;  %v3575_v54 = vunpack.c.h.bf16 %v5134_v41 }
 0x3cc   :  { %v2748_v47 = vpop.f32.mrf.mxu0  ;;  %5149 = vtanh.bf16 %v3219_v43  ;;  %v3639_v42 = vmul.f32 %v5950_v36, %v3574_v45  ;;  %v3158_v60 = vadd.f32 %v3157_v19, %v5924_v37  ;;  %v2747_v2 = vadd.f32 %v2746_v51, %v5914_v0 }
 0x3cd   :  { %v2749_v56 = vadd.f32 %v2748_v47, %v5911_v22  ;;  %v3159_v58 = vpop.f32.mrf.mxu1  ;;  %v3638_v49 = vmul.f32 %v5954_v46, %v3573_v48  ;;  %v3640_v44 = vmul.f32 %v5954_v46, %v3575_v54 }
 0x3ce   :  { %v2750_v59 = vpop.f32.mrf.mxu0  ;;  %v3160_v63 = vadd.f32 %v3159_v58, %v5921_v34 }
 0x3cf   :  { %v5136_v1 = vpop.eup %5135  ;;  %v2801_v4 = vpack.c.bf16 %v2749_v56, %v2745_v55  ;;  %v2751_v27 = vadd.f32 %v2750_v59, %v5914_v0  ;;  %v3161_v5 = vpop.f32.mrf.mxu1  ;;  %v3699_v6 = vadd.f32 %v3638_v49, %v3637_v50  ;;  %v3702_v10 = vadd.f32 %v3640_v44, %v3639_v42 }
 0x3d0   :  { %v5138_v7 = vpop.eup %5137  ;;  %v2754_v8 = vpop.f32.mrf.mxu0  ;;  %v3220_v9 = vpack.c.bf16 %v3160_v63, %v3156_v52  ;;  %v3162_v31 = vadd.f32 %v3161_v5, %v5924_v37 }
 0x3d1   :  { %v5140_v11 = vpop.eup %5139  ;;  %5151 = vtanh.bf16 %v2801_v4  ;;  %v2802_v12 = vpack.c.bf16 %v2751_v27, %v2747_v2  ;;  %v3165_v13 = vpop.f32.mrf.mxu1  ;;  %3700 = vadd.xlane.f32.xlu0 %v3699_v6  ;;  %v3576_v14 = vunpack.c.l.bf16 %v5138_v7  ;;  %3703 = vadd.xlane.f32.xlu1 %v3702_v10  ;;  %v3578_v16 = vunpack.c.h.bf16 %v5138_v7 }
 0x3d2   :  { %v5142_v57 = vpop.eup %5141  ;;  %v2756_v15 = vpop.f32.mrf.mxu0  ;;  %3477 = vmatprep.mubr.bf16.mxu1 %v5140_v11  ;;  %5153 = vtanh.bf16 %v3220_v9  ;;  %v3221_v62 = vpack.c.bf16 %v3162_v31, %v3158_v60  ;;  %v3166_v53 = vadd.f32 %v3165_v13, %v5921_v34  ;;  %v2755_v25 = vadd.f32 %v2754_v8, %v5911_v22 }
 0x3d3   :  { %5155 = vtanh.bf16 %v2802_v12  ;;  %3478 = vmatmul.mubr.bf16.vlgmr.msra.gmra.mxu1 %v5136_v1  ;;  %v3167_v17 = vpop.f32.mrf.mxu1  ;;  %v3577_v18 = vunpack.c.l.bf16 %v5142_v57  ;;  %v3641_v20 = vmul.f32 %v5950_v36, %v3576_v14  ;;  %v3579_v23 = vunpack.c.h.bf16 %v5142_v57 }
 0x3d4   :  { %v2758_v21 = vpop.f32.mrf.mxu0  ;;  %5157 = vtanh.bf16 %v3221_v62  ;;  %v3643_v24 = vmul.f32 %v5950_v36, %v3578_v16  ;;  %v3168_v32 = vadd.f32 %v3167_v17, %v5924_v37  ;;  %v2757_v38 = vadd.f32 %v2756_v15, %v5914_v0 }
 0x3d5   :  { %v2759_v26 = vadd.f32 %v2758_v21, %v5911_v22  ;;  %v3169_v28 = vpop.f32.mrf.mxu1  ;;  %v3642_v29 = vmul.f32 %v5954_v46, %v3577_v18  ;;  %v3644_v35 = vmul.f32 %v5954_v46, %v3579_v23 }
 0x3d6   :  { %v2760_v30 = vpop.f32.mrf.mxu0  ;;  %v3170_v33 = vadd.f32 %v3169_v28, %v5921_v34 }
 0x3d7   :  { %v5144_v61 = vpop.eup %5143  ;;  %v2803_v3 = vpack.c.bf16 %v2759_v26, %v2755_v25  ;;  %v2761_v39 = vadd.f32 %v2760_v30, %v5914_v0  ;;  %v3171_v40 = vpop.f32.mrf.mxu1  ;;  %v3705_v41 = vadd.f32 %v3642_v29, %v3641_v20  ;;  %v3708_v48 = vadd.f32 %v3644_v35, %v3643_v24 }
 0x3d8   :  { %v5146_v51 = vpop.eup %5145  ;;  %v2764_v43 = vpop.f32.mrf.mxu0  ;;  %v3222_v45 = vpack.c.bf16 %v3170_v33, %v3166_v53  ;;  %v3172_v19 = vadd.f32 %v3171_v40, %v5924_v37 }
 0x3d9   :  { %v5148_v50 = vpop.eup %5147  ;;  %5159 = vtanh.bf16 %v2803_v3  ;;  %v2804_v47 = vpack.c.bf16 %v2761_v39, %v2757_v38  ;;  %v3175_v52 = vpop.f32.mrf.mxu1  ;;  %3706 = vadd.xlane.f32.xlu0 %v3705_v41  ;;  %v3580_v54 = vunpack.c.l.bf16 %v5146_v51  ;;  %3709 = vadd.xlane.f32.xlu1 %v3708_v48  ;;  %v3582_v58 = vunpack.c.h.bf16 %v5146_v51 }
 0x3da   :  { %v5150_v42 = vpop.eup %5149  ;;  %v2766_v55 = vpop.f32.mrf.mxu0  ;;  %3485 = vmatprep.mubr.bf16.mxu1 %v5148_v50  ;;  %5161 = vtanh.bf16 %v3222_v45  ;;  %v3223_v56 = vpack.c.bf16 %v3172_v19, %v3168_v32  ;;  %v3176_v44 = vadd.f32 %v3175_v52, %v5921_v34  ;;  %v2765_v4 = vadd.f32 %v2764_v43, %v5911_v22 }
 0x3db   :  { %5163 = vtanh.bf16 %v2804_v47  ;;  %3486 = vmatmul.mubr.bf16.gmra.mxu1 %v5144_v61  ;;  %v3177_v49 = vpop.f32.mrf.mxu1  ;;  %v3581_v59 = vunpack.c.l.bf16 %v5150_v42  ;;  %v3645_v60 = vmul.f32 %v5950_v36, %v3580_v54  ;;  %v3583_v1 = vunpack.c.h.bf16 %v5150_v42 }
 0x3dc   :  { %v2768_v63 = vpop.f32.mrf.mxu0  ;;  %5165 = vtanh.bf16 %v3223_v56  ;;  %v3647_v2 = vmul.f32 %v5950_v36, %v3582_v58  ;;  %v3178_v8 = vadd.f32 %v3177_v49, %v5924_v37  ;;  %v2767_v11 = vadd.f32 %v2766_v55, %v5914_v0 }
 0x3dd   :  { %v2769_v27 = vadd.f32 %v2768_v63, %v5911_v22  ;;  %v3179_v5 = vpop.f32.mrf.mxu1  ;;  %v3646_v6 = vmul.f32 %v5954_v46, %v3581_v59  ;;  %v3648_v31 = vmul.f32 %v5954_v46, %v3583_v1 }
 0x3de   :  { %v2770_v7 = vpop.f32.mrf.mxu0  ;;  %v3180_v9 = vadd.f32 %v3179_v5, %v5921_v34 }
 0x3df   :  { %v5152_v10 = vpop.eup %5151  ;;  %v2805_v12 = vpack.c.bf16 %v2769_v27, %v2765_v4  ;;  %v2771_v13 = vadd.f32 %v2770_v7, %v5914_v0  ;;  %v3181_v14 = vpop.f32.mrf.mxu1  ;;  %v3711_v57 = vadd.f32 %v3646_v6, %v3645_v60  ;;  %v3714_v18 = vadd.f32 %v3648_v31, %v3647_v2 }
 0x3e0   :  { %v5154_v15 = vpop.eup %5153  ;;  %v2774_v62 = vpop.f32.mrf.mxu0  ;;  %v3224_v16 = vpack.c.bf16 %v3180_v9, %v3176_v44  ;;  %v3182_v17 = vadd.f32 %v3181_v14, %v5924_v37 }
 0x3e1   :  { %v5156_v20 = vpop.eup %5155  ;;  %5167 = vtanh.bf16 %v2805_v12  ;;  %v2806_v21 = vpack.c.bf16 %v2771_v13, %v2767_v11  ;;  %v3185_v53 = vpop.f32.mrf.mxu1  ;;  %3712 = vadd.xlane.f32.xlu0 %v3711_v57  ;;  %v3584_v23 = vunpack.c.l.bf16 %v5154_v15  ;;  %3715 = vadd.xlane.f32.xlu1 %v3714_v18  ;;  %v3586_v28 = vunpack.c.h.bf16 %v5154_v15 }
 0x3e2   :  { %v5158_v24 = vpop.eup %5157  ;;  %v2776_v25 = vpop.f32.mrf.mxu0  ;;  %3493 = vmatprep.mubr.bf16.mxu1 %v5156_v20  ;;  %5169 = vtanh.bf16 %v3224_v16  ;;  %v3225_v26 = vpack.c.bf16 %v3182_v17, %v3178_v8  ;;  %v3186_v35 = vadd.f32 %v3185_v53, %v5921_v34  ;;  %v2775_v3 = vadd.f32 %v2774_v62, %v5911_v22 }
 0x3e3   :  { %5171 = vtanh.bf16 %v2806_v21  ;;  %3494 = vmatmul.mubr.bf16.gmra.mxu1 %v5152_v10  ;;  %v3187_v29 = vpop.f32.mrf.mxu1  ;;  %v3585_v30 = vunpack.c.l.bf16 %v5158_v24  ;;  %v3649_v32 = vmul.f32 %v5950_v36, %v3584_v23  ;;  %v3587_v61 = vunpack.c.h.bf16 %v5158_v24 }
 0x3e4   :  { %v2778_v33 = vpop.f32.mrf.mxu0  ;;  %5173 = vtanh.bf16 %v3225_v26  ;;  %v3651_v38 = vmul.f32 %v5950_v36, %v3586_v28  ;;  %v3188_v43 = vadd.f32 %v3187_v29, %v5924_v37  ;;  %v2777_v50 = vadd.f32 %v2776_v25, %v5914_v0 }
 0x3e5   :  { %v2779_v39 = vadd.f32 %v2778_v33, %v5911_v22  ;;  %v3189_v40 = vpop.f32.mrf.mxu1  ;;  %v3650_v41 = vmul.f32 %v5954_v46, %v3585_v30  ;;  %v3652_v19 = vmul.f32 %v5954_v46, %v3587_v61 }
 0x3e6   :  { %v2780_v51 = vpop.f32.mrf.mxu0  ;;  %v3190_v45 = vadd.f32 %v3189_v40, %v5921_v34 }
 0x3e7   :  { %v5160_v48 = vpop.eup %5159  ;;  %v2807_v47 = vpack.c.bf16 %v2779_v39, %v2775_v3  ;;  %v2781_v52 = vadd.f32 %v2780_v51, %v5914_v0  ;;  %v3191_v54 = vpop.f32.mrf.mxu1  ;;  %v3717_v42 = vadd.f32 %v3650_v41, %v3649_v32  ;;  %v3720_v58 = vadd.f32 %v3652_v19, %v3651_v38 }
 0x3e8   :  { %v5162_v55 = vpop.eup %5161  ;;  %v3226_v22 = vpack.c.bf16 %v3190_v45, %v3186_v35  ;;  %v3192_v56 = vadd.f32 %v3191_v54, %v5924_v37 }
 0x3e9   :  { %v5164_v49 = vpop.eup %5163  ;;  %5175 = vtanh.bf16 %v2807_v47  ;;  %v2808_v59 = vpack.c.bf16 %v2781_v52, %v2777_v50  ;;  %3718 = vadd.xlane.f32.xlu0 %v3717_v42  ;;  %v3195_v60 = vpop.f32.mrf.mxu1  ;;  %v3588_v63 = vunpack.c.l.bf16 %v5162_v55  ;;  %v3590_v44 = vunpack.c.h.bf16 %v5162_v55  ;;  %3721 = vadd.xlane.f32.xlu1 %v3720_v58 }
 0x3ea   :  { %v5166_v1 = vpop.eup %5165  ;;  %3501 = vmatprep.mubr.bf16.mxu1 %v5164_v49  ;;  %5177 = vtanh.bf16 %v3226_v22  ;;  %v3227_v2 = vpack.c.bf16 %v3192_v56, %v3188_v43  ;;  %v3196_v6 = vadd.f32 %v3195_v60, %v5921_v34 }
 0x3eb   :  { %5179 = vtanh.bf16 %v2808_v59  ;;  %3502 = vmatmul.mubr.bf16.gmra.mxu1 %v5160_v48  ;;  %v3197_v0 = vpop.f32.mrf.mxu1  ;;  %v3589_v4 = vunpack.c.l.bf16 %v5166_v1  ;;  %v3653_v27 = vmul.f32 %v5950_v36, %v3588_v63  ;;  %v3591_v5 = vunpack.c.h.bf16 %v5166_v1  ;;  %v6087_v63 = vld [vmem:[%s6447_s6] ss:$0 sm:$0xff] }
 0x3ec   :  { %5181 = vtanh.bf16 %v3227_v2  ;;  %v3655_v7 = vmul.f32 %v5950_v36, %v3590_v44  ;;  %v3198_v10 = vadd.f32 %v3197_v0, %v5924_v37 }
 0x3ed   :  { %v3199_v8 = vpop.f32.mrf.mxu1  ;;  %v3654_v9 = vmul.f32 %v5954_v46, %v3589_v4  ;;  %v3656_v31 = vmul.f32 %v5954_v46, %v3591_v5 }
 0x3ee   :  { %v3200_v11 = vadd.f32 %v3199_v8, %v5921_v34 }
 0x3ef   :  { %v5168_v12 = vpop.eup %5167  ;;  %v3201_v13 = vpop.f32.mrf.mxu1  ;;  %v3723_v14 = vadd.f32 %v3654_v9, %v3653_v27  ;;  %v3726_v57 = vadd.f32 %v3656_v31, %v3655_v7 }
 0x3f0   :  { %v5170_v15 = vpop.eup %5169  ;;  %v3228_v62 = vpack.c.bf16 %v3200_v11, %v3196_v6  ;;  %v3202_v16 = vadd.f32 %v3201_v13, %v5924_v37  ;;  %v3747_v13 = vld [vmem:[%s6442_s1] sm:$0xff] }
 0x3f1   :  { %v5172_v17 = vpop.eup %5171  ;;  %3724 = vadd.xlane.f32.xlu0 %v3723_v14  ;;  %3727 = vadd.xlane.f32.xlu1 %v3726_v57  ;;  %v3592_v18 = vunpack.c.l.bf16 %v5170_v15  ;;  %v3594_v20 = vunpack.c.h.bf16 %v5170_v15 }
 0x3f2   :  { %v5174_v21 = vpop.eup %5173  ;;  %3509 = vmatprep.mubr.bf16.mxu1 %v5172_v17  ;;  %5183 = vtanh.bf16 %v3228_v62  ;;  %v3229_v53 = vpack.c.bf16 %v3202_v16, %v3198_v10 }
 0x3f3   :  { %3510 = vmatmul.mubr.bf16.gmra.mxu1 %v5168_v12  ;;  %v3593_v23 = vunpack.c.l.bf16 %v5174_v21  ;;  %v3657_v34 = vmul.f32 %v5950_v36, %v3592_v18  ;;  %v3595_v24 = vunpack.c.h.bf16 %v5174_v21  ;;  %v3659_v25 = vmul.f32 %v5950_v36, %v3594_v20  ;;  %v6103_v18 = vld [vmem:[%s6447_s6 + $0x1] ss:$0 sm:$0xff]  ;;  %v3748_v20 = vld [vmem:[%s6442_s1 + $0x8] sm:$0xff] }
 0x3f4   :  { %5185 = vtanh.bf16 %v3229_v53 }
 0x3f5   :  { %v3658_v26 = vmul.f32 %v5954_v46, %v3593_v23  ;;  %v3660_v37 = vmul.f32 %v5954_v46, %v3595_v24 }
 0x3f7   :  { %v5176_v28 = vpop.eup %5175  ;;  %v3729_v29 = vadd.f32 %v3658_v26, %v3657_v34  ;;  %v3732_v30 = vadd.f32 %v3660_v37, %v3659_v25 }
 0x3f8   :  { %v5178_v32 = vpop.eup %5177 }
 0x3f9   :  { %v5180_v33 = vpop.eup %5179  ;;  %3730 = vadd.xlane.f32.xlu0 %v3729_v29  ;;  %3733 = vadd.xlane.f32.xlu1 %v3732_v30  ;;  %v3596_v35 = vunpack.c.l.bf16 %v5178_v32  ;;  %v3598_v61 = vunpack.c.h.bf16 %v5178_v32 }
 0x3fa   :  { %v5182_v38 = vpop.eup %5181  ;;  %3517 = vmatprep.mubr.bf16.mxu1 %v5180_v33 }
 0x3fb   :  { %3518 = vmatmul.mubr.bf16.gmra.mxu1 %v5176_v28  ;;  %v3597_v3 = vunpack.c.l.bf16 %v5182_v38  ;;  %v3661_v39 = vmul.f32 %v5950_v36, %v3596_v35  ;;  %v3599_v40 = vunpack.c.h.bf16 %v5182_v38  ;;  %v3663_v41 = vmul.f32 %v5950_v36, %v3598_v61  ;;  %v3749_v28 = vld [vmem:[%s6442_s1 + $0x10] sm:$0xff] }
 0x3fd   :  { %v3662_v51 = vmul.f32 %v5954_v46, %v3597_v3  ;;  %v3664_v43 = vmul.f32 %v5954_v46, %v3599_v40  ;;  %v3750_v40 = vld [vmem:[%s6442_s1 + $0x18] sm:$0xff] }
 0x3ff   :  { %v3735_v45 = vadd.f32 %v3662_v51, %v3661_v39  ;;  %v3738_v19 = vadd.f32 %v3664_v43, %v3663_v41 }
 0x400   :  { %v5184_v48 = vpop.eup %5183 }
 0x401   :  { %3736 = vadd.xlane.f32.xlu0 %v3735_v45  ;;  %3739 = vadd.xlane.f32.xlu1 %v3738_v19  ;;  %v3600_v50 = vunpack.c.l.bf16 %v5184_v48  ;;  %v3602_v47 = vunpack.c.h.bf16 %v5184_v48 }
 0x402   :  { %v5186_v52 = vpop.eup %5185 }
 0x403   :  { %v3601_v54 = vunpack.c.l.bf16 %v5186_v52  ;;  %v3665_v42 = vmul.f32 %v5950_v36, %v3600_v50  ;;  %v3603_v55 = vunpack.c.h.bf16 %v5186_v52  ;;  %v3667_v22 = vmul.f32 %v5950_v36, %v3602_v47 }
 0x405   :  { %v3666_v56 = vmul.f32 %v5954_v46, %v3601_v54  ;;  %v3668_v58 = vmul.f32 %v5954_v46, %v3603_v55 }
 0x407   :  { %v3741_v49 = vadd.f32 %v3666_v56, %v3665_v42  ;;  %v3744_v59 = vadd.f32 %v3668_v58, %v3667_v22  ;;  %v3751_v42 = vld [vmem:[%s6442_s1 + $0x20] sm:$0xff] }
 0x409   :  { %3742 = vadd.xlane.f32.xlu0 %v3741_v49  ;;  %3745 = vadd.xlane.f32.xlu1 %v3744_v59 }
 0x432   :  { %v6118_v33 = vpop.xlane.xlu0 %3670 }
 0x436   :  { %v6133_v52 = vpop.xlane.xlu0 %3673 }
 0x43a   :  { %v6126_v41 = vpop.xlane.xlu1 %3676 }
 0x43e   :  { %v6140_v49 = vpop.xlane.xlu1 %3679 }
 0x45b   :  { %v4356_v60 = vpop.f32.mrf.mxu0 }
 0x45d   :  { %v4357_v44 = vpop.f32.mrf.mxu0 }
 0x45e   :  { %v4358_v1 = vadd.f32 %v4357_v44, %v4356_v60 }
 0x45f   :  { %v4359_v2 = vpop.f32.mrf.mxu0 }
 0x460   :  { %v3424_v0 = vadd.f32 %v4358_v1, %v6087_v63  ;;  %v6145_v1 = vpop.xlane.xlu0 %3682 }
 0x461   :  { %v4360_v36 = vpop.f32.mrf.mxu0 }
 0x462   :  { %5187 = vtanh.f32 %v3424_v0  ;;  %v4361_v4 = vadd.f32 %v4360_v36, %v4359_v2  ;;  %v3752_v0 = vld [vmem:[%s6442_s1 + $0x28] sm:$0xff] }
 0x463   :  { %v4362_v27 = vpop.f32.mrf.mxu0 }
 0x464   :  { %v3427_v46 = vadd.f32 %v4361_v4, %v6087_v63 }
 0x465   :  { %v4363_v5 = vpop.f32.mrf.mxu0 }
 0x466   :  { %5189 = vtanh.f32 %v3427_v46  ;;  %v4364_v6 = vadd.f32 %v4363_v5, %v4362_v27  ;;  %v6152_v5 = vpop.xlane.xlu1 %3685 }
 0x467   :  { %v4365_v7 = vpop.f32.mrf.mxu0 }
 0x468   :  { %v3432_v8 = vadd.f32 %v4364_v6, %v6087_v63 }
 0x469   :  { %v4366_v9 = vpop.f32.mrf.mxu0 }
 0x46a   :  { %5191 = vtanh.f32 %v3432_v8  ;;  %v4367_v31 = vadd.f32 %v4366_v9, %v4365_v7  ;;  %v6157_v9 = vpop.xlane.xlu0 %3688 }
 0x46b   :  { %v4368_v10 = vpop.f32.mrf.mxu0 }
 0x46c   :  { %v3435_v11 = vadd.f32 %v4367_v31, %v6087_v63 }
 0x46d   :  { %v4369_v12 = vpop.f32.mrf.mxu0 }
 0x46e   :  { %5193 = vtanh.f32 %v3435_v11  ;;  %v4370_v14 = vadd.f32 %v4369_v12, %v4368_v10  ;;  %v3753_v10 = vld [vmem:[%s6442_s1 + $0x30] sm:$0xff] }
 0x46f   :  { %v6096_v57 = vpop.eup %5187  ;;  %v4371_v15 = vpop.f32.mrf.mxu0 }
 0x470   :  { %v3440_v62 = vadd.f32 %v4370_v14, %v6087_v63  ;;  %v3773_v16 = vsub.f32 %v3747_v13, %v6096_v57 }
 0x471   :  { %v4372_v17 = vpop.f32.mrf.mxu0 }
 0x472   :  { %5195 = vtanh.f32 %v3440_v62  ;;  %v4373_v21 = vadd.f32 %v4372_v17, %v4371_v15  ;;  %v3799_v53 = vmul.f32 %v3773_v16, %v3773_v16  ;;  %v6165_v62 = vpop.xlane.xlu1 %3691 }
 0x473   :  { %v6108_v23 = vpop.eup %5189  ;;  %v4374_v34 = vpop.f32.mrf.mxu0 }
 0x474   :  { %v3443_v24 = vadd.f32 %v4373_v21, %v6087_v63  ;;  %v3830_v25 = vmul.f32 %v6103_v18, %v3799_v53  ;;  %v3774_v26 = vsub.f32 %v3748_v20, %v6108_v23  ;;  %v3695_v21 = vpop.xlane.xlu0 %3694  ;;  %v3754_v53 = vld [vmem:[%s6442_s1 + $0x38] sm:$0xff] }
 0x475   :  { %v4375_v37 = vpop.f32.mrf.mxu0 }
 0x476   :  { %5197 = vtanh.f32 %v3443_v24  ;;  %v4376_v29 = vadd.f32 %v4375_v37, %v4374_v34  ;;  %3856 = vadd.xlane.f32.xlu0 %v3830_v25  ;;  %v3800_v30 = vmul.f32 %v3774_v26, %v3774_v26  ;;  %v6177_v26 = vld [vmem:[%s6447_s6 + $0x4] ss:$0 sm:$0xff] }
 0x477   :  { %v6116_v32 = vpop.eup %5191  ;;  %v4377_v35 = vpop.f32.mrf.mxu0 }
 0x478   :  { %v3448_v61 = vadd.f32 %v4376_v29, %v6087_v63  ;;  %v3831_v38 = vmul.f32 %v6103_v18, %v3800_v30  ;;  %v3775_v3 = vsub.f32 %v3749_v28, %v6116_v32  ;;  %v3921_v29 = vmul.f32 %v6177_v26, %v3695_v21 }
 0x479   :  { %v4378_v39 = vpop.f32.mrf.mxu0 }
 0x47a   :  { %5199 = vtanh.f32 %v3448_v61  ;;  %v4379_v51 = vadd.f32 %v4378_v39, %v4377_v35  ;;  %3858 = vadd.xlane.f32.xlu1 %v3831_v38  ;;  %v3801_v43 = vmul.f32 %v3775_v3, %v3775_v3  ;;  %v3698_v35 = vpop.xlane.xlu1 %3697  ;;  %v3755_v3 = vld [vmem:[%s6442_s1 + $0x40] sm:$0xff] }
 0x47b   :  { %v6128_v45 = vpop.eup %5193  ;;  %v4380_v19 = vpop.f32.mrf.mxu0 }
 0x47c   :  { %v3451_v48 = vadd.f32 %v4379_v51, %v6087_v63  ;;  %v3832_v50 = vmul.f32 %v6103_v18, %v3801_v43  ;;  %v3776_v47 = vsub.f32 %v3750_v40, %v6128_v45 }
 0x47d   :  { %v4381_v54 = vpop.f32.mrf.mxu0 }
 0x47e   :  { %5201 = vtanh.f32 %v3451_v48  ;;  %v4382_v55 = vadd.f32 %v4381_v54, %v4380_v19  ;;  %3860 = vadd.xlane.f32.xlu0 %v3832_v50  ;;  %v3802_v22 = vmul.f32 %v3776_v47, %v3776_v47  ;;  %v3922_v19 = vmul.f32 %v6177_v26, %v3698_v35  ;;  %v3701_v54 = vpop.xlane.xlu0 %3700 }
 0x47f   :  { %v6138_v56 = vpop.eup %5195  ;;  %v4383_v58 = vpop.f32.mrf.mxu0 }
 0x480   :  { %v3456_v59 = vadd.f32 %v4382_v55, %v6087_v63  ;;  %v3833_v60 = vmul.f32 %v6103_v18, %v3802_v22  ;;  %v3777_v44 = vsub.f32 %v3751_v42, %v6138_v56  ;;  %v3756_v22 = vld [vmem:[%s6442_s1 + $0x48] sm:$0xff] }
 0x481   :  { %v4384_v2 = vpop.f32.mrf.mxu0 }
 0x482   :  { %5203 = vtanh.f32 %v3456_v59  ;;  %v4385_v36 = vadd.f32 %v4384_v2, %v4383_v58  ;;  %3862 = vadd.xlane.f32.xlu1 %v3833_v60  ;;  %v3803_v4 = vmul.f32 %v3777_v44, %v3777_v44  ;;  %v3923_v2 = vmul.f32 %v6177_v26, %v3701_v54 }
 0x483   :  { %v6150_v27 = vpop.eup %5197  ;;  %v4386_v46 = vpop.f32.mrf.mxu0 }
 0x484   :  { %v3459_v6 = vadd.f32 %v4385_v36, %v6087_v63  ;;  %v3834_v7 = vmul.f32 %v6103_v18, %v3803_v4  ;;  %v3778_v8 = vsub.f32 %v3752_v0, %v6150_v27 }
 0x485   :  { %v4387_v31 = vpop.f32.mrf.mxu0 }
 0x486   :  { %5205 = vtanh.f32 %v3459_v6  ;;  %v4388_v11 = vadd.f32 %v4387_v31, %v4386_v46  ;;  %3864 = vadd.xlane.f32.xlu0 %v3834_v7  ;;  %v3804_v12 = vmul.f32 %v3778_v8, %v3778_v8  ;;  %v3704_v46 = vpop.xlane.xlu1 %3703  ;;  %v3757_v8 = vld [vmem:[%s6442_s1 + $0x50] sm:$0xff] }
 0x487   :  { %v6162_v13 = vpop.eup %5199  ;;  %v4389_v14 = vpop.f32.mrf.mxu0 }
 0x488   :  { %v3464_v15 = vadd.f32 %v4388_v11, %v6087_v63  ;;  %v3835_v16 = vmul.f32 %v6103_v18, %v3804_v12  ;;  %v3779_v17 = vsub.f32 %v3753_v10, %v6162_v13 }
 0x489   :  { %v4390_v20 = vpop.f32.mrf.mxu0 }
 0x48a   :  { %5207 = vtanh.f32 %v3464_v15  ;;  %v4391_v34 = vadd.f32 %v4390_v20, %v4389_v14  ;;  %3866 = vadd.xlane.f32.xlu1 %v3835_v16  ;;  %v3805_v24 = vmul.f32 %v3779_v17, %v3779_v17  ;;  %v3924_v14 = vmul.f32 %v6177_v26, %v3704_v46  ;;  %v3707_v20 = vpop.xlane.xlu0 %3706 }
 0x48b   :  { %v6172_v25 = vpop.eup %5201  ;;  %v4392_v37 = vpop.f32.mrf.mxu0 }
 0x48c   :  { %v3467_v28 = vadd.f32 %v4391_v34, %v6087_v63  ;;  %v3836_v30 = vmul.f32 %v6103_v18, %v3805_v24  ;;  %v3780_v61 = vsub.f32 %v3754_v53, %v6172_v25  ;;  %v3758_v34 = vld [vmem:[%s6442_s1 + $0x58] sm:$0xff] }
 0x48d   :  { %v4393_v38 = vpop.f32.mrf.mxu0 }
 0x48e   :  { %5209 = vtanh.f32 %v3467_v28  ;;  %v4394_v39 = vadd.f32 %v4393_v38, %v4392_v37  ;;  %3868 = vadd.xlane.f32.xlu0 %v3836_v30  ;;  %v3806_v40 = vmul.f32 %v3780_v61, %v3780_v61  ;;  %v3925_v30 = vmul.f32 %v6177_v26, %v3707_v20 }
 0x48f   :  { %v5204_v51 = vpop.eup %5203  ;;  %v4395_v43 = vpop.f32.mrf.mxu0 }
 0x490   :  { %v6187_v48 = vadd.f32 %v5204_v51, %v3921_v29  ;;  %v3472_v50 = vadd.f32 %v4394_v39, %v6087_v63  ;;  %v3837_v47 = vmul.f32 %v6103_v18, %v3806_v40  ;;  %v3781_v42 = vsub.f32 %v3755_v3, %v5204_v51  ;;  %v3710_v3 = vpop.xlane.xlu1 %3709  ;;  %v3759_v51 = vld [vmem:[%s6442_s1 + $0x60] sm:$0xff] }
 0x491   :  { %v4396_v55 = vpop.f32.mrf.mxu0  ;;  %v3926_v54 = vmul.f32 %v6177_v26, %v3710_v3 }
 0x492   :  { %5211 = vtanh.f32 %v3472_v50  ;;  %v4397_v58 = vadd.f32 %v4396_v55, %v4395_v43  ;;  %3870 = vadd.xlane.f32.xlu1 %v3837_v47  ;;  %v3807_v59 = vmul.f32 %v3781_v42, %v3781_v42 }
 0x493   :  { %v5206_v60 = vpop.eup %5205  ;;  %v4398_v44 = vpop.f32.mrf.mxu1 }
 0x494   :  { %v6195_v0 = vadd.f32 %v5206_v60, %v3922_v19  ;;  %v3475_v36 = vadd.f32 %v4397_v58, %v6087_v63  ;;  %v3838_v4 = vmul.f32 %v6103_v18, %v3807_v59  ;;  %v3782_v6 = vsub.f32 %v3756_v22, %v5206_v60  ;;  %v3713_v58 = vpop.xlane.xlu0 %3712 }
 0x495   :  { %v4399_v7 = vpop.f32.mrf.mxu1 }
 0x496   :  { %5213 = vtanh.f32 %v3475_v36  ;;  %v4400_v31 = vadd.f32 %v4399_v7, %v4398_v44  ;;  %3872 = vadd.xlane.f32.xlu0 %v3838_v4  ;;  %v3808_v10 = vmul.f32 %v3782_v6, %v3782_v6  ;;  %v3760_v44 = vld [vmem:[%s6442_s1 + $0x68] sm:$0xff]  ;;  %v3927_v6 = vmul.f32 %v6177_v26, %v3713_v58 }
 0x497   :  { %v5208_v11 = vpop.eup %5207  ;;  %v4401_v12 = vpop.f32.mrf.mxu1 }
 0x498   :  { %v6203_v15 = vadd.f32 %v5208_v11, %v3923_v2  ;;  %v3480_v16 = vadd.f32 %v4400_v31, %v6087_v63  ;;  %v3839_v17 = vmul.f32 %v6103_v18, %v3808_v10  ;;  %v3783_v21 = vsub.f32 %v3757_v8, %v5208_v11  ;;  %v3716_v10 = vpop.xlane.xlu1 %3715 }
 0x499   :  { %v4402_v53 = vpop.f32.mrf.mxu1 }
 0x49a   :  { %5215 = vtanh.f32 %v3480_v16  ;;  %v4403_v24 = vadd.f32 %v4402_v53, %v4401_v12  ;;  %3874 = vadd.xlane.f32.xlu1 %v3839_v17  ;;  %v3809_v37 = vmul.f32 %v3783_v21, %v3783_v21  ;;  %v3928_v53 = vmul.f32 %v6177_v26, %v3716_v10  ;;  %v3764_v10 = vld [vmem:[%s6442_s1 + $0x88] sm:$0xff] }
 0x49b   :  { %v5210_v28 = vpop.eup %5209  ;;  %v4404_v29 = vpop.f32.mrf.mxu1 }
 0x49c   :  { %v6211_v35 = vadd.f32 %v5210_v28, %v3924_v14  ;;  %v3483_v61 = vadd.f32 %v4403_v24, %v6087_v63  ;;  %v3840_v38 = vmul.f32 %v6103_v18, %v3809_v37  ;;  %v3784_v39 = vsub.f32 %v3758_v34, %v5210_v28  ;;  %v3761_v14 = vld [vmem:[%s6442_s1 + $0x70] sm:$0xff]  ;;  %v3719_v28 = vpop.xlane.xlu0 %3718 }
 0x49d   :  { %v4405_v40 = vpop.f32.mrf.mxu1 }
 0x49e   :  { %5217 = vtanh.f32 %v3483_v61  ;;  %v4406_v43 = vadd.f32 %v4405_v40, %v4404_v29  ;;  %3876 = vadd.xlane.f32.xlu0 %v3840_v38  ;;  %v3810_v19 = vmul.f32 %v3784_v39, %v3784_v39  ;;  %v3762_v61 = vld [vmem:[%s6442_s1 + $0x78] sm:$0xff] }
 0x49f   :  { %v5212_v50 = vpop.eup %5211  ;;  %v4407_v47 = vpop.f32.mrf.mxu1 }
 0x4a0   :  { %v6219_v42 = vadd.f32 %v5212_v50, %v3925_v30  ;;  %v3488_v55 = vadd.f32 %v4406_v43, %v6087_v63  ;;  %v3841_v22 = vmul.f32 %v6103_v18, %v3810_v19  ;;  %v3785_v59 = vsub.f32 %v3759_v51, %v5212_v50 }
 0x4a1   :  { %v4408_v60 = vpop.f32.mrf.mxu1  ;;  %v3929_v51 = vmul.f32 %v6177_v26, %v3719_v28 }
 0x4a2   :  { %5219 = vtanh.f32 %v3488_v55  ;;  %v4409_v2 = vadd.f32 %v4408_v60, %v4407_v47  ;;  %3878 = vadd.xlane.f32.xlu1 %v3841_v22  ;;  %v3811_v36 = vmul.f32 %v3785_v59, %v3785_v59  ;;  %v3722_v47 = vpop.xlane.xlu1 %3721  ;;  %v3763_v22 = vld [vmem:[%s6442_s1 + $0x80] sm:$0xff] }
 0x4a3   :  { %v5214_v4 = vpop.eup %5213  ;;  %v4410_v46 = vpop.f32.mrf.mxu1 }
 0x4a4   :  { %v6227_v7 = vadd.f32 %v5214_v4, %v3926_v54  ;;  %v3491_v8 = vadd.f32 %v4409_v2, %v6087_v63  ;;  %v3842_v31 = vmul.f32 %v6103_v18, %v3811_v36  ;;  %v3786_v11 = vsub.f32 %v3760_v44, %v5214_v4 }
 0x4a5   :  { %v4411_v12 = vpop.f32.mrf.mxu1  ;;  %v3930_v2 = vmul.f32 %v6177_v26, %v3722_v47 }
 0x4a6   :  { %5221 = vtanh.f32 %v3491_v8  ;;  %v4412_v16 = vadd.f32 %v4411_v12, %v4410_v46  ;;  %3880 = vadd.xlane.f32.xlu0 %v3842_v31  ;;  %v3812_v17 = vmul.f32 %v3786_v11, %v3786_v11 }
 0x4a7   :  { %v5216_v20 = vpop.eup %5215  ;;  %v4413_v21 = vpop.f32.mrf.mxu1 }
 0x4a8   :  { %v6235_v34 = vadd.f32 %v5216_v20, %v3927_v6  ;;  %v3496_v24 = vadd.f32 %v4412_v16, %v6087_v63  ;;  %v3843_v37 = vmul.f32 %v6103_v18, %v3812_v17  ;;  %v3787_v29 = vsub.f32 %v3761_v14, %v5216_v20  ;;  %v3725_v6 = vpop.xlane.xlu0 %3724 }
 0x4a9   :  { %v4414_v30 = vpop.f32.mrf.mxu1  ;;  %v3931_v17 = vmul.f32 %v6177_v26, %v3725_v6 }
 0x4aa   :  { %5223 = vtanh.f32 %v3496_v24  ;;  %v4415_v38 = vadd.f32 %v4414_v30, %v4413_v21  ;;  %3882 = vadd.xlane.f32.xlu1 %v3843_v37  ;;  %v3813_v3 = vmul.f32 %v3787_v29, %v3787_v29  ;;  %v3728_v24 = vpop.xlane.xlu1 %3727  ;;  %v3765_v29 = vld [vmem:[%s6442_s1 + $0x90] sm:$0xff] }
 0x4ab   :  { %v5218_v39 = vpop.eup %5217  ;;  %v4416_v40 = vpop.f32.mrf.mxu1 }
 0x4ac   :  { %v6243_v43 = vadd.f32 %v5218_v39, %v3928_v53  ;;  %v3499_v19 = vadd.f32 %v4415_v38, %v6087_v63  ;;  %v3844_v50 = vmul.f32 %v6103_v18, %v3813_v3  ;;  %v3788_v54 = vsub.f32 %v3762_v61, %v5218_v39 }
 0x4ad   :  { %v4417_v55 = vpop.f32.mrf.mxu1  ;;  %v3932_v39 = vmul.f32 %v6177_v26, %v3728_v24 }
 0x4ae   :  { %5225 = vtanh.f32 %v3499_v19  ;;  %v4418_v58 = vadd.f32 %v4417_v55, %v4416_v40  ;;  %3884 = vadd.xlane.f32.xlu0 %v3844_v50  ;;  %v3814_v59 = vmul.f32 %v3788_v54, %v3788_v54  ;;  %v3731_v50 = vpop.xlane.xlu0 %3730  ;;  %v3766_v55 = vld [vmem:[%s6442_s1 + $0x98] sm:$0xff]  ;;  %v3734_v6 = vpop.xlane.xlu1 %3733 }
 0x4af   :  { %v5220_v60 = vpop.eup %5219  ;;  %v4419_v44 = vpop.f32.mrf.mxu1 }
 0x4b0   :  { %v6251_v36 = vadd.f32 %v5220_v60, %v3929_v51  ;;  %v3504_v4 = vadd.f32 %v4418_v58, %v6087_v63  ;;  %v3845_v46 = vmul.f32 %v6103_v18, %v3814_v59  ;;  %v3789_v8 = vsub.f32 %v3763_v22, %v5220_v60 }
 0x4b1   :  { %v4420_v31 = vpop.f32.mrf.mxu1 }
 0x4b2   :  { %5227 = vtanh.f32 %v3504_v4  ;;  %v4421_v11 = vadd.f32 %v4420_v31, %v4419_v44  ;;  %3886 = vadd.xlane.f32.xlu1 %v3845_v46  ;;  %v3815_v12 = vmul.f32 %v3789_v8, %v3789_v8  ;;  %v3933_v44 = vmul.f32 %v6177_v26, %v3731_v50 }
 0x4b3   :  { %v5222_v14 = vpop.eup %5221  ;;  %v4422_v16 = vpop.f32.mrf.mxu1 }
 0x4b4   :  { %v6259_v20 = vadd.f32 %v5222_v14, %v3930_v2  ;;  %v3507_v21 = vadd.f32 %v4421_v11, %v6087_v63  ;;  %v3846_v53 = vmul.f32 %v6103_v18, %v3815_v12  ;;  %v3790_v37 = vsub.f32 %v3764_v10, %v5222_v14  ;;  %v3767_v10 = vld [vmem:[%s6442_s1 + $0xa0] sm:$0xff] }
 0x4b5   :  { %v4423_v28 = vpop.f32.mrf.mxu1 }
 0x4b6   :  { %5229 = vtanh.f32 %v3507_v21  ;;  %v4424_v30 = vadd.f32 %v4423_v28, %v4422_v16  ;;  %3888 = vadd.xlane.f32.xlu0 %v3846_v53  ;;  %v3816_v61 = vmul.f32 %v3790_v37, %v3790_v37  ;;  %v3737_v37 = vpop.xlane.xlu0 %3736 }
 0x4b7   :  { %v5224_v38 = vpop.eup %5223  ;;  %v4425_v3 = vpop.f32.mrf.mxu1 }
 0x4b8   :  { %v6267_v40 = vadd.f32 %v5224_v38, %v3931_v17  ;;  %v3512_v51 = vadd.f32 %v4424_v30, %v6087_v63  ;;  %v3847_v19 = vmul.f32 %v6103_v18, %v3816_v61  ;;  %v3791_v47 = vsub.f32 %v3765_v29, %v5224_v38  ;;  %v3768_v30 = vld [vmem:[%s6442_s1 + $0xa8] sm:$0xff] }
 0x4b9   :  { %v4426_v54 = vpop.f32.mrf.mxu1  ;;  %v3934_v17 = vmul.f32 %v6177_v26, %v3734_v6 }
 0x4ba   :  { %5231 = vtanh.f32 %v3512_v51  ;;  %v4427_v22 = vadd.f32 %v4426_v54, %v4425_v3  ;;  %3890 = vadd.xlane.f32.xlu1 %v3847_v19  ;;  %v3817_v58 = vmul.f32 %v3791_v47, %v3791_v47  ;;  %v3740_v54 = vpop.xlane.xlu1 %3739 }
 0x4bb   :  { %v5226_v59 = vpop.eup %5225  ;;  %v4428_v60 = vpop.f32.mrf.mxu1 }
 0x4bc   :  { %v6275_v2 = vadd.f32 %v5226_v59, %v3932_v39  ;;  %v3515_v4 = vadd.f32 %v4427_v22, %v6087_v63  ;;  %v3848_v46 = vmul.f32 %v6103_v18, %v3817_v58  ;;  %v3792_v8 = vsub.f32 %v3766_v55, %v5226_v59  ;;  %v3769_v55 = vld [vmem:[%s6442_s1 + $0xb0] sm:$0xff] }
 0x4bd   :  { %v4429_v31 = vpop.f32.mrf.mxu1  ;;  %v3935_v39 = vmul.f32 %v6177_v26, %v3737_v37 }
 0x4be   :  { %5233 = vtanh.f32 %v3515_v4  ;;  %v4430_v11 = vadd.f32 %v4429_v31, %v4428_v60  ;;  %3892 = vadd.xlane.f32.xlu0 %v3848_v46  ;;  %v3818_v12 = vmul.f32 %v3792_v8, %v3792_v8  ;;  %v3936_v60 = vmul.f32 %v6177_v26, %v3740_v54 }
 0x4bf   :  { %v5228_v14 = vpop.eup %5227  ;;  %v4431_v16 = vpop.f32.mrf.mxu1  ;;  %v3914_v54 = vmul.f32 %v6177_v26, %v6133_v52 }
 0x4c0   :  { %v6283_v21 = vadd.f32 %v5228_v14, %v3933_v44  ;;  %v3520_v53 = vadd.f32 %v4430_v11, %v6087_v63  ;;  %v3849_v24 = vmul.f32 %v6103_v18, %v3818_v12  ;;  %v3793_v28 = vsub.f32 %v3767_v10, %v5228_v14  ;;  %v3771_v11 = vld [vmem:[%s6442_s1 + $0xc0] sm:$0xff] }
 0x4c1   :  { %v4432_v29 = vpop.f32.mrf.mxu1 }
 0x4c2   :  { %5235 = vtanh.f32 %v3520_v53  ;;  %v4433_v61 = vadd.f32 %v4432_v29, %v4431_v16  ;;  %3894 = vadd.xlane.f32.xlu1 %v3849_v24  ;;  %v3819_v38 = vmul.f32 %v3793_v28, %v3793_v28  ;;  %v3772_v53 = vld [vmem:[%s6442_s1 + $0xc8] sm:$0xff] }
 0x4c3   :  { %v5230_v3 = vpop.eup %5229 }
 0x4c4   :  { %v6291_v51 = vadd.f32 %v5230_v3, %v3934_v17  ;;  %v3523_v19 = vadd.f32 %v4433_v61, %v6087_v63  ;;  %v3850_v50 = vmul.f32 %v6103_v18, %v3819_v38  ;;  %v3794_v47 = vsub.f32 %v3768_v30, %v5230_v3  ;;  %v3770_v63 = vld [vmem:[%s6442_s1 + $0xb8] sm:$0xff]  ;;  %v6323_v38 = vpop.xlane.xlu0 %3742 }
 0x4c5   :  { %v3913_v3 = vmul.f32 %v6177_v26, %v6118_v33 }
 0x4c6   :  { %5237 = vtanh.f32 %v3523_v19  ;;  %3896 = vadd.xlane.f32.xlu0 %v3850_v50  ;;  %v3820_v22 = vmul.f32 %v3794_v47, %v3794_v47  ;;  %v6332_v19 = vpop.xlane.xlu1 %3745 }
 0x4c7   :  { %v5232_v58 = vpop.eup %5231  ;;  %v3939_v47 = vadd.f32 %v6096_v57, %v3913_v3 }
 0x4c8   :  { %v6298_v59 = vadd.f32 %v5232_v58, %v3935_v39  ;;  %v3851_v44 = vmul.f32 %v6103_v18, %v3820_v22  ;;  %v3795_v4 = vsub.f32 %v3769_v55, %v5232_v58  ;;  %v6330_v39 = vld [vmem:[%s6447_s6 + $0x3] ss:$0 sm:$0xff]  ;;  %v6341_v55 = vld [vmem:[%s6447_s6 + $0x2] ss:$0 sm:$0xff]  ;;  %v3940_v58 = vadd.f32 %v6108_v23, %v3914_v54  ;;  %s5335_s6 = smov [#allocation8]  }
 0x4c9   :  { %s4084_s15 = sshll.u32 %s5335_s6, 4  ;;  %s4085_s15 = int_to_ptr.vmem [resolvable:$true] %s4084_s15 }
 0x4ca   :  { %3898 = vadd.xlane.f32.xlu1 %v3851_v44  ;;  %v3821_v46 = vmul.f32 %v3795_v4, %v3795_v4  ;;  %s5299_s16 = scalar_lea.vmem %s4085_s15, 3328  ;;  %p5304_p2 = scmp.lt.s32.totalorder %s4085_s15, %s4085_s15 }
 0x4cb   :  { %v5234_v6 = vpop.eup %5233  ;;  %p5300_p1 = scmp.ne.s32.totalorder %s4085_s15, %s5299_s16  ;;  %p5305_p3 = scmp.lt.s32.totalorder %s5299_s16, %s5299_s16 }
 0x4cc   :  { %v6305_v8 = vadd.f32 %v5234_v6, %v3936_v60  ;;  %v3852_v31 = vmul.f32 %v6103_v18, %v3821_v46  ;;  %v3796_v10 = vsub.f32 %v3770_v63, %v5234_v6  ;;  %v3915_v60 = vmul.f32 %v6177_v26, %v6126_v41 }
 0x4cd   :  { %v3916_v46 = vmul.f32 %v6177_v26, %v6140_v49  ;;  %p5306_p4 = por %p5305_p3, %p5304_p2 }
 0x4ce   :  { %3900 = vadd.xlane.f32.xlu0 %v3852_v31  ;;  %v3822_v12 = vmul.f32 %v3796_v10, %v3796_v10  ;;  %v3941_v63 = vadd.f32 %v6116_v32, %v3915_v60 }
 0x4cf   :  { %v6311_v14 = vpop.eup %5235  ;;  %v3942_v41 = vadd.f32 %v6128_v45, %v3916_v46  ;;  %p5307_p5 = pnand %p5306_p4, %p5300_p1 }
 0x4d0   :  { %v3853_v16 = vmul.f32 %v6103_v18, %v3822_v12  ;;  %v3797_v17 = vsub.f32 %v3771_v11, %v6311_v14  ;;  %v3917_v11 = vmul.f32 %v6177_v26, %v6145_v1 }
 0x4d2   :  { %3902 = vadd.xlane.f32.xlu1 %v3853_v16  ;;  %v3823_v24 = vmul.f32 %v3797_v17, %v3797_v17  ;;  %v3943_v49 = vadd.f32 %v6138_v56, %v3917_v11 }
 0x4d3   :  { %v6318_v37 = vpop.eup %5237 }
 0x4d4   :  { %v3854_v28 = vmul.f32 %v6103_v18, %v3823_v24  ;;  %v3798_v29 = vsub.f32 %v3772_v53, %v6318_v37  ;;  %v3918_v53 = vmul.f32 %v6177_v26, %v6152_v5 }
 0x4d6   :  { %3904 = vadd.xlane.f32.xlu0 %v3854_v28  ;;  %v3824_v30 = vmul.f32 %v3798_v29, %v3798_v29  ;;  %v3944_v1 = vadd.f32 %v6150_v27, %v3918_v53 }
 0x4d8   :  { %v3855_v61 = vmul.f32 %v6103_v18, %v3824_v30  ;;  %v3919_v30 = vmul.f32 %v6177_v26, %v6157_v9 }
 0x4da   :  { %3906 = vadd.xlane.f32.xlu1 %v3855_v61  ;;  %v3945_v5 = vadd.f32 %v6162_v13, %v3919_v30 }
 0x4ff   :  { %v3857_v50 = vpop.xlane.xlu0 %3856 }
 0x500   :  { %v3970_v18 = vmul.f32 %v6330_v39, %v3857_v50 }
 0x502   :  { %v3996_v33 = vadd.f32 %v3970_v18, %v3939_v47  ;;  %v3920_v47 = vmul.f32 %v6177_v26, %v6165_v62 }
 0x503   :  { %v3859_v22 = vpop.xlane.xlu1 %3858 }
 0x504   :  { %v4027_v44 = vadd.f32 %v6341_v55, %v3996_v33  ;;  %v3971_v57 = vmul.f32 %v6330_v39, %v3859_v22  ;;  %v3946_v9 = vadd.f32 %v6172_v25, %v3920_v47 }
 0x506   :  { %4053 = vst [vmem:[#allocation8] sm:$0xff] %v4027_v44  ;;  %v3997_v52 = vadd.f32 %v3971_v57, %v3940_v58 }
 0x507   :  { %v3861_v4 = vpop.xlane.xlu0 %3860 }
 0x508   :  { %v4028_v6 = vadd.f32 %v6341_v55, %v3997_v52  ;;  %v3972_v31 = vmul.f32 %v6330_v39, %v3861_v4 }
 0x50a   :  { %4054 = vst [vmem:[#allocation8 + $0x8] sm:$0xff] %v4028_v6  ;;  %v3998_v23 = vadd.f32 %v3972_v31, %v3941_v63 }
 0x50b   :  { %v3863_v10 = vpop.xlane.xlu1 %3862 }
 0x50c   :  { %v4029_v12 = vadd.f32 %v6341_v55, %v3998_v23  ;;  %v3973_v16 = vmul.f32 %v6330_v39, %v3863_v10 }
 0x50e   :  { %4055 = vst [vmem:[#allocation8 + $0x10] sm:$0xff] %v4029_v12  ;;  %v3999_v32 = vadd.f32 %v3973_v16, %v3942_v41 }
 0x50f   :  { %v3865_v17 = vpop.xlane.xlu0 %3864 }
 0x510   :  { %v4030_v24 = vadd.f32 %v6341_v55, %v3999_v32  ;;  %v3974_v28 = vmul.f32 %v6330_v39, %v3865_v17 }
 0x512   :  { %4056 = vst [vmem:[#allocation8 + $0x18] sm:$0xff] %v4030_v24  ;;  %v4000_v45 = vadd.f32 %v3974_v28, %v3943_v49 }
 0x513   :  { %v3867_v29 = vpop.xlane.xlu1 %3866 }
 0x514   :  { %v4031_v61 = vadd.f32 %v6341_v55, %v4000_v45  ;;  %v3975_v3 = vmul.f32 %v6330_v39, %v3867_v29 }
 0x516   :  { %4057 = vst [vmem:[#allocation8 + $0x20] sm:$0xff] %v4031_v61  ;;  %v4001_v56 = vadd.f32 %v3975_v3, %v3944_v1 }
 0x517   :  { %v3869_v50 = vpop.xlane.xlu0 %3868 }
 0x518   :  { %v4032_v54 = vadd.f32 %v6341_v55, %v4001_v56  ;;  %v3976_v18 = vmul.f32 %v6330_v39, %v3869_v50 }
 0x51a   :  { %4058 = vst [vmem:[#allocation8 + $0x28] sm:$0xff] %v4032_v54  ;;  %v4002_v27 = vadd.f32 %v3976_v18, %v3945_v5 }
 0x51b   :  { %v3871_v33 = vpop.xlane.xlu1 %3870 }
 0x51c   :  { %v4033_v22 = vadd.f32 %v6341_v55, %v4002_v27  ;;  %v3977_v58 = vmul.f32 %v6330_v39, %v3871_v33 }
 0x51e   :  { %4059 = vst [vmem:[#allocation8 + $0x30] sm:$0xff] %v4033_v22  ;;  %v4003_v60 = vadd.f32 %v3977_v58, %v3946_v9 }
 0x51f   :  { %v3873_v44 = vpop.xlane.xlu0 %3872 }
 0x520   :  { %v4034_v13 = vadd.f32 %v6341_v55, %v4003_v60  ;;  %v3978_v62 = vmul.f32 %v6330_v39, %v3873_v44 }
 0x522   :  { %4060 = vst [vmem:[#allocation8 + $0x38] sm:$0xff] %v4034_v13  ;;  %v4004_v57 = vadd.f32 %v3978_v62, %v6187_v48 }
 0x523   :  { %v3875_v52 = vpop.xlane.xlu1 %3874 }
 0x524   :  { %v4035_v4 = vadd.f32 %v6341_v55, %v4004_v57  ;;  %v3979_v63 = vmul.f32 %v6330_v39, %v3875_v52 }
 0x526   :  { %4061 = vst [vmem:[#allocation8 + $0x40] sm:$0xff] %v4035_v4  ;;  %v4005_v25 = vadd.f32 %v3979_v63, %v6195_v0 }
 0x527   :  { %v3877_v46 = vpop.xlane.xlu0 %3876 }
 0x528   :  { %v4036_v6 = vadd.f32 %v6341_v55, %v4005_v25  ;;  %v3980_v31 = vmul.f32 %v6330_v39, %v3877_v46 }
 0x52a   :  { %4062 = vst [vmem:[#allocation8 + $0x48] sm:$0xff] %v4036_v6  ;;  %v4006_v23 = vadd.f32 %v3980_v31, %v6203_v15 }
 0x52b   :  { %v3879_v10 = vpop.xlane.xlu1 %3878 }
 0x52c   :  { %v4037_v41 = vadd.f32 %v6341_v55, %v4006_v23  ;;  %v3981_v48 = vmul.f32 %v6330_v39, %v3879_v10  ;;  %v3938_v10 = vmul.f32 %v6177_v26, %v6332_v19 }
 0x52e   :  { %4063 = vst [vmem:[#allocation8 + $0x50] sm:$0xff] %v4037_v41  ;;  %v4007_v11 = vadd.f32 %v3981_v48, %v6211_v35 }
 0x52f   :  { %v3881_v12 = vpop.xlane.xlu0 %3880 }
 0x530   :  { %v4038_v16 = vadd.f32 %v6341_v55, %v4007_v11  ;;  %v3982_v0 = vmul.f32 %v6330_v39, %v3881_v12  ;;  %v3964_v11 = vadd.f32 %v6318_v37, %v3938_v10 }
 0x532   :  { %4064 = vst [vmem:[#allocation8 + $0x58] sm:$0xff] %v4038_v16  ;;  %v4008_v32 = vadd.f32 %v3982_v0, %v6219_v42 }
 0x533   :  { %v3883_v17 = vpop.xlane.xlu1 %3882 }
 0x534   :  { %v4039_v49 = vadd.f32 %v6341_v55, %v4008_v32  ;;  %v3983_v15 = vmul.f32 %v6330_v39, %v3883_v17 }
 0x536   :  { %4065 = vst [vmem:[#allocation8 + $0x60] sm:$0xff] %v4039_v49  ;;  %v4009_v53 = vadd.f32 %v3983_v15, %v6227_v7 }
 0x537   :  { %v3885_v24 = vpop.xlane.xlu0 %3884 }
 0x538   :  { %v4040_v28 = vadd.f32 %v6341_v55, %v4009_v53  ;;  %v3984_v35 = vmul.f32 %v6330_v39, %v3885_v24 }
 0x53a   :  { %4066 = vst [vmem:[#allocation8 + $0x68] sm:$0xff] %v4040_v28  ;;  %v4010_v45 = vadd.f32 %v3984_v35, %v6235_v34 }
 0x53b   :  { %v3887_v29 = vpop.xlane.xlu1 %3886 }
 0x53c   :  { %v4041_v1 = vadd.f32 %v6341_v55, %v4010_v45  ;;  %v3985_v42 = vmul.f32 %v6330_v39, %v3887_v29 }
 0x53e   :  { %4067 = vst [vmem:[#allocation8 + $0x70] sm:$0xff] %v4041_v1  ;;  %v4011_v30 = vadd.f32 %v3985_v42, %v6243_v43 }
 0x53f   :  { %v3889_v61 = vpop.xlane.xlu0 %3888 }
 0x540   :  { %v4042_v3 = vadd.f32 %v6341_v55, %v4011_v30  ;;  %v3986_v7 = vmul.f32 %v6330_v39, %v3889_v61 }
 0x542   :  { %4068 = vst [vmem:[#allocation8 + $0x78] sm:$0xff] %v4042_v3  ;;  %v4012_v56 = vadd.f32 %v3986_v7, %v6251_v36 }
 0x543   :  { %v3891_v50 = vpop.xlane.xlu1 %3890 }
 0x544   :  { %v4043_v5 = vadd.f32 %v6341_v55, %v4012_v56  ;;  %v3987_v34 = vmul.f32 %v6330_v39, %v3891_v50 }
 0x546   :  { %4069 = vst [vmem:[#allocation8 + $0x80] sm:$0xff] %v4043_v5  ;;  %v4013_v47 = vadd.f32 %v3987_v34, %v6259_v20 }
 0x547   :  { %v3893_v54 = vpop.xlane.xlu0 %3892 }
 0x548   :  { %v4044_v18 = vadd.f32 %v6341_v55, %v4013_v47  ;;  %v3988_v43 = vmul.f32 %v6330_v39, %v3893_v54 }
 0x54a   :  { %4070 = vst [vmem:[#allocation8 + $0x88] sm:$0xff] %v4044_v18  ;;  %v4014_v27 = vadd.f32 %v3988_v43, %v6267_v40 }
 0x54b   :  { %v3895_v33 = vpop.xlane.xlu1 %3894 }
 0x54c   :  { %v4045_v9 = vadd.f32 %v6341_v55, %v4014_v27  ;;  %v3989_v36 = vmul.f32 %v6330_v39, %v3895_v33 }
 0x54e   :  { %4071 = vst [vmem:[#allocation8 + $0x90] sm:$0xff] %v4045_v9  ;;  %v4015_v22 = vadd.f32 %v3989_v36, %v6275_v2 }
 0x54f   :  { %v3897_v58 = vpop.xlane.xlu0 %3896 }
 0x550   :  { %v4046_v60 = vadd.f32 %v6341_v55, %v4015_v22  ;;  %v3990_v20 = vmul.f32 %v6330_v39, %v3897_v58 }
 0x552   :  { %4072 = vst [vmem:[#allocation8 + $0x98] sm:$0xff] %v4046_v60  ;;  %v4016_v44 = vadd.f32 %v3990_v20, %v6283_v21  ;;  %v3937_v21 = vmul.f32 %v6177_v26, %v6323_v38 }
 0x553   :  { %v3899_v13 = vpop.xlane.xlu1 %3898 }
 0x554   :  { %v4047_v62 = vadd.f32 %v6341_v55, %v4016_v44  ;;  %v3991_v40 = vmul.f32 %v6330_v39, %v3899_v13  ;;  %v3963_v23 = vadd.f32 %v6311_v14, %v3937_v21 }
 0x556   :  { %4073 = vst [vmem:[#allocation8 + $0xa0] sm:$0xff] %v4047_v62  ;;  %v4017_v57 = vadd.f32 %v3991_v40, %v6291_v51 }
 0x557   :  { %v3901_v52 = vpop.xlane.xlu0 %3900 }
 0x558   :  { %v4048_v4 = vadd.f32 %v6341_v55, %v4017_v57  ;;  %v3992_v2 = vmul.f32 %v6330_v39, %v3901_v52 }
 0x55a   :  { %4074 = vst [vmem:[#allocation8 + $0xa8] sm:$0xff] %v4048_v4  ;;  %v4018_v63 = vadd.f32 %v3992_v2, %v6298_v59 }
 0x55b   :  { %v3903_v25 = vpop.xlane.xlu1 %3902 }
 0x55c   :  { %v4049_v46 = vadd.f32 %v6341_v55, %v4018_v63  ;;  %v3993_v6 = vmul.f32 %v6330_v39, %v3903_v25 }
 0x55e   :  { %4075 = vst [vmem:[#allocation8 + $0xb0] sm:$0xff] %v4049_v46  ;;  %v4019_v31 = vadd.f32 %v3993_v6, %v6305_v8 }
 0x55f   :  { %v3905_v51 = vpop.xlane.xlu0 %3904 }
 0x560   :  { %v4050_v41 = vadd.f32 %v6341_v55, %v4019_v31  ;;  %v3994_v59 = vmul.f32 %v6330_v39, %v3905_v51 }
 0x562   :  { %4076 = vst [vmem:[#allocation8 + $0xb8] sm:$0xff] %v4050_v41  ;;  %v4020_v48 = vadd.f32 %v3994_v59, %v3963_v23 }
 0x563   :  { %v3907_v38 = vpop.xlane.xlu1 %3906 }
 0x564   :  { %v4051_v12 = vadd.f32 %v6341_v55, %v4020_v48  ;;  %v3995_v16 = vmul.f32 %v6330_v39, %v3907_v38 }
 0x566   :  { %4077 = vst [vmem:[#allocation8 + $0xc0] sm:$0xff] %v4051_v12  ;;  %v4021_v8 = vadd.f32 %v3995_v16, %v3964_v11 }
 0x568   :  { %v4052_v14 = vadd.f32 %v6341_v55, %v4021_v8 }
 0x56a   :  { %4078 = vst [vmem:[#allocation8 + $0xc8] sm:$0xff] %v4052_v14 }
 0x56b   :  { %5310 = shalt.err (!%p5307_p5)
}
 0x56c   :  { %4090 = dma.vmem_to_hbm [thread:$0]  %s4085_s15, 3328, %s6448_s7, [#allocation4], %s5329_s11, %s5329_s11, %s5330_s12  }
 0x56d   :  { %5323 = dma.done.wait [#allocation4], 3328  }
 0x56e   :  { %5324 = vsyncadd [#allocation4], 4294963968 }
 0x56f   :  { %4094 = vsyncpa [#allocation3], 1 }
 0x570   :  { %4095 = vsyncpa [#allocation6], 1 }
 0x571   :  { %4096 = vsyncpa [#allocation4], 1 }

</bundles_post_ra>
